<compile_context>
chip_gen: v7x
topology: tpu7x:2x2x1
jax: 0.10.0
libtpu: 0.0.40
codegen_flags: <defaults>
</compile_context>

<pallas_src>
import functools

import jax
import jax.numpy as jnp
from jax.experimental import pallas as pl
from jax.experimental.pallas import tpu as pltpu


def _pick_vmem_limit():
    # ~0.75 * physical VMEM, clamped to [32 MB, 100 MB]; safe fallback 48 MB.
    cap = 64 * 1024 * 1024
    try:
        cap = int(pltpu.get_tpu_info().vmem_capacity_bytes)
    except Exception:
        pass
    return max(32 * 1024 * 1024, min(100 * 1024 * 1024, (cap * 3) // 4))


VMEM_LIMIT = _pick_vmem_limit()


# ----------------------------- conv 3x3 + ReLU -----------------------------
def _conv3x3_relu_kernel(x_ref, xh_ref, w_ref, b_ref, o_ref, xs_ref, acc_ref):
    # x_ref : (1, TH, W+2, Cin)   padded rows [r*TH, r*TH+TH)
    # xh_ref: (1, 2,  W+2, Cin)   halo rows   [r*TH+TH, r*TH+TH+2)
    # w_ref : (3, 3*Cin, Cout)    [dy, dx*Cin + ci, co]   (bf16)
    # b_ref : (1, Cout) f32       o_ref: (1, TH, W, Cout)
    # xs_ref: (TH+2, Wpad, 3*Cin) staging buffer, dx taps folded into K (lanes)
    # acc_ref: (TH*Wpad, Cout) f32
    th = o_ref.shape[1]
    w_out = o_ref.shape[2]
    cout = o_ref.shape[3]
    cin = x_ref.shape[3]
    w_pad = xs_ref.shape[1]          # w_out rounded up to a multiple of 8

    # Stage the halo'd rows with the 3 dx taps packed along the K (lane) axis:
    #   xs[r, c, dx*Cin:(dx+1)*Cin] = x_padded[r, c + dx, :]
    if cin % 128 == 0:
        # lane-tile-aligned destination offsets -> cheap direct stores
        for dx in range(3):
            xs_ref[0:th, 0:w_out, dx * cin:(dx + 1) * cin] = \
                x_ref[0, :, dx:dx + w_out, :]
            xs_ref[th:th + 2, 0:w_out, dx * cin:(dx + 1) * cin] = \
                xh_ref[0, :, dx:dx + w_out, :]
    else:
        # Cin == 64: assemble the 3 taps with a lane concat, single aligned store.
        xs_ref[0:th, 0:w_out, :] = jnp.concatenate(
            [x_ref[0, :, dx:dx + w_out, :] for dx in range(3)], axis=-1)
        xs_ref[th:th + 2, 0:w_out, :] = jnp.concatenate(
            [xh_ref[0, :, dx:dx + w_out, :] for dx in range(3)], axis=-1)

    # 3 MXU matmuls with K = 3*Cin (one per dy tap), f32 VMEM accumulation.
    # Pad columns [w_out, w_pad) are uninitialized scratch; matmul rows are
    # independent so the garbage never reaches a stored output row.
    for dy in range(3):
        lhs = xs_ref[dy:dy + th, :, :].reshape(th * w_pad, 3 * cin)
        contrib = jnp.dot(lhs, w_ref[dy], preferred_element_type=jnp.float32)
        if dy == 0:
            acc_ref[...] = contrib
        else:
            acc_ref[...] += contrib

    out = jnp.maximum(acc_ref[...] + b_ref[...], 0.0)
    out = out.reshape(th, w_pad, cout)[:, 0:w_out, :]
    o_ref[0] = out.astype(o_ref.dtype)


def _pointwise_relu_kernel(x_ref, w_ref, b_ref, o_ref):
    # x_ref: (1, TM, K) bf16  w_ref: (K, Cout) bf16  b_ref: (1, Cout) f32
    acc = jnp.dot(x_ref[0], w_ref[...], preferred_element_type=jnp.float32)
    acc = jnp.maximum(acc + b_ref[...], 0.0)
    o_ref[0] = acc.astype(o_ref.dtype)


def _conv3x3_relu_im2col(x, w, b):
    # First VGG conv (Cin=3): im2col to K=27 so it is one deep-K matmul
    # instead of nine K=3 matmuls on a 3-wide lane dim.
    # TODO(synk): the im2col gather is still built wrapper-side (small layer).
    N, H, W, Cin = x.shape
    Cout = w.shape[-1]
    xp = jnp.pad(x, ((0, 0), (1, 1), (1, 1), (0, 0)))
    cols = [xp[:, dy:dy + H, dx:dx + W, :] for dy in range(3) for dx in range(3)]
    xcol = jnp.concatenate(cols, axis=-1).reshape(N, H * W, 9 * Cin)
    w2 = w.reshape(9 * Cin, Cout)
    bias2 = b.reshape(1, Cout)

    tm = 3584 if (H * W) % 3584 == 0 else H * W
    nt = (H * W) // tm

    out = pl.pallas_call(
        _pointwise_relu_kernel,
        out_shape=jax.ShapeDtypeStruct((N, H * W, Cout), x.dtype),
        grid_spec=pltpu.PrefetchScalarGridSpec(
            num_scalar_prefetch=0,
            grid=(N, nt),
            in_specs=[
                pl.BlockSpec((1, tm, 9 * Cin), lambda n, t: (n, t, 0)),
                pl.BlockSpec((9 * Cin, Cout), lambda n, t: (0, 0)),
                pl.BlockSpec((1, Cout), lambda n, t: (0, 0)),
            ],
            out_specs=pl.BlockSpec((1, tm, Cout), lambda n, t: (n, t, 0)),
        ),
        compiler_params=pltpu.CompilerParams(
            dimension_semantics=("parallel", "parallel"),
            vmem_limit_bytes=VMEM_LIMIT),
    )(xcol, w2, bias2)
    return out.reshape(N, H, W, Cout)


@jax.jit
def conv3x3_relu(x, w, b):
    # x: (N, H, W, Cin) bf16, w: (3, 3, Cin, Cout) bf16, b: (Cout,) f32
    N, H, W, Cin = x.shape
    Cout = w.shape[-1]
    if Cin <= 8:
        return _conv3x3_relu_im2col(x, w, b)

    th = H if H < 28 else 28            # row tile (divides 224/112/56/28/14)
    assert H % th == 0 and th % 2 == 0
    nt = H // th
    th_half = th // 2
    w_pad = ((W + 7) // 8) * 8          # staging width, sublane-aligned

    xp = jnp.pad(x, ((0, 0), (1, 1), (1, 1), (0, 0)))   # (N, H+2, W+2, Cin)
    w2 = w.reshape(3, 3 * Cin, Cout)                     # (dy, dx*Cin, Cout)
    bias2 = b.reshape(1, Cout)

    return pl.pallas_call(
        _conv3x3_relu_kernel,
        out_shape=jax.ShapeDtypeStruct((N, H, W, Cout), x.dtype),
        grid_spec=pltpu.PrefetchScalarGridSpec(
            num_scalar_prefetch=0,
            grid=(N, nt),
            in_specs=[
                # main TH rows of the padded input
                pl.BlockSpec((1, th, W + 2, Cin),
                             lambda n, r: (n, r, 0, 0)),
                # 2 halo rows just below the main block (same padded array)
                pl.BlockSpec((1, 2, W + 2, Cin),
                             lambda n, r: (n, (r + 1) * th_half, 0, 0)),
                # full-Cout weight block, constant index -> fetched once
                pl.BlockSpec((3, 3 * Cin, Cout), lambda n, r: (0, 0, 0)),
                pl.BlockSpec((1, Cout), lambda n, r: (0, 0)),
            ],
            out_specs=pl.BlockSpec((1, th, W, Cout),
                                   lambda n, r: (n, r, 0, 0)),
            scratch_shapes=[
                pltpu.VMEM((th + 2, w_pad, 3 * Cin), x.dtype),
                pltpu.VMEM((th * w_pad, Cout), jnp.float32),
            ],
        ),
        compiler_params=pltpu.CompilerParams(
            dimension_semantics=("parallel", "parallel"),
            vmem_limit_bytes=VMEM_LIMIT),
    )(xp, xp, w2, bias2)


# ----------------------------- maxpool 2x2 s2 ------------------------------
def _maxpool2x2_kernel(x_ref, o_ref):
    # x_ref: (1, 2*TPO, Wo, 2*C) -- the wrapper packs each (even,odd) column
    # pair into the lane axis so loads stay (8,128)-dense.
    # o_ref: (1, TPO, Wo, C)
    tpo = o_ref.shape[1]
    wo = o_ref.shape[2]
    c = o_ref.shape[3]
    x = x_ref[0]                                   # (2*tpo, wo, 2c)
    x = x.reshape(tpo, 2, wo, 2 * c)               # leading-dim split only
    rows = jnp.maximum(x[:, 0], x[:, 1])           # pool over the 2 rows
    o_ref[0] = jnp.maximum(rows[:, :, :c], rows[:, :, c:]).astype(o_ref.dtype)


@jax.jit
def maxpool2x2(x):
    N, H, W, C = x.shape
    Ho, Wo = H // 2, W // 2
    tpo = Ho if Ho < 28 else 28
    assert Ho % tpo == 0
    nt = Ho // tpo
    # row-major-preserving (free) reshape: (w%2, c) -> lane axis
    xr = x.reshape(N, H, Wo, 2 * C)

    return pl.pallas_call(
        _maxpool2x2_kernel,
        out_shape=jax.ShapeDtypeStruct((N, Ho, Wo, C), x.dtype),
        grid_spec=pltpu.PrefetchScalarGridSpec(
            num_scalar_prefetch=0,
            grid=(N, nt),
            in_specs=[pl.BlockSpec((1, 2 * tpo, Wo, 2 * C),
                                   lambda n, r: (n, r, 0, 0))],
            out_specs=pl.BlockSpec((1, tpo, Wo, C), lambda n, r: (n, r, 0, 0)),
        ),
        compiler_params=pltpu.CompilerParams(
            dimension_semantics=("parallel", "parallel"),
            vmem_limit_bytes=VMEM_LIMIT),
    )(xr)


# ------------------------------ linear (+ReLU) ------------------------------
def _linear_kernel(x_ref, w_ref, b_ref, o_ref, acc_ref, *, relu):
    k = pl.program_id(1)

    @pl.when(k == 0)
    def _():
        acc_ref[...] = jnp.zeros_like(acc_ref)

    acc_ref[...] += jnp.dot(x_ref[...], w_ref[...],
                            preferred_element_type=jnp.float32)

    @pl.when(k == pl.num_programs(1) - 1)
    def _():
        r = acc_ref[...] + b_ref[...]
        if relu:
            r = jnp.maximum(r, 0.0)
        o_ref[...] = r.astype(o_ref.dtype)


@functools.partial(jax.jit, static_argnames=("relu", "tn", "tk", "out_dtype"))
def linear(x, w, b, *, relu, tn=1024, tk=2048, out_dtype=None):
    # x: (M, K) bf16, w: (K, N) bf16, b: (N,) f32.  bf16 weight blocks keep the
    # HBM-bound weight streaming at half the f32 byte count and well under the
    # v7x 64 MiB VMEM budget when double-buffered.
    M, K = x.shape
    _, Nf = w.shape
    if out_dtype is None:
        out_dtype = x.dtype
    tn = min(tn, Nf)
    tk = min(tk, K)
    assert Nf % tn == 0 and K % tk == 0, (Nf, tn, K, tk)
    bias2 = b.reshape(1, Nf)
    kernel = functools.partial(_linear_kernel, relu=relu)

    return pl.pallas_call(
        kernel,
        out_shape=jax.ShapeDtypeStruct((M, Nf), out_dtype),
        grid_spec=pltpu.PrefetchScalarGridSpec(
            num_scalar_prefetch=0,
            grid=(Nf // tn, K // tk),
            in_specs=[
                pl.BlockSpec((M, tk), lambda j, k: (0, k)),
                pl.BlockSpec((tk, tn), lambda j, k: (k, j)),
                pl.BlockSpec((1, tn), lambda j, k: (0, j)),
            ],
            out_specs=pl.BlockSpec((M, tn), lambda j, k: (0, j)),
            scratch_shapes=[pltpu.VMEM((M, tn), jnp.float32)],
        ),
        compiler_params=pltpu.CompilerParams(
            dimension_semantics=("parallel", "arbitrary"),
            vmem_limit_bytes=VMEM_LIMIT),
    )(x, w, bias2)


# ------------------------------ parameters ---------------------------------
def init_params(key):
    # TODO(synk): the reference declares block-5 conv1 as Conv2d(256, 512), but
    # its actual input has 512 channels (the PyTorch forward would crash); we
    # use 512 input channels so the forward is runnable.
    conv_cfg = [(3, 64), (64, 64),
                (64, 128), (128, 128),
                (128, 256), (256, 256), (256, 256), (256, 256),
                (256, 512), (512, 512), (512, 512), (512, 512),
                (512, 512), (512, 512), (512, 512), (512, 512)]
    fc_cfg = [(512 * 7 * 7, 4096), (4096, 4096), (4096, 2)]

    params = {"conv": [], "fc": []}
    for cin, cout in conv_cfg:
        key, kw = jax.random.split(key)
        w = (jax.random.normal(kw, (3, 3, cin, cout), jnp.float32)
             * jnp.sqrt(2.0 / (9.0 * cin))).astype(jnp.bfloat16)
        params["conv"].append((w, jnp.zeros((cout,), jnp.float32)))
    for fin, fout in fc_cfg:
        key, kw = jax.random.split(key)
        w = (jax.random.normal(kw, (fin, fout), jnp.float32)
             * jnp.sqrt(2.0 / fin)).astype(jnp.bfloat16)
        params["fc"].append((w, jnp.zeros((fout,), jnp.float32)))
    return params


# ------------------------------- forward -----------------------------------
def vgg19_forward(x_nchw, params):
    x = jnp.transpose(x_nchw, (0, 2, 3, 1)).astype(jnp.bfloat16)  # NCHW->NHWC
    ci = 0
    for nconv in (2, 2, 4, 4, 4):                # VGG19 feature blocks
        for _ in range(nconv):
            w, b = params["conv"][ci]
            ci += 1
            x = conv3x3_relu(x, w, b)
        x = maxpool2x2(x)

    # flatten in PyTorch NCHW order: x.view(B, 512*7*7)
    B = x.shape[0]
    x = jnp.transpose(x, (0, 3, 1, 2)).reshape(B, 512 * 7 * 7)

    (w1, b1), (w2, b2), (w3, b3) = params["fc"]
    x = linear(x, w1, b1, relu=True, tn=1024, tk=3584)   # 25088 = 7 * 3584
    x = linear(x, w2, b2, relu=True, tn=1024, tk=2048)
    x = linear(x, w3, b3, relu=False, tn=1024, tk=2048, out_dtype=jnp.float32)
    return x


if __name__ == "__main__":
    key = jax.random.PRNGKey(0)
    kx, kp = jax.random.split(key)
    # The hard-coded 512*7*7 flatten in the module implies 3x224x224 inputs.
    x = jax.random.normal(kx, (2, 3, 224, 224), jnp.float32)
    params = init_params(kp)

    out = jax.jit(vgg19_forward)(x, params)
    out = jax.block_until_ready(out)
    assert out.shape == (2, 2) and bool(jnp.all(jnp.isfinite(out)))
    print("KERNEL_OK")
</pallas_src>

<mosaic_0001>
module attributes {stable_mosaic.version = 11 : i64} {
  func.func @_pointwise_relu_kernel(%arg0: i32, %arg1: i32, %arg2: memref<1x3584x27xbf16, #tpu.memory_space<vmem>>, %arg3: memref<27x64xbf16, #tpu.memory_space<vmem>>, %arg4: memref<1x64xf32, #tpu.memory_space<vmem>>, %arg5: memref<1x3584x64xbf16, #tpu.memory_space<vmem>>) attributes {dimension_semantics = [#tpu.dimension_semantics<parallel>, #tpu.dimension_semantics<parallel>], iteration_bounds = array<i64: 2, 14>, scalar_prefetch = 0 : i64, scratch_operands = 0 : i64, tpu.core_type = #tpu.core_type<tc>, window_params = [{transform_indices = @transform_0, window_bounds = array<i64: 1, 3584, 27>}, {pipeline_mode = #tpu.pipeline_mode<synchronous>, transform_indices = @transform_1, window_bounds = array<i64: 27, 64>}, {pipeline_mode = #tpu.pipeline_mode<synchronous>, transform_indices = @transform_2, window_bounds = array<i64: 1, 64>}, {transform_indices = @transform_3, window_bounds = array<i64: 1, 3584, 64>}]} {
    %c0 = arith.constant 0 : index
    %c0_0 = arith.constant 0 : index
    %c0_1 = arith.constant 0 : index
    %0 = vector.load %arg2[%c0, %c0_0, %c0_1] : memref<1x3584x27xbf16, #tpu.memory_space<vmem>>, vector<1x3584x27xbf16>
    %1 = vector.shape_cast %0 : vector<1x3584x27xbf16> to vector<3584x27xbf16>
    %c0_2 = arith.constant 0 : index
    %c0_3 = arith.constant 0 : index
    %2 = vector.load %arg3[%c0_2, %c0_3] : memref<27x64xbf16, #tpu.memory_space<vmem>>, vector<27x64xbf16>
    %cst = arith.constant dense<0.000000e+00> : vector<3584x64xf32>
    %3 = tpu.matmul %1, %2, %cst {dimension_numbers = #tpu.dot_dimension_numbers<[1], [0], [0], [1], [0, 0, 1, 1], [], []>} : vector<3584x27xbf16>, vector<27x64xbf16>, vector<3584x64xf32> -> vector<3584x64xf32>
    %c0_4 = arith.constant 0 : index
    %c0_5 = arith.constant 0 : index
    %4 = vector.load %arg4[%c0_4, %c0_5] : memref<1x64xf32, #tpu.memory_space<vmem>>, vector<1x64xf32>
    %5 = vector.broadcast %4 : vector<1x64xf32> to vector<3584x64xf32>
    %6 = arith.addf %3, %5 : vector<3584x64xf32>
    %cst_6 = arith.constant 0.000000e+00 : f32
    %7 = vector.broadcast %cst_6 : f32 to vector<3584x64xf32>
    %8 = arith.maximumf %6, %7 : vector<3584x64xf32>
    %9 = arith.truncf %8 : vector<3584x64xf32> to vector<3584x64xbf16>
    %c0_7 = arith.constant 0 : index
    %c0_8 = arith.constant 0 : index
    %c0_9 = arith.constant 0 : index
    %10 = vector.load %arg5[%c0_7, %c0_8, %c0_9] : memref<1x3584x64xbf16, #tpu.memory_space<vmem>>, vector<1x3584x64xbf16>
    %11 = vector.shape_cast %10 : vector<1x3584x64xbf16> to vector<3584x64xbf16>
    %12 = vector.shape_cast %9 : vector<3584x64xbf16> to vector<1x3584x64xbf16>
    tpu.vector_store %arg5[%c0_7, %c0_8, %c0_9], %12 {strides = array<i32>} : memref<1x3584x64xbf16, #tpu.memory_space<vmem>>, vector<1x3584x64xbf16>,
    return
  }
  func.func @transform_0(%arg0: i32, %arg1: i32) -> (i32, i32, i32) {
    %c0_i32 = arith.constant 0 : i32
    %c0_i32_0 = arith.constant 0 : i32
    return %arg0, %arg1, %c0_i32 : i32, i32, i32
  }
  func.func @transform_1(%arg0: i32, %arg1: i32) -> (i32, i32) {
    %c0_i32 = arith.constant 0 : i32
    %c0_i32_0 = arith.constant 0 : i32
    %c0_i32_1 = arith.constant 0 : i32
    return %c0_i32, %c0_i32_0 : i32, i32
  }
  func.func @transform_2(%arg0: i32, %arg1: i32) -> (i32, i32) {
    %c0_i32 = arith.constant 0 : i32
    %c0_i32_0 = arith.constant 0 : i32
    %c0_i32_1 = arith.constant 0 : i32
    return %c0_i32, %c0_i32_0 : i32, i32
  }
  func.func @transform_3(%arg0: i32, %arg1: i32) -> (i32, i32, i32) {
    %c0_i32 = arith.constant 0 : i32
    %c0_i32_0 = arith.constant 0 : i32
    return %arg0, %arg1, %c0_i32 : i32, i32, i32
  }
}

</mosaic_0001>

<bundles_post_ra>
// kernel: conv3x3_relu.1
= control target key start
LH: loop header
LB: loop body
LE: loop exit
PB: predicated region body
PF: predicated region fallthrough
CT: control target
= control target key end

     0   :  { %8 = vsyncpa [#allocation3], 0  ;;  %s11642_s0 = inlined_call_operand.hbm [shape: bf16[2,50176,27], index: 0, kind: input, shape index: {}]   ;;  %s11643_s1 = inlined_call_operand.vmem [shape: bf16[27,64], index: 1, kind: input, shape index: {}]   ;;  %s11644_s2 = inlined_call_operand.vmem [shape: f32[1,64], index: 2, kind: input, shape index: {}]   ;;  %s11645_s3 = inlined_call_operand.hbm [shape: bf16[2,50176,64], index: 3, kind: output, shape index: {}]  }
   0x1   :  { %10 = vsyncpa [#allocation3 + $0x1], 0 }
   0x2   :  { %11 = vsyncpa [#allocation4], 0 }
   0x3   :  { %13 = vsyncpa [#allocation4 + $0x1], 0  ;;  %s9612_s12 = smov 0   ;;  %s9614_s13 = smov 0  }
   0x4   :  { %s9616_s14 = smov 0   ;;  %s9618_s15 = smov 0  }
   0x5   :  { %s9620_s16 = smov 0   ;;  %s9622_s17 = smov 0  }
   0x6   :  { %s9624_s18 = smov 0   ;;  %s9626_s19 = smov 0  }
   0x7 LB: > { %s7100_s20 = sadd.s32 4294967295, %s9583_s19   ;;  %s7101_s21 = sadd.s32 4294967294, %s9583_s19   ;;  %s9583_s19 = sphi %s9626_s19, %s19_s19   ;;  %s9579_s18 = sphi %s9624_s18, %s11663_s18   ;;  %s9575_s17 = sphi %s9622_s17, %s11662_s17   ;;  %s9571_s16 = sphi %s9620_s16, %s11661_s16   ;;  %s9567_s15 = sphi %s9618_s15, %s11660_s15   ;;  %s9563_s14 = sphi %s9616_s14, %s11659_s14   ;;  %s9559_s13 = sphi %s9614_s13, %s11658_s13   ;;  %s9555_s12 = sphi %s9612_s12, %s11657_s12  }
   0x8   : > { %s28_s22 = sadd.s32 1, %s9575_s17  ;;  %s31_s23 = sadd.s32 1, %s9579_s18 }
   0x9   : > { %p29_p0 = scmp.ge.s32.totalorder %s28_s22, 14  ;;  %s40_s24 = sadd.s32 1, %s9563_s14 }
   0xa   : > { %p47_p1 = scmp.ne.s32.totalorder %s9563_s14, %s9559_s13  ;;  %p48_p2 = scmp.eq.s32.totalorder %s9583_s19, 0 }
   0xb   : > { %s11665_s22 = smov (%p29_p0, %s28_s22), 0  ;;  %s11667_s23 = smov (!%p29_p0, %s31_s23), %s9579_s18 }
   0xc   : > { %s36_s25 = ssub.s32 %s9575_s17, %s11665_s22  ;;  %p9665_p3 = por %p48_p2, %p47_p1 }
   0xd   : > { %p33_p4 = scmp.ge.s32.totalorder %s11667_s23, 2  ;;  %p53_p5 = scmp.ne.s32.totalorder %s9559_s13, %s9555_s12 }
   0xe   : > { %p54_p6 = scmp.eq.s32.totalorder %s7100_s20, 0  ;;  %p121_p7 = scmp.eq.s32.totalorder %s7100_s20, 27 }
   0xf   : > { %s11669_s23 = smov (%p33_p4, %s11667_s23), 0  ;;  %p127_p10 = scmp.eq.s32.totalorder %s7101_s21, 27 }
  0x10   : > { %11649 = sst [smem:[#allocation8_spill]] %s11669_s23  ;;  %p9673_p8 = por %p54_p6, %p53_p5 }
  0x11   : > { %p9677_p9 = por %p121_p7, %p47_p1  ;;  %s35_s29 = ssub.s32 %s9579_s18, %s11669_s23 }
  0x12   : > { %s37_s30 = sor.u32 %s36_s25, %s35_s29  ;;  %p9683_p12 = por %p127_p10, %p53_p5 }
  0x13   : > { %s11651_s28 = scalar_select %p9677_p9, 1, 0 }
  0x14   : > { %p38_p11 = scmp.eq.s32.totalorder %s37_s30, 0  ;;  %p9154_p13 = scmp.lt.s32.totalorder %s9583_s19, 28 }
  0x15   : > { %s11652_s4 = scalar_select %p9683_p12, 1, 0 }
  0x16   : > { %s153_s5 = sand.u32 1, %s9563_s14   ;;  %s158_s8 = smul.u32 448, %s9575_s17 }
  0x17   : > { %s9690_s6 = scalar_select %p38_p11, %s9563_s14, %s40_s24  }
  0x18   : > { %s9138_s7 = smul.u32 1792, %s153_s5  ;;  %p9695_p0 = pnand %p9154_p13, %p9665_p3 }
  0x19   : > { %s9139_s10 = smul.u32 6272, %s9579_s18  ;;  %s9707_s26 = scalar_lea.sflag [#allocation3], %s153_s5 }
  0x1a   : > { %s157_s11 = scalar_lea.vmem [#allocation2], %s9138_s7  ;;  %p9457_p2 = pneg %p9695_p0 }
  0x1b   : > { %s166_s20 = sshll.u32 %s157_s11, 4  ;;  %s163_s21 = sadd.s32 %s9139_s10, %s158_s8  ;;  %s9700_s20 = int_to_ptr.vmem [resolvable:$true] %s166_s20 }
  0x1c   : > { %s7104_s25 = sshll.u32 %s163_s21, 6  ;;  %s9460_s10 = scalar_lea.hbm %s11642_s0, 802816 }
  0x1d   : > { %s9705_s24 = scalar_lea.hbm %s11642_s0, %s7104_s25 }
  0x1e   : > { %s9455_s23 = scalar_lea.hbm %s9705_s24, 28672  ;;  %p9461_p5 = scmp.lt.u32.totalorder %s9705_s24, %s11642_s0 }
  0x1f   : > { %p9456_p1 = scmp.ne.s32.totalorder %s9705_s24, %s9455_s23  ;;  %p9462_p6 = scmp.lt.u32.totalorder %s9460_s10, %s9455_s23 }
  0x20   : > { %p9464_p10 = scmp.lt.u32.totalorder %s9455_s23, %s9705_s24 }
  0x21   : > { %p9458_p3 = pnand %p9457_p2, %p9456_p1  ;;  %p9463_p7 = por %p9462_p6, %p9461_p5 }
  0x23   : > { %p9459_p4 = pneg %p9458_p3  ;;  %p9465_p11 = por %p9464_p10, %p9463_p7 }
  0x25   : > { %p9466_p13 = pnand %p9465_p11, %p9459_p4 }
  0x27   : > { %9469 = shalt.err (!%p9466_p13)
}
  0x28   : > { %s9470_s5 = scalar_lea.vmem %s9700_s20, 28672  ;;  %s9585_s25 = smov [#allocation2]  }
  0x29   : > { %p9471_p1 = scmp.ne.s32.totalorder %s9700_s20, %s9470_s5  ;;  %s9475_s29 = sshll.u32 %s9585_s25, 4  ;;  %s9476_s29 = int_to_ptr.vmem [resolvable:$false] %s9475_s29 }
  0x2a   : > { %s9477_s30 = scalar_lea.vmem %s9476_s29, 57344  ;;  %p9478_p9 = scmp.lt.s32.totalorder %s9700_s20, %s9476_s29 }
  0x2b   : > { %p9473_p3 = pnand %p9471_p1, %p9457_p2  ;;  %p9479_p5 = scmp.lt.s32.totalorder %s9477_s30, %s9470_s5 }
  0x2d   : > { %p9474_p12 = pneg %p9473_p3  ;;  %p9480_p6 = por %p9479_p5, %p9478_p9 }
  0x2f   : > { %p9481_p7 = pnand %p9480_p6, %p9474_p12 }
  0x31   : > { %9484 = shalt.err (!%p9481_p7)
}
  0x32   : > { %s9586_s23 = smov 64   ;;  %s9587_s7 = smov 4  }
  0x33   : > { %9149 = dma.hbm_to_vmem [thread:$0]  (!%p9695_p0), %s9705_s24, 28672, %s9700_s20, %s9707_s26, %s9586_s23, %s9586_s23, %s9587_s7  }
  0x34   : > { %p7105_p2 = scmp.ge.s32.totalorder %s9583_s19, 1  ;;  %p174_p4 = scmp.lt.s32.totalorder %s9583_s19, 29 }
  0x36   : > { %p175_p10 = pnand %p7105_p2, %p174_p4 }
  0x37   : > { %s9738_s8 = sand.u32 (!%p175_p10), 1, %s9559_s13  }
  0x38   : > { %178 = sbr.rel (%p175_p10) target bundleno = 749 (0x2ed), region = 32  ;;  %s181_s11 = scalar_lea.sflag (!%p175_p10), [#allocation3], %s9738_s8 }
  0x39   : > { %s9140_s10 = smul.u32 (!%p175_p10), 1792, %s9738_s8 }
  0x3b   : > { %s9744_s21 = scalar_lea.vmem (!%p175_p10), [#allocation2], %s9140_s10 }
  0x3f   : > { %9546 = dma.done.wait (%p9673_p8), %s181_s11, 28672  }
  0x40   : > { %9548 = vsyncadd (%p9673_p8), %s181_s11, 4294938624  ;;  %vm2473_vm0 = vcmask 1044480   ;;  %vm2474_vm1 = vcmask 1045504   ;;  %v9588_v0 = vmov 65535   ;;  %vm1800_vm2 = vcmask 220160   ;;  %v9225_v2 = vld [vmem:[%s11643_s1] sm:$0xff]  }
  0x41   : > { %v2475_v1 = vsel %vm2473_vm0, 4294967295, %v9588_v0  ;;  %v9226_v4 = vld [vmem:[%s11643_s1 + $0x8] sm:$0x3f]   ;;  %8682 = vmatprep.subr.bf16.mxu0 %v9225_v2  ;;  %9134 = vmatprep.subr.bf16.mxu1 %v9225_v2  ;;  %v9227_v5 = vld [vmem:[%s9744_s21] sm:$0xff]   ;;  %v9231_v10 = vld [vmem:[%s9744_s21 + $0x10] sm:$0xff]   ;;  %vm6545_vm3 = vcmask 519168  }
  0x42   : > { %v2476_v3 = vsel %vm2474_vm1, %v2475_v1, 0  ;;  %8683 = vmatpush3.bf16.msra.mxu0 %v9225_v2  ;;  %9136 = vmatpush3.bf16.msra.mxu1 %v9225_v2  ;;  %v9228_v7 = vld [vmem:[%s9744_s21 + $0x380] sm:$0xff]   ;;  %v9229_v8 = vld [vmem:[%s9744_s21 + $0x8] sm:$0xff]   ;;  %v9232_v11 = vld [vmem:[%s9744_s21 + $0x390] sm:$0xff]   ;;  %s9999_s25 = scalar_lea.vmem [#allocation5], %s9140_s10  ;;  %s7002_s20 = smul.u32 448, %s9567_s15 }
  0x43   : > { %v2478_v6 = vand.u32 %v9226_v4, %v2476_v3  ;;  %8686 = vmatprep.mubr.msk.bf16.mxu0 %vm1800_vm2, %v9227_v5  ;;  %v9230_v9 = vld [vmem:[%s9744_s21 + $0x388] sm:$0xff]   ;;  %8910 = vmatprep.mubr.msk.bf16.mxu1 %vm1800_vm2, %v9228_v7  ;;  %v9233_v12 = vld [vmem:[%s9744_s21 + $0x18] sm:$0xff]   ;;  %v9235_v14 = vld [vmem:[%s9744_s21 + $0x20] sm:$0xff]   ;;  %s9141_s24 = smul.u32 6272, %s9571_s16  ;;  %s7010_s26 = sshll.u32 %s9999_s25, 4  ;;  %s11576_s26 = int_to_ptr.vmem [resolvable:$true] %s7010_s26 }
  0x44   : > { %v9234_v13 = vld [vmem:[%s9744_s21 + $0x398] sm:$0xff]   ;;  %v9236_v15 = vld [vmem:[%s9744_s21 + $0x3a0] sm:$0xff]   ;;  %v9237_v16 = vld [vmem:[%s9744_s21 + $0x28] sm:$0xff]   ;;  %s6995_s30 = scalar_lea.sflag [#allocation4], %s9738_s8  ;;  %s9485_s23 = scalar_lea.vmem %s11576_s26, 28672 }
  0x45   : > { %8684 = vmatprep.subr.bf16.mxu0 %v2478_v6  ;;  %9135 = vmatprep.subr.bf16.mxu1 %v2478_v6  ;;  %v9238_v17 = vld [vmem:[%s9744_s21 + $0x3a8] sm:$0xff]   ;;  %v9239_v18 = vld [vmem:[%s9744_s21 + $0x30] sm:$0xff]   ;;  %v9241_v20 = vld [vmem:[%s9744_s21 + $0x38] sm:$0xff]   ;;  %s11553_s15 = sadd.s32 %s9141_s24, %s7002_s20  ;;  %p9486_p8 = scmp.ne.s32.totalorder %s11576_s26, %s9485_s23 }
  0x46   : > { %8685 = vmatpush3.bf16.msra.mxu0 %v2478_v6  ;;  %9137 = vmatpush3.bf16.msra.mxu1 %v2478_v6  ;;  %v9240_v19 = vld [vmem:[%s9744_s21 + $0x3b0] sm:$0xff]   ;;  %v9242_v21 = vld [vmem:[%s9744_s21 + $0x3b8] sm:$0xff]   ;;  %v9243_v22 = vld [vmem:[%s9744_s21 + $0x40] sm:$0xff]   ;;  %s8005_s16 = sshll.u32 %s11553_s15, 6  ;;  %p11654_p9 = scmp.ne.s32.totalorder %s11651_s28, 0 }
  0x47   : > { %v9244_v23 = vld [vmem:[%s9744_s21 + $0x3c0] sm:$0xff]   ;;  %v9245_v24 = vld [vmem:[%s9744_s21 + $0x48] sm:$0xff]   ;;  %v9247_v26 = vld [vmem:[%s9744_s21 + $0x50] sm:$0xff]   ;;  %s11574_s29 = scalar_lea.hbm %s11645_s3, %s8005_s16  ;;  %s9589_s7 = smov [#allocation5]  }
  0x48   : > { %v9246_v25 = vld [vmem:[%s9744_s21 + $0x3c8] sm:$0xff]   ;;  %v9248_v27 = vld [vmem:[%s9744_s21 + $0x3d0] sm:$0xff]   ;;  %v9249_v28 = vld [vmem:[%s9744_s21 + $0x58] sm:$0xff]   ;;  %p9487_p12 = pnand %p9486_p8, %p11654_p9  ;;  %s9489_s10 = sshll.u32 %s9589_s7, 4  ;;  %s9490_s10 = int_to_ptr.vmem [resolvable:$false] %s9489_s10 }
  0x49   : > { %8687 = vmatmul.mubr.msk.bf16.vlgmr.msra.gmra.mrb[0].mxu0 %vm1800_vm2, %v9229_v8  ;;  %8911 = vmatmul.mubr.msk.bf16.vlgmr.msra.gmra.mrb[0].mxu1 %vm1800_vm2, %v9230_v9  ;;  %v9250_v29 = vld [vmem:[%s9744_s21 + $0x3d8] sm:$0xff]   ;;  %v9251_v30 = vld [vmem:[%s9744_s21 + $0x60] sm:$0xff]   ;;  %v9253_v32 = vld [vmem:[%s9744_s21 + $0x68] sm:$0xff]   ;;  %s9491_s11 = scalar_lea.vmem %s9490_s10, 57344  ;;  %p9492_p11 = scmp.lt.s32.totalorder %s11576_s26, %s9490_s10 }
  0x4a   : > { %8690 = vmatprep.mubr.msk.bf16.mxu0 %vm1800_vm2, %v9231_v10  ;;  %8914 = vmatprep.mubr.msk.bf16.mxu1 %vm1800_vm2, %v9232_v11  ;;  %v9252_v31 = vld [vmem:[%s9744_s21 + $0x3e0] sm:$0xff]   ;;  %v9254_v33 = vld [vmem:[%s9744_s21 + $0x3e8] sm:$0xff]   ;;  %v9255_v34 = vld [vmem:[%s9744_s21 + $0x70] sm:$0xff]   ;;  %p9488_p0 = pneg %p9487_p12  ;;  %p9493_p13 = scmp.lt.s32.totalorder %s9491_s11, %s9485_s23 }
  0x4b   : > { %v9256_v35 = vld [vmem:[%s9744_s21 + $0x3f0] sm:$0xff]   ;;  %v9257_v36 = vld [vmem:[%s9744_s21 + $0x78] sm:$0xff]   ;;  %v9259_v38 = vld [vmem:[%s9744_s21 + $0x80] sm:$0xff]  }
  0x4c   : > { %v9258_v37 = vld [vmem:[%s9744_s21 + $0x3f8] sm:$0xff]   ;;  %v9260_v39 = vld [vmem:[%s9744_s21 + $0x400] sm:$0xff]   ;;  %v9261_v40 = vld [vmem:[%s9744_s21 + $0x88] sm:$0xff]   ;;  %p9494_p1 = por %p9493_p13, %p9492_p11 }
  0x4d   : > { %v9262_v41 = vld [vmem:[%s9744_s21 + $0x408] sm:$0xff]   ;;  %v9263_v42 = vld [vmem:[%s9744_s21 + $0x90] sm:$0xff]   ;;  %v9265_v44 = vld [vmem:[%s9744_s21 + $0x98] sm:$0xff]  }
  0x4e   : > { %v9264_v43 = vld [vmem:[%s9744_s21 + $0x410] sm:$0xff]   ;;  %v9266_v45 = vld [vmem:[%s9744_s21 + $0x418] sm:$0xff]   ;;  %v9267_v46 = vld [vmem:[%s9744_s21 + $0xa0] sm:$0xff]   ;;  %p9495_p3 = pnand %p9494_p1, %p9488_p0 }
  0x4f   : > { %v9268_v47 = vld [vmem:[%s9744_s21 + $0x420] sm:$0xff]   ;;  %v9269_v48 = vld [vmem:[%s9744_s21 + $0xa8] sm:$0xff]   ;;  %v9271_v50 = vld [vmem:[%s9744_s21 + $0xb0] sm:$0xff]  }
  0x50   : > { %v9270_v49 = vld [vmem:[%s9744_s21 + $0x428] sm:$0xff]   ;;  %v9272_v51 = vld [vmem:[%s9744_s21 + $0x430] sm:$0xff]   ;;  %v9273_v52 = vld [vmem:[%s9744_s21 + $0xb8] sm:$0xff]  }
  0x51   : > { %8691 = vmatmul.mubr.msk.bf16.gmra.mrb[4].mxu0 %vm1800_vm2, %v9233_v12  ;;  %8915 = vmatmul.mubr.msk.bf16.gmra.mrb[4].mxu1 %vm1800_vm2, %v9234_v13  ;;  %v9274_v53 = vld [vmem:[%s9744_s21 + $0x438] sm:$0xff]   ;;  %v9275_v54 = vld [vmem:[%s9744_s21 + $0xc0] sm:$0xff]   ;;  %v9277_v56 = vld [vmem:[%s9744_s21 + $0xc8] sm:$0xff]  }
  0x52   : > { %8694 = vmatprep.mubr.msk.bf16.mxu0 %vm1800_vm2, %v9235_v14  ;;  %8918 = vmatprep.mubr.msk.bf16.mxu1 %vm1800_vm2, %v9236_v15  ;;  %v9276_v55 = vld [vmem:[%s9744_s21 + $0x440] sm:$0xff]   ;;  %v9278_v57 = vld [vmem:[%s9744_s21 + $0x448] sm:$0xff]   ;;  %v9279_v58 = vld [vmem:[%s9744_s21 + $0xd0] sm:$0xff]  }
  0x53   : > { %v9280_v59 = vld [vmem:[%s9744_s21 + $0x450] sm:$0xff]   ;;  %v9281_v60 = vld [vmem:[%s9744_s21 + $0xd8] sm:$0xff]   ;;  %v9283_v62 = vld [vmem:[%s9744_s21 + $0xe0] sm:$0xff]  }
  0x54   : > { %v9282_v61 = vld [vmem:[%s9744_s21 + $0x458] sm:$0xff]   ;;  %v9284_v63 = vld [vmem:[%s9744_s21 + $0x460] sm:$0xff]   ;;  %v9285_v0 = vld [vmem:[%s9744_s21 + $0xe8] sm:$0xff]  }
  0x55   : > { %v9286_v1 = vld [vmem:[%s9744_s21 + $0x468] sm:$0xff]   ;;  %v9287_v2 = vld [vmem:[%s9744_s21 + $0xf0] sm:$0xff]   ;;  %v9289_v4 = vld [vmem:[%s9744_s21 + $0xf8] sm:$0xff]  }
  0x56   : > { %v9288_v3 = vld [vmem:[%s9744_s21 + $0x470] sm:$0xff]   ;;  %v9290_v5 = vld [vmem:[%s9744_s21 + $0x478] sm:$0xff]   ;;  %v9291_v6 = vld [vmem:[%s9744_s21 + $0x100] sm:$0xff]  }
  0x57   : > { %v9292_v7 = vld [vmem:[%s9744_s21 + $0x480] sm:$0xff]   ;;  %v9293_v8 = vld [vmem:[%s9744_s21 + $0x108] sm:$0xff]   ;;  %v9295_v10 = vld [vmem:[%s9744_s21 + $0x110] sm:$0xff]  }
  0x58   : > { %v9294_v9 = vld [vmem:[%s9744_s21 + $0x488] sm:$0xff]   ;;  %v9296_v11 = vld [vmem:[%s9744_s21 + $0x490] sm:$0xff]   ;;  %v9297_v12 = vld [vmem:[%s9744_s21 + $0x118] sm:$0xff]  }
  0x59   : > { %8695 = vmatmul.mubr.msk.bf16.gmra.mrb[8].mxu0 %vm1800_vm2, %v9237_v16  ;;  %8919 = vmatmul.mubr.msk.bf16.gmra.mrb[8].mxu1 %vm1800_vm2, %v9238_v17  ;;  %v9298_v13 = vld [vmem:[%s9744_s21 + $0x498] sm:$0xff]   ;;  %v9299_v14 = vld [vmem:[%s9744_s21 + $0x120] sm:$0xff]   ;;  %v9301_v16 = vld [vmem:[%s9744_s21 + $0x128] sm:$0xff]  }
  0x5a   : > { %8698 = vmatprep.mubr.msk.bf16.mxu0 %vm1800_vm2, %v9239_v18  ;;  %8922 = vmatprep.mubr.msk.bf16.mxu1 %vm1800_vm2, %v9240_v19  ;;  %v9300_v15 = vld [vmem:[%s9744_s21 + $0x4a0] sm:$0xff]   ;;  %v9302_v17 = vld [vmem:[%s9744_s21 + $0x4a8] sm:$0xff]   ;;  %v9303_v18 = vld [vmem:[%s9744_s21 + $0x130] sm:$0xff]  }
  0x5b   : > { %v9304_v19 = vld [vmem:[%s9744_s21 + $0x4b0] sm:$0xff]  }
  0x61   : > { %8699 = vmatmul.mubr.msk.bf16.gmra.mrb[12].mxu0 %vm1800_vm2, %v9241_v20  ;;  %8923 = vmatmul.mubr.msk.bf16.gmra.mrb[12].mxu1 %vm1800_vm2, %v9242_v21  ;;  %v9305_v20 = vld [vmem:[%s9744_s21 + $0x138] sm:$0xff]  }
  0x62   : > { %8702 = vmatprep.mubr.msk.bf16.mxu0 %vm1800_vm2, %v9243_v22  ;;  %8926 = vmatprep.mubr.msk.bf16.mxu1 %vm1800_vm2, %v9244_v23  ;;  %v9306_v21 = vld [vmem:[%s9744_s21 + $0x4b8] sm:$0xff]   ;;  %v9307_v22 = vld [vmem:[%s9744_s21 + $0x140] sm:$0xff]  }
  0x63   : > { %v9308_v23 = vld [vmem:[%s9744_s21 + $0x4c0] sm:$0xff]  }
  0x69   : > { %8703 = vmatmul.mubr.msk.bf16.gmra.mrb[16].mxu0 %vm1800_vm2, %v9245_v24  ;;  %8927 = vmatmul.mubr.msk.bf16.gmra.mrb[16].mxu1 %vm1800_vm2, %v9246_v25  ;;  %v9309_v24 = vld [vmem:[%s9744_s21 + $0x148] sm:$0xff]  }
  0x6a   : > { %8706 = vmatprep.mubr.msk.bf16.mxu0 %vm1800_vm2, %v9247_v26  ;;  %8930 = vmatprep.mubr.msk.bf16.mxu1 %vm1800_vm2, %v9248_v27  ;;  %v9310_v25 = vld [vmem:[%s9744_s21 + $0x4c8] sm:$0xff]   ;;  %v9311_v26 = vld [vmem:[%s9744_s21 + $0x150] sm:$0xff]  }
  0x6b   : > { %v9312_v27 = vld [vmem:[%s9744_s21 + $0x4d0] sm:$0xff]  }
  0x71   : > { %8707 = vmatmul.mubr.msk.bf16.gmra.mrb[20].mxu0 %vm1800_vm2, %v9249_v28  ;;  %8931 = vmatmul.mubr.msk.bf16.gmra.mrb[20].mxu1 %vm1800_vm2, %v9250_v29  ;;  %v9313_v28 = vld [vmem:[%s9744_s21 + $0x158] sm:$0xff]  }
  0x72   : > { %8710 = vmatprep.mubr.msk.bf16.mxu0 %vm1800_vm2, %v9251_v30  ;;  %8934 = vmatprep.mubr.msk.bf16.mxu1 %vm1800_vm2, %v9252_v31  ;;  %v9314_v29 = vld [vmem:[%s9744_s21 + $0x4d8] sm:$0xff]   ;;  %v9315_v30 = vld [vmem:[%s9744_s21 + $0x160] sm:$0xff]  }
  0x73   : > { %v9316_v31 = vld [vmem:[%s9744_s21 + $0x4e0] sm:$0xff]  }
  0x79   : > { %8711 = vmatmul.mubr.msk.bf16.gmra.mrb[24].mxu0 %vm1800_vm2, %v9253_v32  ;;  %8935 = vmatmul.mubr.msk.bf16.gmra.mrb[24].mxu1 %vm1800_vm2, %v9254_v33  ;;  %v9317_v32 = vld [vmem:[%s9744_s21 + $0x168] sm:$0xff]  }
  0x7a   : > { %8714 = vmatprep.mubr.msk.bf16.mxu0 %vm1800_vm2, %v9255_v34  ;;  %8938 = vmatprep.mubr.msk.bf16.mxu1 %vm1800_vm2, %v9256_v35  ;;  %v9318_v33 = vld [vmem:[%s9744_s21 + $0x4e8] sm:$0xff]   ;;  %v9319_v34 = vld [vmem:[%s9744_s21 + $0x170] sm:$0xff]  }
  0x7b   : > { %v9320_v35 = vld [vmem:[%s9744_s21 + $0x4f0] sm:$0xff]  }
  0x81   : > { %8715 = vmatmul.mubr.msk.bf16.gmra.mrb[28].mxu0 %vm1800_vm2, %v9257_v36  ;;  %8939 = vmatmul.mubr.msk.bf16.gmra.mrb[28].mxu1 %vm1800_vm2, %v9258_v37  ;;  %v9321_v36 = vld [vmem:[%s9744_s21 + $0x178] sm:$0xff]  }
  0x82   : > { %8718 = vmatprep.mubr.msk.bf16.mxu0 %vm1800_vm2, %v9259_v38  ;;  %8942 = vmatprep.mubr.msk.bf16.mxu1 %vm1800_vm2, %v9260_v39  ;;  %v9322_v37 = vld [vmem:[%s9744_s21 + $0x4f8] sm:$0xff]   ;;  %v9323_v38 = vld [vmem:[%s9744_s21 + $0x180] sm:$0xff]  }
  0x83   : > { %v9324_v39 = vld [vmem:[%s9744_s21 + $0x500] sm:$0xff]  }
  0x89   : > { %8719 = vmatmul.mubr.msk.bf16.gmra.mrb[32].mxu0 %vm1800_vm2, %v9261_v40  ;;  %8943 = vmatmul.mubr.msk.bf16.gmra.mrb[32].mxu1 %vm1800_vm2, %v9262_v41  ;;  %v9325_v40 = vld [vmem:[%s9744_s21 + $0x188] sm:$0xff]  }
  0x8a   : > { %8722 = vmatprep.mubr.msk.bf16.mxu0 %vm1800_vm2, %v9263_v42  ;;  %8946 = vmatprep.mubr.msk.bf16.mxu1 %vm1800_vm2, %v9264_v43  ;;  %v9326_v41 = vld [vmem:[%s9744_s21 + $0x508] sm:$0xff]   ;;  %v9327_v42 = vld [vmem:[%s9744_s21 + $0x190] sm:$0xff]  }
  0x8b   : > { %v9328_v43 = vld [vmem:[%s9744_s21 + $0x510] sm:$0xff]  }
  0x91   : > { %8723 = vmatmul.mubr.msk.bf16.gmra.mrb[36].mxu0 %vm1800_vm2, %v9265_v44  ;;  %8947 = vmatmul.mubr.msk.bf16.gmra.mrb[36].mxu1 %vm1800_vm2, %v9266_v45  ;;  %v9329_v44 = vld [vmem:[%s9744_s21 + $0x198] sm:$0xff]  }
  0x92   : > { %8726 = vmatprep.mubr.msk.bf16.mxu0 %vm1800_vm2, %v9267_v46  ;;  %8950 = vmatprep.mubr.msk.bf16.mxu1 %vm1800_vm2, %v9268_v47  ;;  %v9330_v45 = vld [vmem:[%s9744_s21 + $0x518] sm:$0xff]   ;;  %v9331_v46 = vld [vmem:[%s9744_s21 + $0x1a0] sm:$0xff]  }
  0x93   : > { %v9332_v47 = vld [vmem:[%s9744_s21 + $0x520] sm:$0xff]  }
  0x99   : > { %8727 = vmatmul.mubr.msk.bf16.gmra.mrb[40].mxu0 %vm1800_vm2, %v9269_v48  ;;  %8951 = vmatmul.mubr.msk.bf16.gmra.mrb[40].mxu1 %vm1800_vm2, %v9270_v49  ;;  %v9333_v48 = vld [vmem:[%s9744_s21 + $0x1a8] sm:$0xff]  }
  0x9a   : > { %8730 = vmatprep.mubr.msk.bf16.mxu0 %vm1800_vm2, %v9271_v50  ;;  %8954 = vmatprep.mubr.msk.bf16.mxu1 %vm1800_vm2, %v9272_v51  ;;  %v9334_v49 = vld [vmem:[%s9744_s21 + $0x528] sm:$0xff]   ;;  %v9335_v50 = vld [vmem:[%s9744_s21 + $0x1b0] sm:$0xff]  }
  0x9b   : > { %v9336_v51 = vld [vmem:[%s9744_s21 + $0x530] sm:$0xff]  }
  0xa1   : > { %8731 = vmatmul.mubr.msk.bf16.gmra.mrb[44].mxu0 %vm1800_vm2, %v9273_v52  ;;  %8955 = vmatmul.mubr.msk.bf16.gmra.mrb[44].mxu1 %vm1800_vm2, %v9274_v53  ;;  %v9977_v52 = vld [vmem:[%s11644_s2] ss:$0 sm:$0xff] }
  0xa2   : > { %8734 = vmatprep.mubr.msk.bf16.mxu0 %vm1800_vm2, %v9275_v54  ;;  %8958 = vmatprep.mubr.msk.bf16.mxu1 %vm1800_vm2, %v9276_v55 }
  0xa9   : > { %8735 = vmatmul.mubr.msk.bf16.gmra.mrb[48].mxu0 %vm1800_vm2, %v9277_v56  ;;  %8959 = vmatmul.mubr.msk.bf16.gmra.mrb[48].mxu1 %vm1800_vm2, %v9278_v57 }
  0xaa   : > { %8738 = vmatprep.mubr.msk.bf16.mxu0 %vm1800_vm2, %v9279_v58  ;;  %8962 = vmatprep.mubr.msk.bf16.mxu1 %vm1800_vm2, %v9280_v59  ;;  %v9337_v59 = vld [vmem:[%s9744_s21 + $0x1b8] sm:$0xff]  }
  0xb1   : > { %8739 = vmatmul.mubr.msk.bf16.gmra.mrb[52].mxu0 %vm1800_vm2, %v9281_v60  ;;  %8963 = vmatmul.mubr.msk.bf16.gmra.mrb[52].mxu1 %vm1800_vm2, %v9282_v61  ;;  %v9338_v60 = vld [vmem:[%s9744_s21 + $0x538] sm:$0xff]  }
  0xb2   : > { %8742 = vmatprep.mubr.msk.bf16.mxu0 %vm1800_vm2, %v9283_v62  ;;  %8966 = vmatprep.mubr.msk.bf16.mxu1 %vm1800_vm2, %v9284_v63 }
  0xb9   : > { %8743 = vmatmul.mubr.msk.bf16.gmra.mrb[56].mxu0 %vm1800_vm2, %v9285_v0  ;;  %8967 = vmatmul.mubr.msk.bf16.gmra.mrb[56].mxu1 %vm1800_vm2, %v9286_v1  ;;  %v9339_v1 = vld [vmem:[%s9744_s21 + $0x1c0] sm:$0xff]  }
  0xba   : > { %8746 = vmatprep.mubr.msk.bf16.mxu0 %vm1800_vm2, %v9287_v2  ;;  %8970 = vmatprep.mubr.msk.bf16.mxu1 %vm1800_vm2, %v9288_v3  ;;  %v9340_v2 = vld [vmem:[%s9744_s21 + $0x540] sm:$0xff]  }
  0xc1   : > { %8747 = vmatmul.mubr.msk.bf16.gmra.mrb[60].mxu0 %vm1800_vm2, %v9289_v4  ;;  %8971 = vmatmul.mubr.msk.bf16.gmra.mrb[60].mxu1 %vm1800_vm2, %v9290_v5 }
  0xc2   : > { %8750 = vmatprep.mubr.msk.bf16.mxu0 %vm1800_vm2, %v9291_v6  ;;  %8974 = vmatprep.mubr.msk.bf16.mxu1 %vm1800_vm2, %v9292_v7 }
  0xc9   : > { %8751 = vmatmul.mubr.msk.bf16.gmra.mrb[64].mxu0 %vm1800_vm2, %v9293_v8  ;;  %8975 = vmatmul.mubr.msk.bf16.gmra.mrb[64].mxu1 %vm1800_vm2, %v9294_v9 }
  0xca   : > { %8754 = vmatprep.mubr.msk.bf16.mxu0 %vm1800_vm2, %v9295_v10  ;;  %8978 = vmatprep.mubr.msk.bf16.mxu1 %vm1800_vm2, %v9296_v11 }
  0xd1   : > { %8755 = vmatmul.mubr.msk.bf16.gmra.mrb[68].mxu0 %vm1800_vm2, %v9297_v12  ;;  %8979 = vmatmul.mubr.msk.bf16.gmra.mrb[68].mxu1 %vm1800_vm2, %v9298_v13 }
  0xd2   : > { %8758 = vmatprep.mubr.msk.bf16.mxu0 %vm1800_vm2, %v9299_v14  ;;  %8982 = vmatprep.mubr.msk.bf16.mxu1 %vm1800_vm2, %v9300_v15 }
  0xd9   : > { %8759 = vmatmul.mubr.msk.bf16.gmra.mrb[72].mxu0 %vm1800_vm2, %v9301_v16  ;;  %8983 = vmatmul.mubr.msk.bf16.gmra.mrb[72].mxu1 %vm1800_vm2, %v9302_v17 }
  0xda   : > { %8762 = vmatprep.mubr.msk.bf16.mxu0 %vm1800_vm2, %v9303_v18  ;;  %8986 = vmatprep.mubr.msk.bf16.mxu1 %vm1800_vm2, %v9304_v19 }
  0xe1   : > { %8763 = vmatmul.mubr.msk.bf16.gmra.mrb[76].mxu0 %vm1800_vm2, %v9305_v20  ;;  %8987 = vmatmul.mubr.msk.bf16.gmra.mrb[76].mxu1 %vm1800_vm2, %v9306_v21 }
  0xe2   : > { %8766 = vmatprep.mubr.msk.bf16.mxu0 %vm1800_vm2, %v9307_v22  ;;  %8990 = vmatprep.mubr.msk.bf16.mxu1 %vm1800_vm2, %v9308_v23 }
  0xe9   : > { %8767 = vmatmul.mubr.msk.bf16.gmra.mrb[80].mxu0 %vm1800_vm2, %v9309_v24  ;;  %8991 = vmatmul.mubr.msk.bf16.gmra.mrb[80].mxu1 %vm1800_vm2, %v9310_v25 }
  0xea   : > { %8770 = vmatprep.mubr.msk.bf16.mxu0 %vm1800_vm2, %v9311_v26  ;;  %8994 = vmatprep.mubr.msk.bf16.mxu1 %vm1800_vm2, %v9312_v27 }
  0xf1   : > { %8771 = vmatmul.mubr.msk.bf16.gmra.mrb[84].mxu0 %vm1800_vm2, %v9313_v28  ;;  %8995 = vmatmul.mubr.msk.bf16.gmra.mrb[84].mxu1 %vm1800_vm2, %v9314_v29 }
  0xf2   : > { %8774 = vmatprep.mubr.msk.bf16.mxu0 %vm1800_vm2, %v9315_v30  ;;  %8998 = vmatprep.mubr.msk.bf16.mxu1 %vm1800_vm2, %v9316_v31  ;;  %v9341_v31 = vld [vmem:[%s9744_s21 + $0x1c8] sm:$0xff]  }
  0xf9   : > { %8775 = vmatmul.mubr.msk.bf16.gmra.mrb[88].mxu0 %vm1800_vm2, %v9317_v32  ;;  %8999 = vmatmul.mubr.msk.bf16.gmra.mrb[88].mxu1 %vm1800_vm2, %v9318_v33  ;;  %v9342_v32 = vld [vmem:[%s9744_s21 + $0x548] sm:$0xff]  }
  0xfa   : > { %8778 = vmatprep.mubr.msk.bf16.mxu0 %vm1800_vm2, %v9319_v34  ;;  %9002 = vmatprep.mubr.msk.bf16.mxu1 %vm1800_vm2, %v9320_v35 }
 0x101   : > { %8779 = vmatmul.mubr.msk.bf16.gmra.mrb[92].mxu0 %vm1800_vm2, %v9321_v36  ;;  %9003 = vmatmul.mubr.msk.bf16.gmra.mrb[92].mxu1 %vm1800_vm2, %v9322_v37  ;;  %v9343_v37 = vld [vmem:[%s9744_s21 + $0x1d0] sm:$0xff]  }
 0x102   : > { %8782 = vmatprep.mubr.msk.bf16.mxu0 %vm1800_vm2, %v9323_v38  ;;  %9006 = vmatprep.mubr.msk.bf16.mxu1 %vm1800_vm2, %v9324_v39  ;;  %v9344_v38 = vld [vmem:[%s9744_s21 + $0x550] sm:$0xff]  }
 0x109   : > { %8783 = vmatmul.mubr.msk.bf16.gmra.mrb[96].mxu0 %vm1800_vm2, %v9325_v40  ;;  %9007 = vmatmul.mubr.msk.bf16.gmra.mrb[96].mxu1 %vm1800_vm2, %v9326_v41 }
 0x10a   : > { %8786 = vmatprep.mubr.msk.bf16.mxu0 %vm1800_vm2, %v9327_v42  ;;  %9010 = vmatprep.mubr.msk.bf16.mxu1 %vm1800_vm2, %v9328_v43 }
 0x111   : > { %8787 = vmatmul.mubr.msk.bf16.gmra.mrb[100].mxu0 %vm1800_vm2, %v9329_v44  ;;  %9011 = vmatmul.mubr.msk.bf16.gmra.mrb[100].mxu1 %vm1800_vm2, %v9330_v45 }
 0x112   : > { %8790 = vmatprep.mubr.msk.bf16.mxu0 %vm1800_vm2, %v9331_v46  ;;  %9014 = vmatprep.mubr.msk.bf16.mxu1 %vm1800_vm2, %v9332_v47 }
 0x119   : > { %8791 = vmatmul.mubr.msk.bf16.gmra.mrb[104].mxu0 %vm1800_vm2, %v9333_v48  ;;  %9015 = vmatmul.mubr.msk.bf16.gmra.mrb[104].mxu1 %vm1800_vm2, %v9334_v49 }
 0x11a   : > { %8794 = vmatprep.mubr.msk.bf16.mxu0 %vm1800_vm2, %v9335_v50  ;;  %9018 = vmatprep.mubr.msk.bf16.mxu1 %vm1800_vm2, %v9336_v51 }
 0x11c   : > { %v8688_v53 = vpop.f32.mrb[0].mxu0  ;;  %v8912_v54 = vpop.f32.mrb[0].mxu1 }
 0x11d   : > { %v2523_v55 = vadd.f32 %v8688_v53, %v9977_v52  ;;  %v3419_v56 = vadd.f32 %v8912_v54, %v9977_v52  ;;  %v2514_v57 = vpop.f32.mrb[1].mxu0  ;;  %v3410_v58 = vpop.f32.mrb[1].mxu1 }
 0x11e   : > { %v2515_v61 = vadd.f32 %v9977_v52, %v2514_v57  ;;  %v3411_v62 = vadd.f32 %v9977_v52, %v3410_v58  ;;  %v8689_v63 = vpop.f32.mrb[2].mxu0  ;;  %v8913_v0 = vpop.f32.mrb[2].mxu1 }
 0x11f   : > { %v4307_v3 = vmax.f32 %v2523_v55, 0.0  ;;  %v4531_v4 = vmax.f32 %v3419_v56, 0.0  ;;  %v2526_v5 = vadd.f32 %v8689_v63, %v9977_v52  ;;  %v3422_v6 = vadd.f32 %v8913_v0, %v9977_v52  ;;  %v2517_v7 = vpop.f32.mrb[3].mxu0  ;;  %v3413_v8 = vpop.f32.mrb[3].mxu1 }
 0x120   : > { %v4305_v9 = vmax.f32 %v2515_v61, 0.0  ;;  %v4529_v10 = vmax.f32 %v3411_v62, 0.0  ;;  %v2518_v11 = vadd.f32 %v9977_v52, %v2517_v7  ;;  %v3414_v12 = vadd.f32 %v9977_v52, %v3413_v8 }
 0x121   : > { %v8010_v13 = vpack.c.bf16 %v4307_v3, %v4307_v3  ;;  %v8234_v14 = vpack.c.bf16 %v4531_v4, %v4531_v4  ;;  %v4308_v15 = vmax.f32 %v2526_v5, 0.0  ;;  %v4532_v16 = vmax.f32 %v3422_v6, 0.0  ;;  %8795 = vmatmul.mubr.msk.bf16.gmra.mrb[108].mxu0 %vm1800_vm2, %v9337_v59  ;;  %9019 = vmatmul.mubr.msk.bf16.gmra.mrb[108].mxu1 %vm1800_vm2, %v9338_v60  ;;  %v9345_v4 = vld [vmem:[%s9744_s21 + $0x1d8] sm:$0xff]  }
 0x122   : > { %v8008_v17 = vpack.c.bf16 %v4305_v9, %v4305_v9  ;;  %v8232_v18 = vpack.c.bf16 %v4529_v10, %v4529_v10  ;;  %v4306_v19 = vmax.f32 %v2518_v11, 0.0  ;;  %v4530_v20 = vmax.f32 %v3414_v12, 0.0  ;;  %8798 = vmatprep.mubr.msk.bf16.mxu0 %vm1800_vm2, %v9339_v1  ;;  %9022 = vmatprep.mubr.msk.bf16.mxu1 %vm1800_vm2, %v9340_v2  ;;  %v9346_v5 = vld [vmem:[%s9744_s21 + $0x558] sm:$0xff]   ;;  %v9347_v10 = vld [vmem:[%s9744_s21 + $0x1e0] sm:$0xff]  }
 0x123   : > { %6548 = vst.msk [vmem:[%s9999_s25 + $0x8] sm:$0xf] %vm6545_vm3, %v8010_v13  ;;  %6772 = vst.msk [vmem:[%s9999_s25 + $0x388] sm:$0xf] %vm6545_vm3, %v8234_v14  ;;  %v8011_v21 = vpack.c.bf16 %v4308_v15, %v4308_v15  ;;  %v8235_v22 = vpack.c.bf16 %v4532_v16, %v4532_v16  ;;  %v9348_v11 = vld [vmem:[%s9744_s21 + $0x560] sm:$0xff]  }
 0x124   : > { %6546 = vst.msk [vmem:[%s9999_s25] sm:$0xf] %vm6545_vm3, %v8008_v17  ;;  %6770 = vst.msk [vmem:[%s9999_s25 + $0x380] sm:$0xf] %vm6545_vm3, %v8232_v18  ;;  %v8009_v23 = vpack.c.bf16 %v4306_v19, %v4306_v19  ;;  %v8233_v24 = vpack.c.bf16 %v4530_v20, %v4530_v20  ;;  %v8692_v25 = vpop.f32.mrb[4].mxu0  ;;  %v8916_v26 = vpop.f32.mrb[4].mxu1 }
 0x125   : > { %6549 = vst.msk [vmem:[%s9999_s25 + $0xc] sm:$0xf] %vm6545_vm3, %v8011_v21  ;;  %6773 = vst.msk [vmem:[%s9999_s25 + $0x38c] sm:$0xf] %vm6545_vm3, %v8235_v22  ;;  %v2539_v27 = vadd.f32 %v8692_v25, %v9977_v52  ;;  %v3435_v28 = vadd.f32 %v8916_v26, %v9977_v52  ;;  %v2530_v29 = vpop.f32.mrb[5].mxu0  ;;  %v3426_v30 = vpop.f32.mrb[5].mxu1 }
 0x126   : > { %6547 = vst.msk [vmem:[%s9999_s25 + $0x4] sm:$0xf] %vm6545_vm3, %v8009_v23  ;;  %6771 = vst.msk [vmem:[%s9999_s25 + $0x384] sm:$0xf] %vm6545_vm3, %v8233_v24  ;;  %v2531_v33 = vadd.f32 %v9977_v52, %v2530_v29  ;;  %v3427_v34 = vadd.f32 %v9977_v52, %v3426_v30  ;;  %v8693_v35 = vpop.f32.mrb[6].mxu0  ;;  %v8917_v36 = vpop.f32.mrb[6].mxu1 }
 0x127   : > { %v4311_v39 = vmax.f32 %v2539_v27, 0.0  ;;  %v4535_v40 = vmax.f32 %v3435_v28, 0.0  ;;  %v2542_v41 = vadd.f32 %v8693_v35, %v9977_v52  ;;  %v3438_v42 = vadd.f32 %v8917_v36, %v9977_v52  ;;  %v2533_v43 = vpop.f32.mrb[7].mxu0  ;;  %v3429_v44 = vpop.f32.mrb[7].mxu1 }
 0x128   : > { %v4309_v45 = vmax.f32 %v2531_v33, 0.0  ;;  %v4533_v46 = vmax.f32 %v3427_v34, 0.0  ;;  %v2534_v47 = vadd.f32 %v9977_v52, %v2533_v43  ;;  %v3430_v48 = vadd.f32 %v9977_v52, %v3429_v44 }
 0x129   : > { %v8014_v49 = vpack.c.bf16 %v4311_v39, %v4311_v39  ;;  %v8238_v50 = vpack.c.bf16 %v4535_v40, %v4535_v40  ;;  %v4312_v51 = vmax.f32 %v2542_v41, 0.0  ;;  %v4536_v53 = vmax.f32 %v3438_v42, 0.0  ;;  %8799 = vmatmul.mubr.msk.bf16.gmra.mrb[112].mxu0 %vm1800_vm2, %v9341_v31  ;;  %9023 = vmatmul.mubr.msk.bf16.gmra.mrb[112].mxu1 %vm1800_vm2, %v9342_v32  ;;  %v9349_v40 = vld [vmem:[%s9744_s21 + $0x1e8] sm:$0xff]  }
 0x12a   : > { %v8012_v54 = vpack.c.bf16 %v4309_v45, %v4309_v45  ;;  %v8236_v55 = vpack.c.bf16 %v4533_v46, %v4533_v46  ;;  %v4310_v56 = vmax.f32 %v2534_v47, 0.0  ;;  %v4534_v57 = vmax.f32 %v3430_v48, 0.0  ;;  %8802 = vmatprep.mubr.msk.bf16.mxu0 %vm1800_vm2, %v9343_v37  ;;  %9026 = vmatprep.mubr.msk.bf16.mxu1 %vm1800_vm2, %v9344_v38  ;;  %v9350_v41 = vld [vmem:[%s9744_s21 + $0x568] sm:$0xff]   ;;  %v9351_v46 = vld [vmem:[%s9744_s21 + $0x1f0] sm:$0xff]  }
 0x12b   : > { %6552 = vst.msk [vmem:[%s9999_s25 + $0x18] sm:$0xf] %vm6545_vm3, %v8014_v49  ;;  %6776 = vst.msk [vmem:[%s9999_s25 + $0x398] sm:$0xf] %vm6545_vm3, %v8238_v50  ;;  %v8015_v58 = vpack.c.bf16 %v4312_v51, %v4312_v51  ;;  %v8239_v59 = vpack.c.bf16 %v4536_v53, %v4536_v53  ;;  %v9352_v47 = vld [vmem:[%s9744_s21 + $0x570] sm:$0xff]  }
 0x12c   : > { %6550 = vst.msk [vmem:[%s9999_s25 + $0x10] sm:$0xf] %vm6545_vm3, %v8012_v54  ;;  %6774 = vst.msk [vmem:[%s9999_s25 + $0x390] sm:$0xf] %vm6545_vm3, %v8236_v55  ;;  %v8013_v60 = vpack.c.bf16 %v4310_v56, %v4310_v56  ;;  %v8237_v61 = vpack.c.bf16 %v4534_v57, %v4534_v57  ;;  %v8696_v62 = vpop.f32.mrb[8].mxu0  ;;  %v8920_v63 = vpop.f32.mrb[8].mxu1 }
 0x12d   : > { %6553 = vst.msk [vmem:[%s9999_s25 + $0x1c] sm:$0xf] %vm6545_vm3, %v8015_v58  ;;  %6777 = vst.msk [vmem:[%s9999_s25 + $0x39c] sm:$0xf] %vm6545_vm3, %v8239_v59  ;;  %v2555_v0 = vadd.f32 %v8696_v62, %v9977_v52  ;;  %v3451_v1 = vadd.f32 %v8920_v63, %v9977_v52  ;;  %v2546_v2 = vpop.f32.mrb[9].mxu0  ;;  %v3442_v3 = vpop.f32.mrb[9].mxu1 }
 0x12e   : > { %6551 = vst.msk [vmem:[%s9999_s25 + $0x14] sm:$0xf] %vm6545_vm3, %v8013_v60  ;;  %6775 = vst.msk [vmem:[%s9999_s25 + $0x394] sm:$0xf] %vm6545_vm3, %v8237_v61  ;;  %v2547_v6 = vadd.f32 %v9977_v52, %v2546_v2  ;;  %v3443_v7 = vadd.f32 %v9977_v52, %v3442_v3  ;;  %v8697_v8 = vpop.f32.mrb[10].mxu0  ;;  %v8921_v9 = vpop.f32.mrb[10].mxu1 }
 0x12f   : > { %v4315_v12 = vmax.f32 %v2555_v0, 0.0  ;;  %v4539_v13 = vmax.f32 %v3451_v1, 0.0  ;;  %v2558_v14 = vadd.f32 %v8697_v8, %v9977_v52  ;;  %v3454_v15 = vadd.f32 %v8921_v9, %v9977_v52  ;;  %v2549_v16 = vpop.f32.mrb[11].mxu0  ;;  %v3445_v17 = vpop.f32.mrb[11].mxu1 }
 0x130   : > { %v4313_v18 = vmax.f32 %v2547_v6, 0.0  ;;  %v4537_v19 = vmax.f32 %v3443_v7, 0.0  ;;  %v2550_v20 = vadd.f32 %v9977_v52, %v2549_v16  ;;  %v3446_v21 = vadd.f32 %v9977_v52, %v3445_v17 }
 0x131   : > { %v8018_v22 = vpack.c.bf16 %v4315_v12, %v4315_v12  ;;  %v8242_v23 = vpack.c.bf16 %v4539_v13, %v4539_v13  ;;  %v4316_v24 = vmax.f32 %v2558_v14, 0.0  ;;  %v4540_v25 = vmax.f32 %v3454_v15, 0.0  ;;  %8803 = vmatmul.mubr.msk.bf16.gmra.mrb[116].mxu0 %vm1800_vm2, %v9345_v4  ;;  %9027 = vmatmul.mubr.msk.bf16.gmra.mrb[116].mxu1 %vm1800_vm2, %v9346_v5  ;;  %v9353_v13 = vld [vmem:[%s9744_s21 + $0x1f8] sm:$0xff]  }
 0x132   : > { %v8016_v26 = vpack.c.bf16 %v4313_v18, %v4313_v18  ;;  %v8240_v27 = vpack.c.bf16 %v4537_v19, %v4537_v19  ;;  %v4314_v28 = vmax.f32 %v2550_v20, 0.0  ;;  %v4538_v29 = vmax.f32 %v3446_v21, 0.0  ;;  %8806 = vmatprep.mubr.msk.bf16.mxu0 %vm1800_vm2, %v9347_v10  ;;  %9030 = vmatprep.mubr.msk.bf16.mxu1 %vm1800_vm2, %v9348_v11  ;;  %v9354_v14 = vld [vmem:[%s9744_s21 + $0x578] sm:$0xff]   ;;  %v9355_v19 = vld [vmem:[%s9744_s21 + $0x200] sm:$0xff]  }
 0x133   : > { %6556 = vst.msk [vmem:[%s9999_s25 + $0x28] sm:$0xf] %vm6545_vm3, %v8018_v22  ;;  %6780 = vst.msk [vmem:[%s9999_s25 + $0x3a8] sm:$0xf] %vm6545_vm3, %v8242_v23  ;;  %v8019_v30 = vpack.c.bf16 %v4316_v24, %v4316_v24  ;;  %v8243_v31 = vpack.c.bf16 %v4540_v25, %v4540_v25  ;;  %v9356_v20 = vld [vmem:[%s9744_s21 + $0x580] sm:$0xff]  }
 0x134   : > { %6554 = vst.msk [vmem:[%s9999_s25 + $0x20] sm:$0xf] %vm6545_vm3, %v8016_v26  ;;  %6778 = vst.msk [vmem:[%s9999_s25 + $0x3a0] sm:$0xf] %vm6545_vm3, %v8240_v27  ;;  %v8017_v32 = vpack.c.bf16 %v4314_v28, %v4314_v28  ;;  %v8241_v33 = vpack.c.bf16 %v4538_v29, %v4538_v29  ;;  %v8700_v34 = vpop.f32.mrb[12].mxu0  ;;  %v8924_v35 = vpop.f32.mrb[12].mxu1 }
 0x135   : > { %6557 = vst.msk [vmem:[%s9999_s25 + $0x2c] sm:$0xf] %vm6545_vm3, %v8019_v30  ;;  %6781 = vst.msk [vmem:[%s9999_s25 + $0x3ac] sm:$0xf] %vm6545_vm3, %v8243_v31  ;;  %v2571_v36 = vadd.f32 %v8700_v34, %v9977_v52  ;;  %v3467_v37 = vadd.f32 %v8924_v35, %v9977_v52  ;;  %v2562_v38 = vpop.f32.mrb[13].mxu0  ;;  %v3458_v39 = vpop.f32.mrb[13].mxu1 }
 0x136   : > { %6555 = vst.msk [vmem:[%s9999_s25 + $0x24] sm:$0xf] %vm6545_vm3, %v8017_v32  ;;  %6779 = vst.msk [vmem:[%s9999_s25 + $0x3a4] sm:$0xf] %vm6545_vm3, %v8241_v33  ;;  %v2563_v42 = vadd.f32 %v9977_v52, %v2562_v38  ;;  %v3459_v43 = vadd.f32 %v9977_v52, %v3458_v39  ;;  %v8701_v44 = vpop.f32.mrb[14].mxu0  ;;  %v8925_v45 = vpop.f32.mrb[14].mxu1 }
 0x137   : > { %v4319_v48 = vmax.f32 %v2571_v36, 0.0  ;;  %v4543_v49 = vmax.f32 %v3467_v37, 0.0  ;;  %v2574_v50 = vadd.f32 %v8701_v44, %v9977_v52  ;;  %v3470_v51 = vadd.f32 %v8925_v45, %v9977_v52  ;;  %v2565_v53 = vpop.f32.mrb[15].mxu0  ;;  %v3461_v54 = vpop.f32.mrb[15].mxu1 }
 0x138   : > { %v4317_v55 = vmax.f32 %v2563_v42, 0.0  ;;  %v4541_v56 = vmax.f32 %v3459_v43, 0.0  ;;  %v2566_v57 = vadd.f32 %v9977_v52, %v2565_v53  ;;  %v3462_v58 = vadd.f32 %v9977_v52, %v3461_v54 }
 0x139   : > { %v8022_v59 = vpack.c.bf16 %v4319_v48, %v4319_v48  ;;  %v8246_v60 = vpack.c.bf16 %v4543_v49, %v4543_v49  ;;  %v4320_v61 = vmax.f32 %v2574_v50, 0.0  ;;  %v4544_v62 = vmax.f32 %v3470_v51, 0.0  ;;  %8807 = vmatmul.mubr.msk.bf16.gmra.mrb[120].mxu0 %vm1800_vm2, %v9349_v40  ;;  %9031 = vmatmul.mubr.msk.bf16.gmra.mrb[120].mxu1 %vm1800_vm2, %v9350_v41  ;;  %v9357_v49 = vld [vmem:[%s9744_s21 + $0x208] sm:$0xff]  }
 0x13a   : > { %v8020_v63 = vpack.c.bf16 %v4317_v55, %v4317_v55  ;;  %v8244_v0 = vpack.c.bf16 %v4541_v56, %v4541_v56  ;;  %v4318_v1 = vmax.f32 %v2566_v57, 0.0  ;;  %v4542_v2 = vmax.f32 %v3462_v58, 0.0  ;;  %8810 = vmatprep.mubr.msk.bf16.mxu0 %vm1800_vm2, %v9351_v46  ;;  %9034 = vmatprep.mubr.msk.bf16.mxu1 %vm1800_vm2, %v9352_v47  ;;  %v9358_v50 = vld [vmem:[%s9744_s21 + $0x588] sm:$0xff]   ;;  %v9359_v56 = vld [vmem:[%s9744_s21 + $0x210] sm:$0xff]  }
 0x13b   : > { %6560 = vst.msk [vmem:[%s9999_s25 + $0x38] sm:$0xf] %vm6545_vm3, %v8022_v59  ;;  %6784 = vst.msk [vmem:[%s9999_s25 + $0x3b8] sm:$0xf] %vm6545_vm3, %v8246_v60  ;;  %v8023_v3 = vpack.c.bf16 %v4320_v61, %v4320_v61  ;;  %v8247_v4 = vpack.c.bf16 %v4544_v62, %v4544_v62  ;;  %v9360_v57 = vld [vmem:[%s9744_s21 + $0x590] sm:$0xff]  }
 0x13c   : > { %6558 = vst.msk [vmem:[%s9999_s25 + $0x30] sm:$0xf] %vm6545_vm3, %v8020_v63  ;;  %6782 = vst.msk [vmem:[%s9999_s25 + $0x3b0] sm:$0xf] %vm6545_vm3, %v8244_v0  ;;  %v8021_v5 = vpack.c.bf16 %v4318_v1, %v4318_v1  ;;  %v8245_v6 = vpack.c.bf16 %v4542_v2, %v4542_v2  ;;  %v8704_v7 = vpop.f32.mrb[16].mxu0  ;;  %v8928_v8 = vpop.f32.mrb[16].mxu1 }
 0x13d   : > { %6561 = vst.msk [vmem:[%s9999_s25 + $0x3c] sm:$0xf] %vm6545_vm3, %v8023_v3  ;;  %6785 = vst.msk [vmem:[%s9999_s25 + $0x3bc] sm:$0xf] %vm6545_vm3, %v8247_v4  ;;  %v2587_v9 = vadd.f32 %v8704_v7, %v9977_v52  ;;  %v3483_v10 = vadd.f32 %v8928_v8, %v9977_v52  ;;  %v2578_v11 = vpop.f32.mrb[17].mxu0  ;;  %v3474_v12 = vpop.f32.mrb[17].mxu1 }
 0x13e   : > { %6559 = vst.msk [vmem:[%s9999_s25 + $0x34] sm:$0xf] %vm6545_vm3, %v8021_v5  ;;  %6783 = vst.msk [vmem:[%s9999_s25 + $0x3b4] sm:$0xf] %vm6545_vm3, %v8245_v6  ;;  %v2579_v15 = vadd.f32 %v9977_v52, %v2578_v11  ;;  %v3475_v16 = vadd.f32 %v9977_v52, %v3474_v12  ;;  %v8705_v17 = vpop.f32.mrb[18].mxu0  ;;  %v8929_v18 = vpop.f32.mrb[18].mxu1 }
 0x13f   : > { %v4323_v21 = vmax.f32 %v2587_v9, 0.0  ;;  %v4547_v22 = vmax.f32 %v3483_v10, 0.0  ;;  %v2590_v23 = vadd.f32 %v8705_v17, %v9977_v52  ;;  %v3486_v24 = vadd.f32 %v8929_v18, %v9977_v52  ;;  %v2581_v25 = vpop.f32.mrb[19].mxu0  ;;  %v3477_v26 = vpop.f32.mrb[19].mxu1 }
 0x140   : > { %v4321_v27 = vmax.f32 %v2579_v15, 0.0  ;;  %v4545_v28 = vmax.f32 %v3475_v16, 0.0  ;;  %v2582_v29 = vadd.f32 %v9977_v52, %v2581_v25  ;;  %v3478_v30 = vadd.f32 %v9977_v52, %v3477_v26 }
 0x141   : > { %v8026_v31 = vpack.c.bf16 %v4323_v21, %v4323_v21  ;;  %v8250_v32 = vpack.c.bf16 %v4547_v22, %v4547_v22  ;;  %v4324_v33 = vmax.f32 %v2590_v23, 0.0  ;;  %v4548_v34 = vmax.f32 %v3486_v24, 0.0  ;;  %8811 = vmatmul.mubr.msk.bf16.gmra.mrb[124].mxu0 %vm1800_vm2, %v9353_v13  ;;  %9035 = vmatmul.mubr.msk.bf16.gmra.mrb[124].mxu1 %vm1800_vm2, %v9354_v14  ;;  %v9361_v22 = vld [vmem:[%s9744_s21 + $0x218] sm:$0xff]  }
 0x142   : > { %v8024_v35 = vpack.c.bf16 %v4321_v27, %v4321_v27  ;;  %v8248_v36 = vpack.c.bf16 %v4545_v28, %v4545_v28  ;;  %v4322_v37 = vmax.f32 %v2582_v29, 0.0  ;;  %v4546_v38 = vmax.f32 %v3478_v30, 0.0  ;;  %8814 = vmatprep.mubr.msk.bf16.mxu0 %vm1800_vm2, %v9355_v19  ;;  %9038 = vmatprep.mubr.msk.bf16.mxu1 %vm1800_vm2, %v9356_v20  ;;  %v9362_v23 = vld [vmem:[%s9744_s21 + $0x598] sm:$0xff]   ;;  %v9363_v28 = vld [vmem:[%s9744_s21 + $0x220] sm:$0xff]  }
 0x143   : > { %6564 = vst.msk [vmem:[%s9999_s25 + $0x48] sm:$0xf] %vm6545_vm3, %v8026_v31  ;;  %6788 = vst.msk [vmem:[%s9999_s25 + $0x3c8] sm:$0xf] %vm6545_vm3, %v8250_v32  ;;  %v8027_v39 = vpack.c.bf16 %v4324_v33, %v4324_v33  ;;  %v8251_v40 = vpack.c.bf16 %v4548_v34, %v4548_v34  ;;  %v9364_v29 = vld [vmem:[%s9744_s21 + $0x5a0] sm:$0xff]  }
 0x144   : > { %6562 = vst.msk [vmem:[%s9999_s25 + $0x40] sm:$0xf] %vm6545_vm3, %v8024_v35  ;;  %6786 = vst.msk [vmem:[%s9999_s25 + $0x3c0] sm:$0xf] %vm6545_vm3, %v8248_v36  ;;  %v8025_v41 = vpack.c.bf16 %v4322_v37, %v4322_v37  ;;  %v8249_v42 = vpack.c.bf16 %v4546_v38, %v4546_v38  ;;  %v8708_v43 = vpop.f32.mrb[20].mxu0  ;;  %v8932_v44 = vpop.f32.mrb[20].mxu1 }
 0x145   : > { %6565 = vst.msk [vmem:[%s9999_s25 + $0x4c] sm:$0xf] %vm6545_vm3, %v8027_v39  ;;  %6789 = vst.msk [vmem:[%s9999_s25 + $0x3cc] sm:$0xf] %vm6545_vm3, %v8251_v40  ;;  %v2603_v45 = vadd.f32 %v8708_v43, %v9977_v52  ;;  %v3499_v46 = vadd.f32 %v8932_v44, %v9977_v52  ;;  %v2594_v47 = vpop.f32.mrb[21].mxu0  ;;  %v3490_v48 = vpop.f32.mrb[21].mxu1 }
 0x146   : > { %6563 = vst.msk [vmem:[%s9999_s25 + $0x44] sm:$0xf] %vm6545_vm3, %v8025_v41  ;;  %6787 = vst.msk [vmem:[%s9999_s25 + $0x3c4] sm:$0xf] %vm6545_vm3, %v8249_v42  ;;  %v2595_v51 = vadd.f32 %v9977_v52, %v2594_v47  ;;  %v3491_v53 = vadd.f32 %v9977_v52, %v3490_v48  ;;  %v8709_v54 = vpop.f32.mrb[22].mxu0  ;;  %v8933_v55 = vpop.f32.mrb[22].mxu1 }
 0x147   : > { %v4327_v58 = vmax.f32 %v2603_v45, 0.0  ;;  %v4551_v59 = vmax.f32 %v3499_v46, 0.0  ;;  %v2606_v60 = vadd.f32 %v8709_v54, %v9977_v52  ;;  %v3502_v61 = vadd.f32 %v8933_v55, %v9977_v52  ;;  %v2597_v62 = vpop.f32.mrb[23].mxu0  ;;  %v3493_v63 = vpop.f32.mrb[23].mxu1 }
 0x148   : > { %v4325_v0 = vmax.f32 %v2595_v51, 0.0  ;;  %v4549_v1 = vmax.f32 %v3491_v53, 0.0  ;;  %v2598_v2 = vadd.f32 %v9977_v52, %v2597_v62  ;;  %v3494_v3 = vadd.f32 %v9977_v52, %v3493_v63 }
 0x149   : > { %v8030_v4 = vpack.c.bf16 %v4327_v58, %v4327_v58  ;;  %v8254_v5 = vpack.c.bf16 %v4551_v59, %v4551_v59  ;;  %v4328_v6 = vmax.f32 %v2606_v60, 0.0  ;;  %v4552_v7 = vmax.f32 %v3502_v61, 0.0  ;;  %8815 = vmatmul.mubr.msk.bf16.gmra.mrb[128].mxu0 %vm1800_vm2, %v9357_v49  ;;  %9039 = vmatmul.mubr.msk.bf16.gmra.mrb[128].mxu1 %vm1800_vm2, %v9358_v50  ;;  %v9365_v59 = vld [vmem:[%s9744_s21 + $0x228] sm:$0xff]  }
 0x14a   : > { %v8028_v8 = vpack.c.bf16 %v4325_v0, %v4325_v0  ;;  %v8252_v9 = vpack.c.bf16 %v4549_v1, %v4549_v1  ;;  %v4326_v10 = vmax.f32 %v2598_v2, 0.0  ;;  %v4550_v11 = vmax.f32 %v3494_v3, 0.0  ;;  %8818 = vmatprep.mubr.msk.bf16.mxu0 %vm1800_vm2, %v9359_v56  ;;  %9042 = vmatprep.mubr.msk.bf16.mxu1 %vm1800_vm2, %v9360_v57  ;;  %v9366_v60 = vld [vmem:[%s9744_s21 + $0x5a8] sm:$0xff]   ;;  %v9367_v1 = vld [vmem:[%s9744_s21 + $0x230] sm:$0xff]  }
 0x14b   : > { %6568 = vst.msk [vmem:[%s9999_s25 + $0x58] sm:$0xf] %vm6545_vm3, %v8030_v4  ;;  %6792 = vst.msk [vmem:[%s9999_s25 + $0x3d8] sm:$0xf] %vm6545_vm3, %v8254_v5  ;;  %v8031_v12 = vpack.c.bf16 %v4328_v6, %v4328_v6  ;;  %v8255_v13 = vpack.c.bf16 %v4552_v7, %v4552_v7  ;;  %v9368_v2 = vld [vmem:[%s9744_s21 + $0x5b0] sm:$0xff]  }
 0x14c   : > { %6566 = vst.msk [vmem:[%s9999_s25 + $0x50] sm:$0xf] %vm6545_vm3, %v8028_v8  ;;  %6790 = vst.msk [vmem:[%s9999_s25 + $0x3d0] sm:$0xf] %vm6545_vm3, %v8252_v9  ;;  %v8029_v14 = vpack.c.bf16 %v4326_v10, %v4326_v10  ;;  %v8253_v15 = vpack.c.bf16 %v4550_v11, %v4550_v11  ;;  %v8712_v16 = vpop.f32.mrb[24].mxu0  ;;  %v8936_v17 = vpop.f32.mrb[24].mxu1 }
 0x14d   : > { %6569 = vst.msk [vmem:[%s9999_s25 + $0x5c] sm:$0xf] %vm6545_vm3, %v8031_v12  ;;  %6793 = vst.msk [vmem:[%s9999_s25 + $0x3dc] sm:$0xf] %vm6545_vm3, %v8255_v13  ;;  %v2619_v18 = vadd.f32 %v8712_v16, %v9977_v52  ;;  %v3515_v19 = vadd.f32 %v8936_v17, %v9977_v52  ;;  %v2610_v20 = vpop.f32.mrb[25].mxu0  ;;  %v3506_v21 = vpop.f32.mrb[25].mxu1 }
 0x14e   : > { %6567 = vst.msk [vmem:[%s9999_s25 + $0x54] sm:$0xf] %vm6545_vm3, %v8029_v14  ;;  %6791 = vst.msk [vmem:[%s9999_s25 + $0x3d4] sm:$0xf] %vm6545_vm3, %v8253_v15  ;;  %v2611_v24 = vadd.f32 %v9977_v52, %v2610_v20  ;;  %v3507_v25 = vadd.f32 %v9977_v52, %v3506_v21  ;;  %v8713_v26 = vpop.f32.mrb[26].mxu0  ;;  %v8937_v27 = vpop.f32.mrb[26].mxu1 }
 0x14f   : > { %v4331_v30 = vmax.f32 %v2619_v18, 0.0  ;;  %v4555_v31 = vmax.f32 %v3515_v19, 0.0  ;;  %v2622_v32 = vadd.f32 %v8713_v26, %v9977_v52  ;;  %v3518_v33 = vadd.f32 %v8937_v27, %v9977_v52  ;;  %v2613_v34 = vpop.f32.mrb[27].mxu0  ;;  %v3509_v35 = vpop.f32.mrb[27].mxu1 }
 0x150   : > { %v4329_v36 = vmax.f32 %v2611_v24, 0.0  ;;  %v4553_v37 = vmax.f32 %v3507_v25, 0.0  ;;  %v2614_v38 = vadd.f32 %v9977_v52, %v2613_v34  ;;  %v3510_v39 = vadd.f32 %v9977_v52, %v3509_v35 }
 0x151   : > { %v8034_v40 = vpack.c.bf16 %v4331_v30, %v4331_v30  ;;  %v8258_v41 = vpack.c.bf16 %v4555_v31, %v4555_v31  ;;  %v4332_v42 = vmax.f32 %v2622_v32, 0.0  ;;  %v4556_v43 = vmax.f32 %v3518_v33, 0.0  ;;  %8819 = vmatmul.mubr.msk.bf16.gmra.mrb[132].mxu0 %vm1800_vm2, %v9361_v22  ;;  %9043 = vmatmul.mubr.msk.bf16.gmra.mrb[132].mxu1 %vm1800_vm2, %v9362_v23  ;;  %v9369_v31 = vld [vmem:[%s9744_s21 + $0x238] sm:$0xff]  }
 0x152   : > { %v8032_v44 = vpack.c.bf16 %v4329_v36, %v4329_v36  ;;  %v8256_v45 = vpack.c.bf16 %v4553_v37, %v4553_v37  ;;  %v4330_v46 = vmax.f32 %v2614_v38, 0.0  ;;  %v4554_v47 = vmax.f32 %v3510_v39, 0.0  ;;  %8822 = vmatprep.mubr.msk.bf16.mxu0 %vm1800_vm2, %v9363_v28  ;;  %9046 = vmatprep.mubr.msk.bf16.mxu1 %vm1800_vm2, %v9364_v29  ;;  %v9370_v32 = vld [vmem:[%s9744_s21 + $0x5b8] sm:$0xff]   ;;  %v9371_v37 = vld [vmem:[%s9744_s21 + $0x240] sm:$0xff]  }
 0x153   : > { %6572 = vst.msk [vmem:[%s9999_s25 + $0x68] sm:$0xf] %vm6545_vm3, %v8034_v40  ;;  %6796 = vst.msk [vmem:[%s9999_s25 + $0x3e8] sm:$0xf] %vm6545_vm3, %v8258_v41  ;;  %v8035_v48 = vpack.c.bf16 %v4332_v42, %v4332_v42  ;;  %v8259_v49 = vpack.c.bf16 %v4556_v43, %v4556_v43  ;;  %v9372_v38 = vld [vmem:[%s9744_s21 + $0x5c0] sm:$0xff]  }
 0x154   : > { %6570 = vst.msk [vmem:[%s9999_s25 + $0x60] sm:$0xf] %vm6545_vm3, %v8032_v44  ;;  %6794 = vst.msk [vmem:[%s9999_s25 + $0x3e0] sm:$0xf] %vm6545_vm3, %v8256_v45  ;;  %v8033_v50 = vpack.c.bf16 %v4330_v46, %v4330_v46  ;;  %v8257_v51 = vpack.c.bf16 %v4554_v47, %v4554_v47  ;;  %v8716_v53 = vpop.f32.mrb[28].mxu0  ;;  %v8940_v54 = vpop.f32.mrb[28].mxu1 }
 0x155   : > { %6573 = vst.msk [vmem:[%s9999_s25 + $0x6c] sm:$0xf] %vm6545_vm3, %v8035_v48  ;;  %6797 = vst.msk [vmem:[%s9999_s25 + $0x3ec] sm:$0xf] %vm6545_vm3, %v8259_v49  ;;  %v2635_v55 = vadd.f32 %v8716_v53, %v9977_v52  ;;  %v3531_v56 = vadd.f32 %v8940_v54, %v9977_v52  ;;  %v2626_v57 = vpop.f32.mrb[29].mxu0  ;;  %v3522_v58 = vpop.f32.mrb[29].mxu1 }
 0x156   : > { %6571 = vst.msk [vmem:[%s9999_s25 + $0x64] sm:$0xf] %vm6545_vm3, %v8033_v50  ;;  %6795 = vst.msk [vmem:[%s9999_s25 + $0x3e4] sm:$0xf] %vm6545_vm3, %v8257_v51  ;;  %v2627_v61 = vadd.f32 %v9977_v52, %v2626_v57  ;;  %v3523_v62 = vadd.f32 %v9977_v52, %v3522_v58  ;;  %v8717_v63 = vpop.f32.mrb[30].mxu0  ;;  %v8941_v0 = vpop.f32.mrb[30].mxu1 }
 0x157   : > { %v4335_v3 = vmax.f32 %v2635_v55, 0.0  ;;  %v4559_v4 = vmax.f32 %v3531_v56, 0.0  ;;  %v2638_v5 = vadd.f32 %v8717_v63, %v9977_v52  ;;  %v3534_v6 = vadd.f32 %v8941_v0, %v9977_v52  ;;  %v2629_v7 = vpop.f32.mrb[31].mxu0  ;;  %v3525_v8 = vpop.f32.mrb[31].mxu1 }
 0x158   : > { %v4333_v9 = vmax.f32 %v2627_v61, 0.0  ;;  %v4557_v10 = vmax.f32 %v3523_v62, 0.0  ;;  %v2630_v11 = vadd.f32 %v9977_v52, %v2629_v7  ;;  %v3526_v12 = vadd.f32 %v9977_v52, %v3525_v8 }
 0x159   : > { %v8038_v13 = vpack.c.bf16 %v4335_v3, %v4335_v3  ;;  %v8262_v14 = vpack.c.bf16 %v4559_v4, %v4559_v4  ;;  %v4336_v15 = vmax.f32 %v2638_v5, 0.0  ;;  %v4560_v16 = vmax.f32 %v3534_v6, 0.0  ;;  %8823 = vmatmul.mubr.msk.bf16.gmra.mrb[136].mxu0 %vm1800_vm2, %v9365_v59  ;;  %9047 = vmatmul.mubr.msk.bf16.gmra.mrb[136].mxu1 %vm1800_vm2, %v9366_v60  ;;  %v9373_v4 = vld [vmem:[%s9744_s21 + $0x248] sm:$0xff]  }
 0x15a   : > { %v8036_v17 = vpack.c.bf16 %v4333_v9, %v4333_v9  ;;  %v8260_v18 = vpack.c.bf16 %v4557_v10, %v4557_v10  ;;  %v4334_v19 = vmax.f32 %v2630_v11, 0.0  ;;  %v4558_v20 = vmax.f32 %v3526_v12, 0.0  ;;  %8826 = vmatprep.mubr.msk.bf16.mxu0 %vm1800_vm2, %v9367_v1  ;;  %9050 = vmatprep.mubr.msk.bf16.mxu1 %vm1800_vm2, %v9368_v2  ;;  %v9374_v5 = vld [vmem:[%s9744_s21 + $0x5c8] sm:$0xff]   ;;  %v9375_v10 = vld [vmem:[%s9744_s21 + $0x250] sm:$0xff]  }
 0x15b   : > { %6576 = vst.msk [vmem:[%s9999_s25 + $0x78] sm:$0xf] %vm6545_vm3, %v8038_v13  ;;  %6800 = vst.msk [vmem:[%s9999_s25 + $0x3f8] sm:$0xf] %vm6545_vm3, %v8262_v14  ;;  %v8039_v21 = vpack.c.bf16 %v4336_v15, %v4336_v15  ;;  %v8263_v22 = vpack.c.bf16 %v4560_v16, %v4560_v16  ;;  %v9376_v11 = vld [vmem:[%s9744_s21 + $0x5d0] sm:$0xff]  }
 0x15c   : > { %6574 = vst.msk [vmem:[%s9999_s25 + $0x70] sm:$0xf] %vm6545_vm3, %v8036_v17  ;;  %6798 = vst.msk [vmem:[%s9999_s25 + $0x3f0] sm:$0xf] %vm6545_vm3, %v8260_v18  ;;  %v8037_v23 = vpack.c.bf16 %v4334_v19, %v4334_v19  ;;  %v8261_v24 = vpack.c.bf16 %v4558_v20, %v4558_v20  ;;  %v8720_v25 = vpop.f32.mrb[32].mxu0  ;;  %v8944_v26 = vpop.f32.mrb[32].mxu1 }
 0x15d   : > { %6577 = vst.msk [vmem:[%s9999_s25 + $0x7c] sm:$0xf] %vm6545_vm3, %v8039_v21  ;;  %6801 = vst.msk [vmem:[%s9999_s25 + $0x3fc] sm:$0xf] %vm6545_vm3, %v8263_v22  ;;  %v2651_v27 = vadd.f32 %v8720_v25, %v9977_v52  ;;  %v3547_v28 = vadd.f32 %v8944_v26, %v9977_v52  ;;  %v2642_v29 = vpop.f32.mrb[33].mxu0  ;;  %v3538_v30 = vpop.f32.mrb[33].mxu1 }
 0x15e   : > { %6575 = vst.msk [vmem:[%s9999_s25 + $0x74] sm:$0xf] %vm6545_vm3, %v8037_v23  ;;  %6799 = vst.msk [vmem:[%s9999_s25 + $0x3f4] sm:$0xf] %vm6545_vm3, %v8261_v24  ;;  %v2643_v33 = vadd.f32 %v9977_v52, %v2642_v29  ;;  %v3539_v34 = vadd.f32 %v9977_v52, %v3538_v30  ;;  %v8721_v35 = vpop.f32.mrb[34].mxu0  ;;  %v8945_v36 = vpop.f32.mrb[34].mxu1 }
 0x15f   : > { %v4339_v39 = vmax.f32 %v2651_v27, 0.0  ;;  %v4563_v40 = vmax.f32 %v3547_v28, 0.0  ;;  %v2654_v41 = vadd.f32 %v8721_v35, %v9977_v52  ;;  %v3550_v42 = vadd.f32 %v8945_v36, %v9977_v52  ;;  %v2645_v43 = vpop.f32.mrb[35].mxu0  ;;  %v3541_v44 = vpop.f32.mrb[35].mxu1 }
 0x160   : > { %v4337_v45 = vmax.f32 %v2643_v33, 0.0  ;;  %v4561_v46 = vmax.f32 %v3539_v34, 0.0  ;;  %v2646_v47 = vadd.f32 %v9977_v52, %v2645_v43  ;;  %v3542_v48 = vadd.f32 %v9977_v52, %v3541_v44 }
 0x161   : > { %v8042_v49 = vpack.c.bf16 %v4339_v39, %v4339_v39  ;;  %v8266_v50 = vpack.c.bf16 %v4563_v40, %v4563_v40  ;;  %v4340_v51 = vmax.f32 %v2654_v41, 0.0  ;;  %v4564_v53 = vmax.f32 %v3550_v42, 0.0  ;;  %8827 = vmatmul.mubr.msk.bf16.gmra.mrb[140].mxu0 %vm1800_vm2, %v9369_v31  ;;  %9051 = vmatmul.mubr.msk.bf16.gmra.mrb[140].mxu1 %vm1800_vm2, %v9370_v32  ;;  %v9377_v40 = vld [vmem:[%s9744_s21 + $0x258] sm:$0xff]  }
 0x162   : > { %v8040_v54 = vpack.c.bf16 %v4337_v45, %v4337_v45  ;;  %v8264_v55 = vpack.c.bf16 %v4561_v46, %v4561_v46  ;;  %v4338_v56 = vmax.f32 %v2646_v47, 0.0  ;;  %v4562_v57 = vmax.f32 %v3542_v48, 0.0  ;;  %8830 = vmatprep.mubr.msk.bf16.mxu0 %vm1800_vm2, %v9371_v37  ;;  %9054 = vmatprep.mubr.msk.bf16.mxu1 %vm1800_vm2, %v9372_v38  ;;  %v9378_v41 = vld [vmem:[%s9744_s21 + $0x5d8] sm:$0xff]   ;;  %v9379_v46 = vld [vmem:[%s9744_s21 + $0x260] sm:$0xff]  }
 0x163   : > { %6580 = vst.msk [vmem:[%s9999_s25 + $0x88] sm:$0xf] %vm6545_vm3, %v8042_v49  ;;  %6804 = vst.msk [vmem:[%s9999_s25 + $0x408] sm:$0xf] %vm6545_vm3, %v8266_v50  ;;  %v8043_v58 = vpack.c.bf16 %v4340_v51, %v4340_v51  ;;  %v8267_v59 = vpack.c.bf16 %v4564_v53, %v4564_v53  ;;  %v9380_v47 = vld [vmem:[%s9744_s21 + $0x5e0] sm:$0xff]  }
 0x164   : > { %6578 = vst.msk [vmem:[%s9999_s25 + $0x80] sm:$0xf] %vm6545_vm3, %v8040_v54  ;;  %6802 = vst.msk [vmem:[%s9999_s25 + $0x400] sm:$0xf] %vm6545_vm3, %v8264_v55  ;;  %v8041_v60 = vpack.c.bf16 %v4338_v56, %v4338_v56  ;;  %v8265_v61 = vpack.c.bf16 %v4562_v57, %v4562_v57  ;;  %v8724_v62 = vpop.f32.mrb[36].mxu0  ;;  %v8948_v63 = vpop.f32.mrb[36].mxu1 }
 0x165   : > { %6581 = vst.msk [vmem:[%s9999_s25 + $0x8c] sm:$0xf] %vm6545_vm3, %v8043_v58  ;;  %6805 = vst.msk [vmem:[%s9999_s25 + $0x40c] sm:$0xf] %vm6545_vm3, %v8267_v59  ;;  %v2667_v0 = vadd.f32 %v8724_v62, %v9977_v52  ;;  %v3563_v1 = vadd.f32 %v8948_v63, %v9977_v52  ;;  %v2658_v2 = vpop.f32.mrb[37].mxu0  ;;  %v3554_v3 = vpop.f32.mrb[37].mxu1 }
 0x166   : > { %6579 = vst.msk [vmem:[%s9999_s25 + $0x84] sm:$0xf] %vm6545_vm3, %v8041_v60  ;;  %6803 = vst.msk [vmem:[%s9999_s25 + $0x404] sm:$0xf] %vm6545_vm3, %v8265_v61  ;;  %v2659_v6 = vadd.f32 %v9977_v52, %v2658_v2  ;;  %v3555_v7 = vadd.f32 %v9977_v52, %v3554_v3  ;;  %v8725_v8 = vpop.f32.mrb[38].mxu0  ;;  %v8949_v9 = vpop.f32.mrb[38].mxu1 }
 0x167   : > { %v4343_v12 = vmax.f32 %v2667_v0, 0.0  ;;  %v4567_v13 = vmax.f32 %v3563_v1, 0.0  ;;  %v2670_v14 = vadd.f32 %v8725_v8, %v9977_v52  ;;  %v3566_v15 = vadd.f32 %v8949_v9, %v9977_v52  ;;  %v2661_v16 = vpop.f32.mrb[39].mxu0  ;;  %v3557_v17 = vpop.f32.mrb[39].mxu1  ;;  %v10336_v8 = vld [vmem:[%s11644_s2] ss:$0 sm:$0xff] }
 0x168   : > { %v4341_v18 = vmax.f32 %v2659_v6, 0.0  ;;  %v4565_v19 = vmax.f32 %v3555_v7, 0.0  ;;  %v2662_v20 = vadd.f32 %v9977_v52, %v2661_v16  ;;  %v3558_v21 = vadd.f32 %v9977_v52, %v3557_v17 }
 0x169   : > { %v8046_v22 = vpack.c.bf16 %v4343_v12, %v4343_v12  ;;  %v8270_v23 = vpack.c.bf16 %v4567_v13, %v4567_v13  ;;  %v4344_v24 = vmax.f32 %v2670_v14, 0.0  ;;  %v4568_v25 = vmax.f32 %v3566_v15, 0.0  ;;  %8831 = vmatmul.mubr.msk.bf16.gmra.mrb[144].mxu0 %vm1800_vm2, %v9373_v4  ;;  %9055 = vmatmul.mubr.msk.bf16.gmra.mrb[144].mxu1 %vm1800_vm2, %v9374_v5  ;;  %v9381_v13 = vld [vmem:[%s9744_s21 + $0x268] sm:$0xff]  }
 0x16a   : > { %v8044_v26 = vpack.c.bf16 %v4341_v18, %v4341_v18  ;;  %v8268_v27 = vpack.c.bf16 %v4565_v19, %v4565_v19  ;;  %v4342_v28 = vmax.f32 %v2662_v20, 0.0  ;;  %v4566_v29 = vmax.f32 %v3558_v21, 0.0  ;;  %8834 = vmatprep.mubr.msk.bf16.mxu0 %vm1800_vm2, %v9375_v10  ;;  %9058 = vmatprep.mubr.msk.bf16.mxu1 %vm1800_vm2, %v9376_v11  ;;  %v9382_v14 = vld [vmem:[%s9744_s21 + $0x5e8] sm:$0xff]   ;;  %v9383_v19 = vld [vmem:[%s9744_s21 + $0x270] sm:$0xff]  }
 0x16b   : > { %6584 = vst.msk [vmem:[%s9999_s25 + $0x98] sm:$0xf] %vm6545_vm3, %v8046_v22  ;;  %6808 = vst.msk [vmem:[%s9999_s25 + $0x418] sm:$0xf] %vm6545_vm3, %v8270_v23  ;;  %v8047_v30 = vpack.c.bf16 %v4344_v24, %v4344_v24  ;;  %v8271_v31 = vpack.c.bf16 %v4568_v25, %v4568_v25  ;;  %v9384_v20 = vld [vmem:[%s9744_s21 + $0x5f0] sm:$0xff]  }
 0x16c   : > { %6582 = vst.msk [vmem:[%s9999_s25 + $0x90] sm:$0xf] %vm6545_vm3, %v8044_v26  ;;  %6806 = vst.msk [vmem:[%s9999_s25 + $0x410] sm:$0xf] %vm6545_vm3, %v8268_v27  ;;  %v8045_v32 = vpack.c.bf16 %v4342_v28, %v4342_v28  ;;  %v8269_v33 = vpack.c.bf16 %v4566_v29, %v4566_v29  ;;  %v8728_v34 = vpop.f32.mrb[40].mxu0  ;;  %v8952_v35 = vpop.f32.mrb[40].mxu1 }
 0x16d   : > { %6585 = vst.msk [vmem:[%s9999_s25 + $0x9c] sm:$0xf] %vm6545_vm3, %v8047_v30  ;;  %6809 = vst.msk [vmem:[%s9999_s25 + $0x41c] sm:$0xf] %vm6545_vm3, %v8271_v31  ;;  %v2683_v36 = vadd.f32 %v8728_v34, %v9977_v52  ;;  %v3579_v37 = vadd.f32 %v8952_v35, %v9977_v52  ;;  %v2674_v38 = vpop.f32.mrb[41].mxu0  ;;  %v3570_v39 = vpop.f32.mrb[41].mxu1 }
 0x16e   : > { %6583 = vst.msk [vmem:[%s9999_s25 + $0x94] sm:$0xf] %vm6545_vm3, %v8045_v32  ;;  %6807 = vst.msk [vmem:[%s9999_s25 + $0x414] sm:$0xf] %vm6545_vm3, %v8269_v33  ;;  %v2675_v42 = vadd.f32 %v9977_v52, %v2674_v38  ;;  %v3571_v43 = vadd.f32 %v9977_v52, %v3570_v39  ;;  %v8729_v44 = vpop.f32.mrb[42].mxu0  ;;  %v8953_v45 = vpop.f32.mrb[42].mxu1 }
 0x16f   : > { %v4347_v48 = vmax.f32 %v2683_v36, 0.0  ;;  %v4571_v49 = vmax.f32 %v3579_v37, 0.0  ;;  %v2686_v50 = vadd.f32 %v8729_v44, %v9977_v52  ;;  %v3582_v51 = vadd.f32 %v8953_v45, %v9977_v52  ;;  %v2677_v53 = vpop.f32.mrb[43].mxu0  ;;  %v3573_v54 = vpop.f32.mrb[43].mxu1 }
 0x170   : > { %v4345_v55 = vmax.f32 %v2675_v42, 0.0  ;;  %v4569_v56 = vmax.f32 %v3571_v43, 0.0  ;;  %v2678_v57 = vadd.f32 %v9977_v52, %v2677_v53  ;;  %v3574_v58 = vadd.f32 %v9977_v52, %v3573_v54 }
 0x171   : > { %v8050_v59 = vpack.c.bf16 %v4347_v48, %v4347_v48  ;;  %v8274_v60 = vpack.c.bf16 %v4571_v49, %v4571_v49  ;;  %v4348_v61 = vmax.f32 %v2686_v50, 0.0  ;;  %v4572_v62 = vmax.f32 %v3582_v51, 0.0  ;;  %8835 = vmatmul.mubr.msk.bf16.gmra.mrb[148].mxu0 %vm1800_vm2, %v9377_v40  ;;  %9059 = vmatmul.mubr.msk.bf16.gmra.mrb[148].mxu1 %vm1800_vm2, %v9378_v41  ;;  %v9385_v49 = vld [vmem:[%s9744_s21 + $0x278] sm:$0xff]  }
 0x172   : > { %v8048_v63 = vpack.c.bf16 %v4345_v55, %v4345_v55  ;;  %v8272_v0 = vpack.c.bf16 %v4569_v56, %v4569_v56  ;;  %v4346_v1 = vmax.f32 %v2678_v57, 0.0  ;;  %v4570_v2 = vmax.f32 %v3574_v58, 0.0  ;;  %8838 = vmatprep.mubr.msk.bf16.mxu0 %vm1800_vm2, %v9379_v46  ;;  %9062 = vmatprep.mubr.msk.bf16.mxu1 %vm1800_vm2, %v9380_v47  ;;  %v9386_v50 = vld [vmem:[%s9744_s21 + $0x5f8] sm:$0xff]   ;;  %v9387_v56 = vld [vmem:[%s9744_s21 + $0x280] sm:$0xff]  }
 0x173   : > { %6588 = vst.msk [vmem:[%s9999_s25 + $0xa8] sm:$0xf] %vm6545_vm3, %v8050_v59  ;;  %6812 = vst.msk [vmem:[%s9999_s25 + $0x428] sm:$0xf] %vm6545_vm3, %v8274_v60  ;;  %v8051_v52 = vpack.c.bf16 %v4348_v61, %v4348_v61  ;;  %v8275_v3 = vpack.c.bf16 %v4572_v62, %v4572_v62  ;;  %v9388_v57 = vld [vmem:[%s9744_s21 + $0x600] sm:$0xff]  }
 0x174   : > { %6586 = vst.msk [vmem:[%s9999_s25 + $0xa0] sm:$0xf] %vm6545_vm3, %v8048_v63  ;;  %6810 = vst.msk [vmem:[%s9999_s25 + $0x420] sm:$0xf] %vm6545_vm3, %v8272_v0  ;;  %v8049_v4 = vpack.c.bf16 %v4346_v1, %v4346_v1  ;;  %v8273_v5 = vpack.c.bf16 %v4570_v2, %v4570_v2  ;;  %v8732_v6 = vpop.f32.mrb[44].mxu0  ;;  %v8956_v7 = vpop.f32.mrb[44].mxu1 }
 0x175   : > { %6589 = vst.msk [vmem:[%s9999_s25 + $0xac] sm:$0xf] %vm6545_vm3, %v8051_v52  ;;  %6813 = vst.msk [vmem:[%s9999_s25 + $0x42c] sm:$0xf] %vm6545_vm3, %v8275_v3  ;;  %v2699_v9 = vadd.f32 %v10336_v8, %v8732_v6  ;;  %v3595_v10 = vadd.f32 %v10336_v8, %v8956_v7  ;;  %v2690_v11 = vpop.f32.mrb[45].mxu0  ;;  %v3586_v12 = vpop.f32.mrb[45].mxu1 }
 0x176   : > { %6587 = vst.msk [vmem:[%s9999_s25 + $0xa4] sm:$0xf] %vm6545_vm3, %v8049_v4  ;;  %6811 = vst.msk [vmem:[%s9999_s25 + $0x424] sm:$0xf] %vm6545_vm3, %v8273_v5  ;;  %v2691_v15 = vadd.f32 %v10336_v8, %v2690_v11  ;;  %v3587_v16 = vadd.f32 %v10336_v8, %v3586_v12  ;;  %v8733_v17 = vpop.f32.mrb[46].mxu0  ;;  %v8957_v18 = vpop.f32.mrb[46].mxu1 }
 0x177   : > { %v4351_v21 = vmax.f32 %v2699_v9, 0.0  ;;  %v4575_v22 = vmax.f32 %v3595_v10, 0.0  ;;  %v2702_v23 = vadd.f32 %v10336_v8, %v8733_v17  ;;  %v3598_v24 = vadd.f32 %v10336_v8, %v8957_v18  ;;  %v2693_v25 = vpop.f32.mrb[47].mxu0  ;;  %v3589_v26 = vpop.f32.mrb[47].mxu1 }
 0x178   : > { %v4349_v27 = vmax.f32 %v2691_v15, 0.0  ;;  %v4573_v28 = vmax.f32 %v3587_v16, 0.0  ;;  %v2694_v29 = vadd.f32 %v10336_v8, %v2693_v25  ;;  %v3590_v30 = vadd.f32 %v10336_v8, %v3589_v26 }
 0x179   : > { %v8054_v31 = vpack.c.bf16 %v4351_v21, %v4351_v21  ;;  %v8278_v32 = vpack.c.bf16 %v4575_v22, %v4575_v22  ;;  %v4352_v33 = vmax.f32 %v2702_v23, 0.0  ;;  %v4576_v34 = vmax.f32 %v3598_v24, 0.0  ;;  %8839 = vmatmul.mubr.msk.bf16.gmra.mrb[152].mxu0 %vm1800_vm2, %v9381_v13  ;;  %9063 = vmatmul.mubr.msk.bf16.gmra.mrb[152].mxu1 %vm1800_vm2, %v9382_v14  ;;  %v9389_v22 = vld [vmem:[%s9744_s21 + $0x288] sm:$0xff]  }
 0x17a   : > { %v8052_v35 = vpack.c.bf16 %v4349_v27, %v4349_v27  ;;  %v8276_v36 = vpack.c.bf16 %v4573_v28, %v4573_v28  ;;  %v4350_v37 = vmax.f32 %v2694_v29, 0.0  ;;  %v4574_v38 = vmax.f32 %v3590_v30, 0.0  ;;  %8842 = vmatprep.mubr.msk.bf16.mxu0 %vm1800_vm2, %v9383_v19  ;;  %9066 = vmatprep.mubr.msk.bf16.mxu1 %vm1800_vm2, %v9384_v20  ;;  %v9390_v23 = vld [vmem:[%s9744_s21 + $0x608] sm:$0xff]   ;;  %v9391_v28 = vld [vmem:[%s9744_s21 + $0x290] sm:$0xff]  }
 0x17b   : > { %6592 = vst.msk [vmem:[%s9999_s25 + $0xb8] sm:$0xf] %vm6545_vm3, %v8054_v31  ;;  %6816 = vst.msk [vmem:[%s9999_s25 + $0x438] sm:$0xf] %vm6545_vm3, %v8278_v32  ;;  %v8055_v39 = vpack.c.bf16 %v4352_v33, %v4352_v33  ;;  %v8279_v40 = vpack.c.bf16 %v4576_v34, %v4576_v34  ;;  %v9392_v29 = vld [vmem:[%s9744_s21 + $0x610] sm:$0xff]  }
 0x17c   : > { %6590 = vst.msk [vmem:[%s9999_s25 + $0xb0] sm:$0xf] %vm6545_vm3, %v8052_v35  ;;  %6814 = vst.msk [vmem:[%s9999_s25 + $0x430] sm:$0xf] %vm6545_vm3, %v8276_v36  ;;  %v8053_v41 = vpack.c.bf16 %v4350_v37, %v4350_v37  ;;  %v8277_v42 = vpack.c.bf16 %v4574_v38, %v4574_v38  ;;  %v8736_v43 = vpop.f32.mrb[48].mxu0  ;;  %v8960_v44 = vpop.f32.mrb[48].mxu1 }
 0x17d   : > { %6593 = vst.msk [vmem:[%s9999_s25 + $0xbc] sm:$0xf] %vm6545_vm3, %v8055_v39  ;;  %6817 = vst.msk [vmem:[%s9999_s25 + $0x43c] sm:$0xf] %vm6545_vm3, %v8279_v40  ;;  %v2715_v45 = vadd.f32 %v10336_v8, %v8736_v43  ;;  %v3611_v46 = vadd.f32 %v10336_v8, %v8960_v44  ;;  %v2706_v47 = vpop.f32.mrb[49].mxu0  ;;  %v3602_v48 = vpop.f32.mrb[49].mxu1 }
 0x17e   : > { %6591 = vst.msk [vmem:[%s9999_s25 + $0xb4] sm:$0xf] %vm6545_vm3, %v8053_v41  ;;  %6815 = vst.msk [vmem:[%s9999_s25 + $0x434] sm:$0xf] %vm6545_vm3, %v8277_v42  ;;  %v2707_v51 = vadd.f32 %v10336_v8, %v2706_v47  ;;  %v3603_v53 = vadd.f32 %v10336_v8, %v3602_v48  ;;  %v8737_v54 = vpop.f32.mrb[50].mxu0  ;;  %v8961_v55 = vpop.f32.mrb[50].mxu1 }
 0x17f   : > { %v4355_v58 = vmax.f32 %v2715_v45, 0.0  ;;  %v4579_v59 = vmax.f32 %v3611_v46, 0.0  ;;  %v2718_v60 = vadd.f32 %v10336_v8, %v8737_v54  ;;  %v3614_v61 = vadd.f32 %v10336_v8, %v8961_v55  ;;  %v2709_v62 = vpop.f32.mrb[51].mxu0  ;;  %v3605_v63 = vpop.f32.mrb[51].mxu1 }
 0x180   : > { %v4353_v0 = vmax.f32 %v2707_v51, 0.0  ;;  %v4577_v1 = vmax.f32 %v3603_v53, 0.0  ;;  %v2710_v2 = vadd.f32 %v10336_v8, %v2709_v62  ;;  %v3606_v52 = vadd.f32 %v10336_v8, %v3605_v63 }
 0x181   : > { %v8058_v3 = vpack.c.bf16 %v4355_v58, %v4355_v58  ;;  %v8282_v4 = vpack.c.bf16 %v4579_v59, %v4579_v59  ;;  %v4356_v5 = vmax.f32 %v2718_v60, 0.0  ;;  %v4580_v6 = vmax.f32 %v3614_v61, 0.0  ;;  %8843 = vmatmul.mubr.msk.bf16.gmra.mrb[156].mxu0 %vm1800_vm2, %v9385_v49  ;;  %9067 = vmatmul.mubr.msk.bf16.gmra.mrb[156].mxu1 %vm1800_vm2, %v9386_v50  ;;  %v9393_v59 = vld [vmem:[%s9744_s21 + $0x298] sm:$0xff]  }
 0x182   : > { %v8056_v7 = vpack.c.bf16 %v4353_v0, %v4353_v0  ;;  %v8280_v9 = vpack.c.bf16 %v4577_v1, %v4577_v1  ;;  %v4354_v10 = vmax.f32 %v2710_v2, 0.0  ;;  %v4578_v11 = vmax.f32 %v3606_v52, 0.0  ;;  %8846 = vmatprep.mubr.msk.bf16.mxu0 %vm1800_vm2, %v9387_v56  ;;  %9070 = vmatprep.mubr.msk.bf16.mxu1 %vm1800_vm2, %v9388_v57  ;;  %v9394_v60 = vld [vmem:[%s9744_s21 + $0x618] sm:$0xff]   ;;  %v9395_v1 = vld [vmem:[%s9744_s21 + $0x2a0] sm:$0xff]  }
 0x183   : > { %6596 = vst.msk [vmem:[%s9999_s25 + $0xc8] sm:$0xf] %vm6545_vm3, %v8058_v3  ;;  %6820 = vst.msk [vmem:[%s9999_s25 + $0x448] sm:$0xf] %vm6545_vm3, %v8282_v4  ;;  %v8059_v12 = vpack.c.bf16 %v4356_v5, %v4356_v5  ;;  %v8283_v13 = vpack.c.bf16 %v4580_v6, %v4580_v6  ;;  %v9396_v2 = vld [vmem:[%s9744_s21 + $0x620] sm:$0xff]  }
 0x184   : > { %6594 = vst.msk [vmem:[%s9999_s25 + $0xc0] sm:$0xf] %vm6545_vm3, %v8056_v7  ;;  %6818 = vst.msk [vmem:[%s9999_s25 + $0x440] sm:$0xf] %vm6545_vm3, %v8280_v9  ;;  %v8057_v14 = vpack.c.bf16 %v4354_v10, %v4354_v10  ;;  %v8281_v15 = vpack.c.bf16 %v4578_v11, %v4578_v11  ;;  %v8740_v16 = vpop.f32.mrb[52].mxu0  ;;  %v8964_v17 = vpop.f32.mrb[52].mxu1 }
 0x185   : > { %6597 = vst.msk [vmem:[%s9999_s25 + $0xcc] sm:$0xf] %vm6545_vm3, %v8059_v12  ;;  %6821 = vst.msk [vmem:[%s9999_s25 + $0x44c] sm:$0xf] %vm6545_vm3, %v8283_v13  ;;  %v2731_v18 = vadd.f32 %v10336_v8, %v8740_v16  ;;  %v3627_v19 = vadd.f32 %v10336_v8, %v8964_v17  ;;  %v2722_v20 = vpop.f32.mrb[53].mxu0  ;;  %v3618_v21 = vpop.f32.mrb[53].mxu1 }
 0x186   : > { %6595 = vst.msk [vmem:[%s9999_s25 + $0xc4] sm:$0xf] %vm6545_vm3, %v8057_v14  ;;  %6819 = vst.msk [vmem:[%s9999_s25 + $0x444] sm:$0xf] %vm6545_vm3, %v8281_v15  ;;  %v2723_v24 = vadd.f32 %v10336_v8, %v2722_v20  ;;  %v3619_v25 = vadd.f32 %v10336_v8, %v3618_v21  ;;  %v8741_v26 = vpop.f32.mrb[54].mxu0  ;;  %v8965_v27 = vpop.f32.mrb[54].mxu1 }
 0x187   : > { %v4359_v30 = vmax.f32 %v2731_v18, 0.0  ;;  %v4583_v31 = vmax.f32 %v3627_v19, 0.0  ;;  %v2734_v32 = vadd.f32 %v10336_v8, %v8741_v26  ;;  %v3630_v33 = vadd.f32 %v10336_v8, %v8965_v27  ;;  %v2725_v34 = vpop.f32.mrb[55].mxu0  ;;  %v3621_v35 = vpop.f32.mrb[55].mxu1 }
 0x188   : > { %v4357_v36 = vmax.f32 %v2723_v24, 0.0  ;;  %v4581_v37 = vmax.f32 %v3619_v25, 0.0  ;;  %v2726_v38 = vadd.f32 %v10336_v8, %v2725_v34  ;;  %v3622_v39 = vadd.f32 %v10336_v8, %v3621_v35 }
 0x189   : > { %v8062_v40 = vpack.c.bf16 %v4359_v30, %v4359_v30  ;;  %v8286_v41 = vpack.c.bf16 %v4583_v31, %v4583_v31  ;;  %v4360_v42 = vmax.f32 %v2734_v32, 0.0  ;;  %v4584_v43 = vmax.f32 %v3630_v33, 0.0  ;;  %8847 = vmatmul.mubr.msk.bf16.gmra.mrb[160].mxu0 %vm1800_vm2, %v9389_v22  ;;  %9071 = vmatmul.mubr.msk.bf16.gmra.mrb[160].mxu1 %vm1800_vm2, %v9390_v23  ;;  %v9397_v31 = vld [vmem:[%s9744_s21 + $0x2a8] sm:$0xff]  }
 0x18a   : > { %v8060_v44 = vpack.c.bf16 %v4357_v36, %v4357_v36  ;;  %v8284_v45 = vpack.c.bf16 %v4581_v37, %v4581_v37  ;;  %v4358_v46 = vmax.f32 %v2726_v38, 0.0  ;;  %v4582_v47 = vmax.f32 %v3622_v39, 0.0  ;;  %8850 = vmatprep.mubr.msk.bf16.mxu0 %vm1800_vm2, %v9391_v28  ;;  %9074 = vmatprep.mubr.msk.bf16.mxu1 %vm1800_vm2, %v9392_v29  ;;  %v9398_v32 = vld [vmem:[%s9744_s21 + $0x628] sm:$0xff]   ;;  %v9399_v37 = vld [vmem:[%s9744_s21 + $0x2b0] sm:$0xff]  }
 0x18b   : > { %6600 = vst.msk [vmem:[%s9999_s25 + $0xd8] sm:$0xf] %vm6545_vm3, %v8062_v40  ;;  %6824 = vst.msk [vmem:[%s9999_s25 + $0x458] sm:$0xf] %vm6545_vm3, %v8286_v41  ;;  %v8063_v48 = vpack.c.bf16 %v4360_v42, %v4360_v42  ;;  %v8287_v49 = vpack.c.bf16 %v4584_v43, %v4584_v43  ;;  %v9400_v38 = vld [vmem:[%s9744_s21 + $0x630] sm:$0xff]  }
 0x18c   : > { %6598 = vst.msk [vmem:[%s9999_s25 + $0xd0] sm:$0xf] %vm6545_vm3, %v8060_v44  ;;  %6822 = vst.msk [vmem:[%s9999_s25 + $0x450] sm:$0xf] %vm6545_vm3, %v8284_v45  ;;  %v8061_v50 = vpack.c.bf16 %v4358_v46, %v4358_v46  ;;  %v8285_v51 = vpack.c.bf16 %v4582_v47, %v4582_v47  ;;  %v8744_v53 = vpop.f32.mrb[56].mxu0  ;;  %v8968_v54 = vpop.f32.mrb[56].mxu1 }
 0x18d   : > { %6601 = vst.msk [vmem:[%s9999_s25 + $0xdc] sm:$0xf] %vm6545_vm3, %v8063_v48  ;;  %6825 = vst.msk [vmem:[%s9999_s25 + $0x45c] sm:$0xf] %vm6545_vm3, %v8287_v49  ;;  %v2747_v55 = vadd.f32 %v10336_v8, %v8744_v53  ;;  %v3643_v56 = vadd.f32 %v10336_v8, %v8968_v54  ;;  %v2738_v57 = vpop.f32.mrb[57].mxu0  ;;  %v3634_v58 = vpop.f32.mrb[57].mxu1 }
 0x18e   : > { %6599 = vst.msk [vmem:[%s9999_s25 + $0xd4] sm:$0xf] %vm6545_vm3, %v8061_v50  ;;  %6823 = vst.msk [vmem:[%s9999_s25 + $0x454] sm:$0xf] %vm6545_vm3, %v8285_v51  ;;  %v2739_v61 = vadd.f32 %v10336_v8, %v2738_v57  ;;  %v3635_v62 = vadd.f32 %v10336_v8, %v3634_v58  ;;  %v8745_v63 = vpop.f32.mrb[58].mxu0  ;;  %v8969_v0 = vpop.f32.mrb[58].mxu1 }
 0x18f   : > { %v4363_v52 = vmax.f32 %v2747_v55, 0.0  ;;  %v4587_v3 = vmax.f32 %v3643_v56, 0.0  ;;  %v2750_v4 = vadd.f32 %v10336_v8, %v8745_v63  ;;  %v3646_v5 = vadd.f32 %v10336_v8, %v8969_v0  ;;  %v2741_v6 = vpop.f32.mrb[59].mxu0  ;;  %v3637_v7 = vpop.f32.mrb[59].mxu1 }
 0x190   : > { %v4361_v9 = vmax.f32 %v2739_v61, 0.0  ;;  %v4585_v10 = vmax.f32 %v3635_v62, 0.0  ;;  %v2742_v11 = vadd.f32 %v10336_v8, %v2741_v6  ;;  %v3638_v12 = vadd.f32 %v10336_v8, %v3637_v7 }
 0x191   : > { %v8066_v13 = vpack.c.bf16 %v4363_v52, %v4363_v52  ;;  %v8290_v14 = vpack.c.bf16 %v4587_v3, %v4587_v3  ;;  %v4364_v15 = vmax.f32 %v2750_v4, 0.0  ;;  %v4588_v16 = vmax.f32 %v3646_v5, 0.0  ;;  %8851 = vmatmul.mubr.msk.bf16.gmra.mrb[164].mxu0 %vm1800_vm2, %v9393_v59  ;;  %9075 = vmatmul.mubr.msk.bf16.gmra.mrb[164].mxu1 %vm1800_vm2, %v9394_v60  ;;  %v9401_v3 = vld [vmem:[%s9744_s21 + $0x2b8] sm:$0xff]  }
 0x192   : > { %v8064_v17 = vpack.c.bf16 %v4361_v9, %v4361_v9  ;;  %v8288_v18 = vpack.c.bf16 %v4585_v10, %v4585_v10  ;;  %v4362_v19 = vmax.f32 %v2742_v11, 0.0  ;;  %v4586_v20 = vmax.f32 %v3638_v12, 0.0  ;;  %8854 = vmatprep.mubr.msk.bf16.mxu0 %vm1800_vm2, %v9395_v1  ;;  %9078 = vmatprep.mubr.msk.bf16.mxu1 %vm1800_vm2, %v9396_v2  ;;  %v9402_v4 = vld [vmem:[%s9744_s21 + $0x638] sm:$0xff]   ;;  %v9403_v10 = vld [vmem:[%s9744_s21 + $0x2c0] sm:$0xff]  }
 0x193   : > { %6604 = vst.msk [vmem:[%s9999_s25 + $0xe8] sm:$0xf] %vm6545_vm3, %v8066_v13  ;;  %6828 = vst.msk [vmem:[%s9999_s25 + $0x468] sm:$0xf] %vm6545_vm3, %v8290_v14  ;;  %v8067_v21 = vpack.c.bf16 %v4364_v15, %v4364_v15  ;;  %v8291_v22 = vpack.c.bf16 %v4588_v16, %v4588_v16  ;;  %v9404_v11 = vld [vmem:[%s9744_s21 + $0x640] sm:$0xff]  }
 0x194   : > { %6602 = vst.msk [vmem:[%s9999_s25 + $0xe0] sm:$0xf] %vm6545_vm3, %v8064_v17  ;;  %6826 = vst.msk [vmem:[%s9999_s25 + $0x460] sm:$0xf] %vm6545_vm3, %v8288_v18  ;;  %v8065_v23 = vpack.c.bf16 %v4362_v19, %v4362_v19  ;;  %v8289_v24 = vpack.c.bf16 %v4586_v20, %v4586_v20  ;;  %v8748_v25 = vpop.f32.mrb[60].mxu0  ;;  %v8972_v26 = vpop.f32.mrb[60].mxu1 }
 0x195   : > { %6605 = vst.msk [vmem:[%s9999_s25 + $0xec] sm:$0xf] %vm6545_vm3, %v8067_v21  ;;  %6829 = vst.msk [vmem:[%s9999_s25 + $0x46c] sm:$0xf] %vm6545_vm3, %v8291_v22  ;;  %v2763_v27 = vadd.f32 %v10336_v8, %v8748_v25  ;;  %v3659_v28 = vadd.f32 %v10336_v8, %v8972_v26  ;;  %v2754_v29 = vpop.f32.mrb[61].mxu0  ;;  %v3650_v30 = vpop.f32.mrb[61].mxu1 }
 0x196   : > { %6603 = vst.msk [vmem:[%s9999_s25 + $0xe4] sm:$0xf] %vm6545_vm3, %v8065_v23  ;;  %6827 = vst.msk [vmem:[%s9999_s25 + $0x464] sm:$0xf] %vm6545_vm3, %v8289_v24  ;;  %v2755_v33 = vadd.f32 %v10336_v8, %v2754_v29  ;;  %v3651_v34 = vadd.f32 %v10336_v8, %v3650_v30  ;;  %v8749_v35 = vpop.f32.mrb[62].mxu0  ;;  %v8973_v36 = vpop.f32.mrb[62].mxu1 }
 0x197   : > { %v4367_v39 = vmax.f32 %v2763_v27, 0.0  ;;  %v4591_v40 = vmax.f32 %v3659_v28, 0.0  ;;  %v2766_v41 = vadd.f32 %v10336_v8, %v8749_v35  ;;  %v3662_v42 = vadd.f32 %v10336_v8, %v8973_v36  ;;  %v2757_v43 = vpop.f32.mrb[63].mxu0  ;;  %v3653_v44 = vpop.f32.mrb[63].mxu1 }
 0x198   : > { %v4365_v45 = vmax.f32 %v2755_v33, 0.0  ;;  %v4589_v46 = vmax.f32 %v3651_v34, 0.0  ;;  %v2758_v47 = vadd.f32 %v10336_v8, %v2757_v43  ;;  %v3654_v48 = vadd.f32 %v10336_v8, %v3653_v44 }
 0x199   : > { %v8070_v49 = vpack.c.bf16 %v4367_v39, %v4367_v39  ;;  %v8294_v50 = vpack.c.bf16 %v4591_v40, %v4591_v40  ;;  %v4368_v51 = vmax.f32 %v2766_v41, 0.0  ;;  %v4592_v53 = vmax.f32 %v3662_v42, 0.0  ;;  %8855 = vmatmul.mubr.msk.bf16.gmra.mrb[168].mxu0 %vm1800_vm2, %v9397_v31  ;;  %9079 = vmatmul.mubr.msk.bf16.gmra.mrb[168].mxu1 %vm1800_vm2, %v9398_v32  ;;  %v9405_v40 = vld [vmem:[%s9744_s21 + $0x2c8] sm:$0xff]  }
 0x19a   : > { %v8068_v54 = vpack.c.bf16 %v4365_v45, %v4365_v45  ;;  %v8292_v55 = vpack.c.bf16 %v4589_v46, %v4589_v46  ;;  %v4366_v56 = vmax.f32 %v2758_v47, 0.0  ;;  %v4590_v57 = vmax.f32 %v3654_v48, 0.0  ;;  %8858 = vmatprep.mubr.msk.bf16.mxu0 %vm1800_vm2, %v9399_v37  ;;  %9082 = vmatprep.mubr.msk.bf16.mxu1 %vm1800_vm2, %v9400_v38  ;;  %v9406_v41 = vld [vmem:[%s9744_s21 + $0x648] sm:$0xff]   ;;  %v9407_v46 = vld [vmem:[%s9744_s21 + $0x2d0] sm:$0xff]  }
 0x19b   : > { %6608 = vst.msk [vmem:[%s9999_s25 + $0xf8] sm:$0xf] %vm6545_vm3, %v8070_v49  ;;  %6832 = vst.msk [vmem:[%s9999_s25 + $0x478] sm:$0xf] %vm6545_vm3, %v8294_v50  ;;  %v8071_v58 = vpack.c.bf16 %v4368_v51, %v4368_v51  ;;  %v8295_v59 = vpack.c.bf16 %v4592_v53, %v4592_v53  ;;  %v9408_v47 = vld [vmem:[%s9744_s21 + $0x650] sm:$0xff]  }
 0x19c   : > { %6606 = vst.msk [vmem:[%s9999_s25 + $0xf0] sm:$0xf] %vm6545_vm3, %v8068_v54  ;;  %6830 = vst.msk [vmem:[%s9999_s25 + $0x470] sm:$0xf] %vm6545_vm3, %v8292_v55  ;;  %v8069_v60 = vpack.c.bf16 %v4366_v56, %v4366_v56  ;;  %v8293_v61 = vpack.c.bf16 %v4590_v57, %v4590_v57  ;;  %v8752_v62 = vpop.f32.mrb[64].mxu0  ;;  %v8976_v63 = vpop.f32.mrb[64].mxu1 }
 0x19d   : > { %6609 = vst.msk [vmem:[%s9999_s25 + $0xfc] sm:$0xf] %vm6545_vm3, %v8071_v58  ;;  %6833 = vst.msk [vmem:[%s9999_s25 + $0x47c] sm:$0xf] %vm6545_vm3, %v8295_v59  ;;  %v2779_v0 = vadd.f32 %v10336_v8, %v8752_v62  ;;  %v3675_v1 = vadd.f32 %v10336_v8, %v8976_v63  ;;  %v2770_v2 = vpop.f32.mrb[65].mxu0  ;;  %v3666_v52 = vpop.f32.mrb[65].mxu1 }
 0x19e   : > { %6607 = vst.msk [vmem:[%s9999_s25 + $0xf4] sm:$0xf] %vm6545_vm3, %v8069_v60  ;;  %6831 = vst.msk [vmem:[%s9999_s25 + $0x474] sm:$0xf] %vm6545_vm3, %v8293_v61  ;;  %v2771_v5 = vadd.f32 %v10336_v8, %v2770_v2  ;;  %v3667_v6 = vadd.f32 %v10336_v8, %v3666_v52  ;;  %v8753_v7 = vpop.f32.mrb[66].mxu0  ;;  %v8977_v9 = vpop.f32.mrb[66].mxu1 }
 0x19f   : > { %v4371_v12 = vmax.f32 %v2779_v0, 0.0  ;;  %v4595_v13 = vmax.f32 %v3675_v1, 0.0  ;;  %v2782_v14 = vadd.f32 %v10336_v8, %v8753_v7  ;;  %v3678_v15 = vadd.f32 %v10336_v8, %v8977_v9  ;;  %v2773_v16 = vpop.f32.mrb[67].mxu0  ;;  %v3669_v17 = vpop.f32.mrb[67].mxu1 }
 0x1a0   : > { %v4369_v18 = vmax.f32 %v2771_v5, 0.0  ;;  %v4593_v19 = vmax.f32 %v3667_v6, 0.0  ;;  %v2774_v20 = vadd.f32 %v10336_v8, %v2773_v16  ;;  %v3670_v21 = vadd.f32 %v10336_v8, %v3669_v17 }
 0x1a1   : > { %v8074_v22 = vpack.c.bf16 %v4371_v12, %v4371_v12  ;;  %v8298_v23 = vpack.c.bf16 %v4595_v13, %v4595_v13  ;;  %v4372_v24 = vmax.f32 %v2782_v14, 0.0  ;;  %v4596_v25 = vmax.f32 %v3678_v15, 0.0  ;;  %8859 = vmatmul.mubr.msk.bf16.gmra.mrb[172].mxu0 %vm1800_vm2, %v9401_v3  ;;  %9083 = vmatmul.mubr.msk.bf16.gmra.mrb[172].mxu1 %vm1800_vm2, %v9402_v4  ;;  %v9409_v13 = vld [vmem:[%s9744_s21 + $0x2d8] sm:$0xff]  }
 0x1a2   : > { %v8072_v26 = vpack.c.bf16 %v4369_v18, %v4369_v18  ;;  %v8296_v27 = vpack.c.bf16 %v4593_v19, %v4593_v19  ;;  %v4370_v28 = vmax.f32 %v2774_v20, 0.0  ;;  %v4594_v29 = vmax.f32 %v3670_v21, 0.0  ;;  %8862 = vmatprep.mubr.msk.bf16.mxu0 %vm1800_vm2, %v9403_v10  ;;  %9086 = vmatprep.mubr.msk.bf16.mxu1 %vm1800_vm2, %v9404_v11  ;;  %v9410_v14 = vld [vmem:[%s9744_s21 + $0x658] sm:$0xff]   ;;  %v9411_v19 = vld [vmem:[%s9744_s21 + $0x2e0] sm:$0xff]  }
 0x1a3   : > { %6612 = vst.msk [vmem:[%s9999_s25 + $0x108] sm:$0xf] %vm6545_vm3, %v8074_v22  ;;  %6836 = vst.msk [vmem:[%s9999_s25 + $0x488] sm:$0xf] %vm6545_vm3, %v8298_v23  ;;  %v8075_v30 = vpack.c.bf16 %v4372_v24, %v4372_v24  ;;  %v8299_v31 = vpack.c.bf16 %v4596_v25, %v4596_v25  ;;  %v9412_v20 = vld [vmem:[%s9744_s21 + $0x660] sm:$0xff]  }
 0x1a4   : > { %6610 = vst.msk [vmem:[%s9999_s25 + $0x100] sm:$0xf] %vm6545_vm3, %v8072_v26  ;;  %6834 = vst.msk [vmem:[%s9999_s25 + $0x480] sm:$0xf] %vm6545_vm3, %v8296_v27  ;;  %v8073_v32 = vpack.c.bf16 %v4370_v28, %v4370_v28  ;;  %v8297_v33 = vpack.c.bf16 %v4594_v29, %v4594_v29  ;;  %v8756_v34 = vpop.f32.mrb[68].mxu0  ;;  %v8980_v35 = vpop.f32.mrb[68].mxu1 }
 0x1a5   : > { %6613 = vst.msk [vmem:[%s9999_s25 + $0x10c] sm:$0xf] %vm6545_vm3, %v8075_v30  ;;  %6837 = vst.msk [vmem:[%s9999_s25 + $0x48c] sm:$0xf] %vm6545_vm3, %v8299_v31  ;;  %v2795_v36 = vadd.f32 %v10336_v8, %v8756_v34  ;;  %v3691_v37 = vadd.f32 %v10336_v8, %v8980_v35  ;;  %v2786_v38 = vpop.f32.mrb[69].mxu0  ;;  %v3682_v39 = vpop.f32.mrb[69].mxu1 }
 0x1a6   : > { %6611 = vst.msk [vmem:[%s9999_s25 + $0x104] sm:$0xf] %vm6545_vm3, %v8073_v32  ;;  %6835 = vst.msk [vmem:[%s9999_s25 + $0x484] sm:$0xf] %vm6545_vm3, %v8297_v33  ;;  %v2787_v42 = vadd.f32 %v10336_v8, %v2786_v38  ;;  %v3683_v43 = vadd.f32 %v10336_v8, %v3682_v39  ;;  %v8757_v44 = vpop.f32.mrb[70].mxu0  ;;  %v8981_v45 = vpop.f32.mrb[70].mxu1 }
 0x1a7   : > { %v4375_v48 = vmax.f32 %v2795_v36, 0.0  ;;  %v4599_v49 = vmax.f32 %v3691_v37, 0.0  ;;  %v2798_v50 = vadd.f32 %v10336_v8, %v8757_v44  ;;  %v3694_v51 = vadd.f32 %v10336_v8, %v8981_v45  ;;  %v2789_v53 = vpop.f32.mrb[71].mxu0  ;;  %v3685_v54 = vpop.f32.mrb[71].mxu1 }
 0x1a8   : > { %v4373_v55 = vmax.f32 %v2787_v42, 0.0  ;;  %v4597_v56 = vmax.f32 %v3683_v43, 0.0  ;;  %v2790_v57 = vadd.f32 %v10336_v8, %v2789_v53  ;;  %v3686_v58 = vadd.f32 %v10336_v8, %v3685_v54 }
 0x1a9   : > { %v8078_v59 = vpack.c.bf16 %v4375_v48, %v4375_v48  ;;  %v8302_v60 = vpack.c.bf16 %v4599_v49, %v4599_v49  ;;  %v4376_v61 = vmax.f32 %v2798_v50, 0.0  ;;  %v4600_v62 = vmax.f32 %v3694_v51, 0.0  ;;  %8863 = vmatmul.mubr.msk.bf16.gmra.mrb[176].mxu0 %vm1800_vm2, %v9405_v40  ;;  %9087 = vmatmul.mubr.msk.bf16.gmra.mrb[176].mxu1 %vm1800_vm2, %v9406_v41  ;;  %v9413_v49 = vld [vmem:[%s9744_s21 + $0x2e8] sm:$0xff]  }
 0x1aa   : > { %v8076_v63 = vpack.c.bf16 %v4373_v55, %v4373_v55  ;;  %v8300_v0 = vpack.c.bf16 %v4597_v56, %v4597_v56  ;;  %v4374_v1 = vmax.f32 %v2790_v57, 0.0  ;;  %v4598_v2 = vmax.f32 %v3686_v58, 0.0  ;;  %8866 = vmatprep.mubr.msk.bf16.mxu0 %vm1800_vm2, %v9407_v46  ;;  %9090 = vmatprep.mubr.msk.bf16.mxu1 %vm1800_vm2, %v9408_v47  ;;  %v9414_v50 = vld [vmem:[%s9744_s21 + $0x668] sm:$0xff]   ;;  %v9415_v56 = vld [vmem:[%s9744_s21 + $0x2f0] sm:$0xff]  }
 0x1ab   : > { %6616 = vst.msk [vmem:[%s9999_s25 + $0x118] sm:$0xf] %vm6545_vm3, %v8078_v59  ;;  %6840 = vst.msk [vmem:[%s9999_s25 + $0x498] sm:$0xf] %vm6545_vm3, %v8302_v60  ;;  %v8079_v52 = vpack.c.bf16 %v4376_v61, %v4376_v61  ;;  %v8303_v3 = vpack.c.bf16 %v4600_v62, %v4600_v62  ;;  %v9416_v57 = vld [vmem:[%s9744_s21 + $0x670] sm:$0xff]  }
 0x1ac   : > { %6614 = vst.msk [vmem:[%s9999_s25 + $0x110] sm:$0xf] %vm6545_vm3, %v8076_v63  ;;  %6838 = vst.msk [vmem:[%s9999_s25 + $0x490] sm:$0xf] %vm6545_vm3, %v8300_v0  ;;  %v8077_v4 = vpack.c.bf16 %v4374_v1, %v4374_v1  ;;  %v8301_v5 = vpack.c.bf16 %v4598_v2, %v4598_v2  ;;  %v8760_v6 = vpop.f32.mrb[72].mxu0  ;;  %v8984_v7 = vpop.f32.mrb[72].mxu1 }
 0x1ad   : > { %6617 = vst.msk [vmem:[%s9999_s25 + $0x11c] sm:$0xf] %vm6545_vm3, %v8079_v52  ;;  %6841 = vst.msk [vmem:[%s9999_s25 + $0x49c] sm:$0xf] %vm6545_vm3, %v8303_v3  ;;  %v2811_v9 = vadd.f32 %v10336_v8, %v8760_v6  ;;  %v3707_v10 = vadd.f32 %v10336_v8, %v8984_v7  ;;  %v2802_v11 = vpop.f32.mrb[73].mxu0  ;;  %v3698_v12 = vpop.f32.mrb[73].mxu1 }
 0x1ae   : > { %6615 = vst.msk [vmem:[%s9999_s25 + $0x114] sm:$0xf] %vm6545_vm3, %v8077_v4  ;;  %6839 = vst.msk [vmem:[%s9999_s25 + $0x494] sm:$0xf] %vm6545_vm3, %v8301_v5  ;;  %v2803_v15 = vadd.f32 %v10336_v8, %v2802_v11  ;;  %v3699_v16 = vadd.f32 %v10336_v8, %v3698_v12  ;;  %v8761_v17 = vpop.f32.mrb[74].mxu0  ;;  %v8985_v18 = vpop.f32.mrb[74].mxu1 }
 0x1af   : > { %v4379_v21 = vmax.f32 %v2811_v9, 0.0  ;;  %v4603_v22 = vmax.f32 %v3707_v10, 0.0  ;;  %v2814_v23 = vadd.f32 %v10336_v8, %v8761_v17  ;;  %v3710_v24 = vadd.f32 %v10336_v8, %v8985_v18  ;;  %v2805_v25 = vpop.f32.mrb[75].mxu0  ;;  %v3701_v26 = vpop.f32.mrb[75].mxu1 }
 0x1b0   : > { %v4377_v27 = vmax.f32 %v2803_v15, 0.0  ;;  %v4601_v28 = vmax.f32 %v3699_v16, 0.0  ;;  %v2806_v29 = vadd.f32 %v10336_v8, %v2805_v25  ;;  %v3702_v30 = vadd.f32 %v10336_v8, %v3701_v26 }
 0x1b1   : > { %v8082_v31 = vpack.c.bf16 %v4379_v21, %v4379_v21  ;;  %v8306_v32 = vpack.c.bf16 %v4603_v22, %v4603_v22  ;;  %v4380_v33 = vmax.f32 %v2814_v23, 0.0  ;;  %v4604_v34 = vmax.f32 %v3710_v24, 0.0  ;;  %8867 = vmatmul.mubr.msk.bf16.gmra.mrb[180].mxu0 %vm1800_vm2, %v9409_v13  ;;  %9091 = vmatmul.mubr.msk.bf16.gmra.mrb[180].mxu1 %vm1800_vm2, %v9410_v14  ;;  %v9417_v22 = vld [vmem:[%s9744_s21 + $0x2f8] sm:$0xff]  }
 0x1b2   : > { %v8080_v35 = vpack.c.bf16 %v4377_v27, %v4377_v27  ;;  %v8304_v36 = vpack.c.bf16 %v4601_v28, %v4601_v28  ;;  %v4378_v37 = vmax.f32 %v2806_v29, 0.0  ;;  %v4602_v38 = vmax.f32 %v3702_v30, 0.0  ;;  %8870 = vmatprep.mubr.msk.bf16.mxu0 %vm1800_vm2, %v9411_v19  ;;  %9094 = vmatprep.mubr.msk.bf16.mxu1 %vm1800_vm2, %v9412_v20  ;;  %v9418_v23 = vld [vmem:[%s9744_s21 + $0x678] sm:$0xff]   ;;  %v9419_v28 = vld [vmem:[%s9744_s21 + $0x300] sm:$0xff]  }
 0x1b3   : > { %6620 = vst.msk [vmem:[%s9999_s25 + $0x128] sm:$0xf] %vm6545_vm3, %v8082_v31  ;;  %6844 = vst.msk [vmem:[%s9999_s25 + $0x4a8] sm:$0xf] %vm6545_vm3, %v8306_v32  ;;  %v8083_v39 = vpack.c.bf16 %v4380_v33, %v4380_v33  ;;  %v8307_v40 = vpack.c.bf16 %v4604_v34, %v4604_v34  ;;  %v9420_v29 = vld [vmem:[%s9744_s21 + $0x680] sm:$0xff]  }
 0x1b4   : > { %6618 = vst.msk [vmem:[%s9999_s25 + $0x120] sm:$0xf] %vm6545_vm3, %v8080_v35  ;;  %6842 = vst.msk [vmem:[%s9999_s25 + $0x4a0] sm:$0xf] %vm6545_vm3, %v8304_v36  ;;  %v8081_v41 = vpack.c.bf16 %v4378_v37, %v4378_v37  ;;  %v8305_v42 = vpack.c.bf16 %v4602_v38, %v4602_v38  ;;  %v8764_v43 = vpop.f32.mrb[76].mxu0  ;;  %v8988_v44 = vpop.f32.mrb[76].mxu1 }
 0x1b5   : > { %6621 = vst.msk [vmem:[%s9999_s25 + $0x12c] sm:$0xf] %vm6545_vm3, %v8083_v39  ;;  %6845 = vst.msk [vmem:[%s9999_s25 + $0x4ac] sm:$0xf] %vm6545_vm3, %v8307_v40  ;;  %v2827_v45 = vadd.f32 %v10336_v8, %v8764_v43  ;;  %v3723_v46 = vadd.f32 %v10336_v8, %v8988_v44  ;;  %v2818_v47 = vpop.f32.mrb[77].mxu0  ;;  %v3714_v48 = vpop.f32.mrb[77].mxu1 }
 0x1b6   : > { %6619 = vst.msk [vmem:[%s9999_s25 + $0x124] sm:$0xf] %vm6545_vm3, %v8081_v41  ;;  %6843 = vst.msk [vmem:[%s9999_s25 + $0x4a4] sm:$0xf] %vm6545_vm3, %v8305_v42  ;;  %v2819_v51 = vadd.f32 %v10336_v8, %v2818_v47  ;;  %v3715_v53 = vadd.f32 %v10336_v8, %v3714_v48  ;;  %v8765_v54 = vpop.f32.mrb[78].mxu0  ;;  %v8989_v55 = vpop.f32.mrb[78].mxu1 }
 0x1b7   : > { %v4383_v58 = vmax.f32 %v2827_v45, 0.0  ;;  %v4607_v59 = vmax.f32 %v3723_v46, 0.0  ;;  %v2830_v60 = vadd.f32 %v10336_v8, %v8765_v54  ;;  %v3726_v61 = vadd.f32 %v10336_v8, %v8989_v55  ;;  %v2821_v62 = vpop.f32.mrb[79].mxu0  ;;  %v3717_v63 = vpop.f32.mrb[79].mxu1 }
 0x1b8   : > { %v4381_v0 = vmax.f32 %v2819_v51, 0.0  ;;  %v4605_v1 = vmax.f32 %v3715_v53, 0.0  ;;  %v2822_v2 = vadd.f32 %v10336_v8, %v2821_v62  ;;  %v3718_v52 = vadd.f32 %v10336_v8, %v3717_v63 }
 0x1b9   : > { %v8086_v3 = vpack.c.bf16 %v4383_v58, %v4383_v58  ;;  %v8310_v4 = vpack.c.bf16 %v4607_v59, %v4607_v59  ;;  %v4384_v5 = vmax.f32 %v2830_v60, 0.0  ;;  %v4608_v6 = vmax.f32 %v3726_v61, 0.0  ;;  %8871 = vmatmul.mubr.msk.bf16.gmra.mrb[184].mxu0 %vm1800_vm2, %v9413_v49  ;;  %9095 = vmatmul.mubr.msk.bf16.gmra.mrb[184].mxu1 %vm1800_vm2, %v9414_v50  ;;  %v9421_v59 = vld [vmem:[%s9744_s21 + $0x308] sm:$0xff]  }
 0x1ba   : > { %v8084_v7 = vpack.c.bf16 %v4381_v0, %v4381_v0  ;;  %v8308_v9 = vpack.c.bf16 %v4605_v1, %v4605_v1  ;;  %v4382_v10 = vmax.f32 %v2822_v2, 0.0  ;;  %v4606_v11 = vmax.f32 %v3718_v52, 0.0  ;;  %8874 = vmatprep.mubr.msk.bf16.mxu0 %vm1800_vm2, %v9415_v56  ;;  %9098 = vmatprep.mubr.msk.bf16.mxu1 %vm1800_vm2, %v9416_v57  ;;  %v9422_v60 = vld [vmem:[%s9744_s21 + $0x688] sm:$0xff]   ;;  %v9423_v1 = vld [vmem:[%s9744_s21 + $0x310] sm:$0xff]  }
 0x1bb   : > { %6624 = vst.msk [vmem:[%s9999_s25 + $0x138] sm:$0xf] %vm6545_vm3, %v8086_v3  ;;  %6848 = vst.msk [vmem:[%s9999_s25 + $0x4b8] sm:$0xf] %vm6545_vm3, %v8310_v4  ;;  %v8087_v12 = vpack.c.bf16 %v4384_v5, %v4384_v5  ;;  %v8311_v13 = vpack.c.bf16 %v4608_v6, %v4608_v6  ;;  %v9424_v2 = vld [vmem:[%s9744_s21 + $0x690] sm:$0xff]  }
 0x1bc   : > { %6622 = vst.msk [vmem:[%s9999_s25 + $0x130] sm:$0xf] %vm6545_vm3, %v8084_v7  ;;  %6846 = vst.msk [vmem:[%s9999_s25 + $0x4b0] sm:$0xf] %vm6545_vm3, %v8308_v9  ;;  %v8085_v14 = vpack.c.bf16 %v4382_v10, %v4382_v10  ;;  %v8309_v15 = vpack.c.bf16 %v4606_v11, %v4606_v11  ;;  %v8768_v16 = vpop.f32.mrb[80].mxu0  ;;  %v8992_v17 = vpop.f32.mrb[80].mxu1 }
 0x1bd   : > { %6625 = vst.msk [vmem:[%s9999_s25 + $0x13c] sm:$0xf] %vm6545_vm3, %v8087_v12  ;;  %6849 = vst.msk [vmem:[%s9999_s25 + $0x4bc] sm:$0xf] %vm6545_vm3, %v8311_v13  ;;  %v2843_v18 = vadd.f32 %v10336_v8, %v8768_v16  ;;  %v3739_v19 = vadd.f32 %v10336_v8, %v8992_v17  ;;  %v2834_v20 = vpop.f32.mrb[81].mxu0  ;;  %v3730_v21 = vpop.f32.mrb[81].mxu1 }
 0x1be   : > { %6623 = vst.msk [vmem:[%s9999_s25 + $0x134] sm:$0xf] %vm6545_vm3, %v8085_v14  ;;  %6847 = vst.msk [vmem:[%s9999_s25 + $0x4b4] sm:$0xf] %vm6545_vm3, %v8309_v15  ;;  %v2835_v24 = vadd.f32 %v10336_v8, %v2834_v20  ;;  %v3731_v25 = vadd.f32 %v10336_v8, %v3730_v21  ;;  %v8769_v26 = vpop.f32.mrb[82].mxu0  ;;  %v8993_v27 = vpop.f32.mrb[82].mxu1 }
 0x1bf   : > { %v4387_v30 = vmax.f32 %v2843_v18, 0.0  ;;  %v4611_v31 = vmax.f32 %v3739_v19, 0.0  ;;  %v2846_v32 = vadd.f32 %v10336_v8, %v8769_v26  ;;  %v3742_v33 = vadd.f32 %v10336_v8, %v8993_v27  ;;  %v2837_v34 = vpop.f32.mrb[83].mxu0  ;;  %v3733_v35 = vpop.f32.mrb[83].mxu1  ;;  %v10693_v26 = vld [vmem:[%s11644_s2] ss:$0 sm:$0xff] }
 0x1c0   : > { %v4385_v36 = vmax.f32 %v2835_v24, 0.0  ;;  %v4609_v37 = vmax.f32 %v3731_v25, 0.0  ;;  %v2838_v38 = vadd.f32 %v10336_v8, %v2837_v34  ;;  %v3734_v39 = vadd.f32 %v10336_v8, %v3733_v35 }
 0x1c1   : > { %v8090_v40 = vpack.c.bf16 %v4387_v30, %v4387_v30  ;;  %v8314_v41 = vpack.c.bf16 %v4611_v31, %v4611_v31  ;;  %v4388_v42 = vmax.f32 %v2846_v32, 0.0  ;;  %v4612_v43 = vmax.f32 %v3742_v33, 0.0  ;;  %8875 = vmatmul.mubr.msk.bf16.gmra.mrb[188].mxu0 %vm1800_vm2, %v9417_v22  ;;  %9099 = vmatmul.mubr.msk.bf16.gmra.mrb[188].mxu1 %vm1800_vm2, %v9418_v23  ;;  %v9425_v31 = vld [vmem:[%s9744_s21 + $0x318] sm:$0xff]  }
 0x1c2   : > { %v8088_v44 = vpack.c.bf16 %v4385_v36, %v4385_v36  ;;  %v8312_v45 = vpack.c.bf16 %v4609_v37, %v4609_v37  ;;  %v4386_v46 = vmax.f32 %v2838_v38, 0.0  ;;  %v4610_v47 = vmax.f32 %v3734_v39, 0.0  ;;  %8878 = vmatprep.mubr.msk.bf16.mxu0 %vm1800_vm2, %v9419_v28  ;;  %9102 = vmatprep.mubr.msk.bf16.mxu1 %vm1800_vm2, %v9420_v29  ;;  %v9426_v32 = vld [vmem:[%s9744_s21 + $0x698] sm:$0xff]   ;;  %v9427_v37 = vld [vmem:[%s9744_s21 + $0x320] sm:$0xff]  }
 0x1c3   : > { %6628 = vst.msk [vmem:[%s9999_s25 + $0x148] sm:$0xf] %vm6545_vm3, %v8090_v40  ;;  %6852 = vst.msk [vmem:[%s9999_s25 + $0x4c8] sm:$0xf] %vm6545_vm3, %v8314_v41  ;;  %v8091_v48 = vpack.c.bf16 %v4388_v42, %v4388_v42  ;;  %v8315_v49 = vpack.c.bf16 %v4612_v43, %v4612_v43  ;;  %v9428_v38 = vld [vmem:[%s9744_s21 + $0x6a0] sm:$0xff]  }
 0x1c4   : > { %6626 = vst.msk [vmem:[%s9999_s25 + $0x140] sm:$0xf] %vm6545_vm3, %v8088_v44  ;;  %6850 = vst.msk [vmem:[%s9999_s25 + $0x4c0] sm:$0xf] %vm6545_vm3, %v8312_v45  ;;  %v8089_v50 = vpack.c.bf16 %v4386_v46, %v4386_v46  ;;  %v8313_v51 = vpack.c.bf16 %v4610_v47, %v4610_v47  ;;  %v8772_v53 = vpop.f32.mrb[84].mxu0  ;;  %v8996_v54 = vpop.f32.mrb[84].mxu1 }
 0x1c5   : > { %6629 = vst.msk [vmem:[%s9999_s25 + $0x14c] sm:$0xf] %vm6545_vm3, %v8091_v48  ;;  %6853 = vst.msk [vmem:[%s9999_s25 + $0x4cc] sm:$0xf] %vm6545_vm3, %v8315_v49  ;;  %v2859_v55 = vadd.f32 %v10336_v8, %v8772_v53  ;;  %v3755_v56 = vadd.f32 %v10336_v8, %v8996_v54  ;;  %v2850_v57 = vpop.f32.mrb[85].mxu0  ;;  %v3746_v58 = vpop.f32.mrb[85].mxu1 }
 0x1c6   : > { %6627 = vst.msk [vmem:[%s9999_s25 + $0x144] sm:$0xf] %vm6545_vm3, %v8089_v50  ;;  %6851 = vst.msk [vmem:[%s9999_s25 + $0x4c4] sm:$0xf] %vm6545_vm3, %v8313_v51  ;;  %v2851_v61 = vadd.f32 %v10336_v8, %v2850_v57  ;;  %v3747_v62 = vadd.f32 %v10336_v8, %v3746_v58  ;;  %v8773_v63 = vpop.f32.mrb[86].mxu0  ;;  %v8997_v0 = vpop.f32.mrb[86].mxu1 }
 0x1c7   : > { %v4391_v52 = vmax.f32 %v2859_v55, 0.0  ;;  %v4615_v3 = vmax.f32 %v3755_v56, 0.0  ;;  %v2862_v4 = vadd.f32 %v10336_v8, %v8773_v63  ;;  %v3758_v5 = vadd.f32 %v10336_v8, %v8997_v0  ;;  %v2853_v6 = vpop.f32.mrb[87].mxu0  ;;  %v3749_v7 = vpop.f32.mrb[87].mxu1 }
 0x1c8   : > { %v4389_v9 = vmax.f32 %v2851_v61, 0.0  ;;  %v4613_v10 = vmax.f32 %v3747_v62, 0.0  ;;  %v2854_v11 = vadd.f32 %v10336_v8, %v2853_v6  ;;  %v3750_v12 = vadd.f32 %v10336_v8, %v3749_v7 }
 0x1c9   : > { %v8094_v13 = vpack.c.bf16 %v4391_v52, %v4391_v52  ;;  %v8318_v14 = vpack.c.bf16 %v4615_v3, %v4615_v3  ;;  %v4392_v15 = vmax.f32 %v2862_v4, 0.0  ;;  %v4616_v16 = vmax.f32 %v3758_v5, 0.0  ;;  %8879 = vmatmul.mubr.msk.bf16.gmra.mrb[192].mxu0 %vm1800_vm2, %v9421_v59  ;;  %9103 = vmatmul.mubr.msk.bf16.gmra.mrb[192].mxu1 %vm1800_vm2, %v9422_v60  ;;  %v9429_v3 = vld [vmem:[%s9744_s21 + $0x328] sm:$0xff]  }
 0x1ca   : > { %v8092_v17 = vpack.c.bf16 %v4389_v9, %v4389_v9  ;;  %v8316_v18 = vpack.c.bf16 %v4613_v10, %v4613_v10  ;;  %v4390_v19 = vmax.f32 %v2854_v11, 0.0  ;;  %v4614_v20 = vmax.f32 %v3750_v12, 0.0  ;;  %8882 = vmatprep.mubr.msk.bf16.mxu0 %vm1800_vm2, %v9423_v1  ;;  %9106 = vmatprep.mubr.msk.bf16.mxu1 %vm1800_vm2, %v9424_v2  ;;  %v9430_v4 = vld [vmem:[%s9744_s21 + $0x6a8] sm:$0xff]   ;;  %v9431_v10 = vld [vmem:[%s9744_s21 + $0x330] sm:$0xff]  }
 0x1cb   : > { %6632 = vst.msk [vmem:[%s9999_s25 + $0x158] sm:$0xf] %vm6545_vm3, %v8094_v13  ;;  %6856 = vst.msk [vmem:[%s9999_s25 + $0x4d8] sm:$0xf] %vm6545_vm3, %v8318_v14  ;;  %v8095_v8 = vpack.c.bf16 %v4392_v15, %v4392_v15  ;;  %v8319_v21 = vpack.c.bf16 %v4616_v16, %v4616_v16  ;;  %v9432_v11 = vld [vmem:[%s9744_s21 + $0x6b0] sm:$0xff]  }
 0x1cc   : > { %6630 = vst.msk [vmem:[%s9999_s25 + $0x150] sm:$0xf] %vm6545_vm3, %v8092_v17  ;;  %6854 = vst.msk [vmem:[%s9999_s25 + $0x4d0] sm:$0xf] %vm6545_vm3, %v8316_v18  ;;  %v8093_v22 = vpack.c.bf16 %v4390_v19, %v4390_v19  ;;  %v8317_v23 = vpack.c.bf16 %v4614_v20, %v4614_v20  ;;  %v8776_v24 = vpop.f32.mrb[88].mxu0  ;;  %v9000_v25 = vpop.f32.mrb[88].mxu1 }
 0x1cd   : > { %6633 = vst.msk [vmem:[%s9999_s25 + $0x15c] sm:$0xf] %vm6545_vm3, %v8095_v8  ;;  %6857 = vst.msk [vmem:[%s9999_s25 + $0x4dc] sm:$0xf] %vm6545_vm3, %v8319_v21  ;;  %v2875_v27 = vadd.f32 %v10693_v26, %v8776_v24  ;;  %v3771_v28 = vadd.f32 %v10693_v26, %v9000_v25  ;;  %v2866_v29 = vpop.f32.mrb[89].mxu0  ;;  %v3762_v30 = vpop.f32.mrb[89].mxu1 }
 0x1ce   : > { %6631 = vst.msk [vmem:[%s9999_s25 + $0x154] sm:$0xf] %vm6545_vm3, %v8093_v22  ;;  %6855 = vst.msk [vmem:[%s9999_s25 + $0x4d4] sm:$0xf] %vm6545_vm3, %v8317_v23  ;;  %v2867_v33 = vadd.f32 %v10693_v26, %v2866_v29  ;;  %v3763_v34 = vadd.f32 %v10693_v26, %v3762_v30  ;;  %v8777_v35 = vpop.f32.mrb[90].mxu0  ;;  %v9001_v36 = vpop.f32.mrb[90].mxu1 }
 0x1cf   : > { %v4395_v39 = vmax.f32 %v2875_v27, 0.0  ;;  %v4619_v40 = vmax.f32 %v3771_v28, 0.0  ;;  %v2878_v41 = vadd.f32 %v10693_v26, %v8777_v35  ;;  %v3774_v42 = vadd.f32 %v10693_v26, %v9001_v36  ;;  %v2869_v43 = vpop.f32.mrb[91].mxu0  ;;  %v3765_v44 = vpop.f32.mrb[91].mxu1 }
 0x1d0   : > { %v4393_v45 = vmax.f32 %v2867_v33, 0.0  ;;  %v4617_v46 = vmax.f32 %v3763_v34, 0.0  ;;  %v2870_v47 = vadd.f32 %v10693_v26, %v2869_v43  ;;  %v3766_v48 = vadd.f32 %v10693_v26, %v3765_v44 }
 0x1d1   : > { %v8098_v49 = vpack.c.bf16 %v4395_v39, %v4395_v39  ;;  %v8322_v50 = vpack.c.bf16 %v4619_v40, %v4619_v40  ;;  %v4396_v51 = vmax.f32 %v2878_v41, 0.0  ;;  %v4620_v53 = vmax.f32 %v3774_v42, 0.0  ;;  %8883 = vmatmul.mubr.msk.bf16.gmra.mrb[196].mxu0 %vm1800_vm2, %v9425_v31  ;;  %9107 = vmatmul.mubr.msk.bf16.gmra.mrb[196].mxu1 %vm1800_vm2, %v9426_v32  ;;  %v9433_v40 = vld [vmem:[%s9744_s21 + $0x338] sm:$0xff]  }
 0x1d2   : > { %v8096_v54 = vpack.c.bf16 %v4393_v45, %v4393_v45  ;;  %v8320_v55 = vpack.c.bf16 %v4617_v46, %v4617_v46  ;;  %v4394_v56 = vmax.f32 %v2870_v47, 0.0  ;;  %v4618_v57 = vmax.f32 %v3766_v48, 0.0  ;;  %8886 = vmatprep.mubr.msk.bf16.mxu0 %vm1800_vm2, %v9427_v37  ;;  %9110 = vmatprep.mubr.msk.bf16.mxu1 %vm1800_vm2, %v9428_v38  ;;  %v9434_v41 = vld [vmem:[%s9744_s21 + $0x6b8] sm:$0xff]   ;;  %v9435_v46 = vld [vmem:[%s9744_s21 + $0x340] sm:$0xff]  }
 0x1d3   : > { %6636 = vst.msk [vmem:[%s9999_s25 + $0x168] sm:$0xf] %vm6545_vm3, %v8098_v49  ;;  %6860 = vst.msk [vmem:[%s9999_s25 + $0x4e8] sm:$0xf] %vm6545_vm3, %v8322_v50  ;;  %v8099_v58 = vpack.c.bf16 %v4396_v51, %v4396_v51  ;;  %v8323_v59 = vpack.c.bf16 %v4620_v53, %v4620_v53  ;;  %v9436_v47 = vld [vmem:[%s9744_s21 + $0x6c0] sm:$0xff]  }
 0x1d4   : > { %6634 = vst.msk [vmem:[%s9999_s25 + $0x160] sm:$0xf] %vm6545_vm3, %v8096_v54  ;;  %6858 = vst.msk [vmem:[%s9999_s25 + $0x4e0] sm:$0xf] %vm6545_vm3, %v8320_v55  ;;  %v8097_v60 = vpack.c.bf16 %v4394_v56, %v4394_v56  ;;  %v8321_v61 = vpack.c.bf16 %v4618_v57, %v4618_v57  ;;  %v8780_v62 = vpop.f32.mrb[92].mxu0  ;;  %v9004_v63 = vpop.f32.mrb[92].mxu1 }
 0x1d5   : > { %6637 = vst.msk [vmem:[%s9999_s25 + $0x16c] sm:$0xf] %vm6545_vm3, %v8099_v58  ;;  %6861 = vst.msk [vmem:[%s9999_s25 + $0x4ec] sm:$0xf] %vm6545_vm3, %v8323_v59  ;;  %v2891_v0 = vadd.f32 %v10693_v26, %v8780_v62  ;;  %v3787_v1 = vadd.f32 %v10693_v26, %v9004_v63  ;;  %v2882_v2 = vpop.f32.mrb[93].mxu0  ;;  %v3778_v52 = vpop.f32.mrb[93].mxu1 }
 0x1d6   : > { %6635 = vst.msk [vmem:[%s9999_s25 + $0x164] sm:$0xf] %vm6545_vm3, %v8097_v60  ;;  %6859 = vst.msk [vmem:[%s9999_s25 + $0x4e4] sm:$0xf] %vm6545_vm3, %v8321_v61  ;;  %v2883_v5 = vadd.f32 %v10693_v26, %v2882_v2  ;;  %v3779_v6 = vadd.f32 %v10693_v26, %v3778_v52  ;;  %v8781_v7 = vpop.f32.mrb[94].mxu0  ;;  %v9005_v9 = vpop.f32.mrb[94].mxu1 }
 0x1d7   : > { %v4399_v12 = vmax.f32 %v2891_v0, 0.0  ;;  %v4623_v13 = vmax.f32 %v3787_v1, 0.0  ;;  %v2894_v14 = vadd.f32 %v10693_v26, %v8781_v7  ;;  %v3790_v15 = vadd.f32 %v10693_v26, %v9005_v9  ;;  %v2885_v16 = vpop.f32.mrb[95].mxu0  ;;  %v3781_v17 = vpop.f32.mrb[95].mxu1 }
 0x1d8   : > { %v4397_v18 = vmax.f32 %v2883_v5, 0.0  ;;  %v4621_v19 = vmax.f32 %v3779_v6, 0.0  ;;  %v2886_v20 = vadd.f32 %v10693_v26, %v2885_v16  ;;  %v3782_v8 = vadd.f32 %v10693_v26, %v3781_v17 }
 0x1d9   : > { %v8102_v21 = vpack.c.bf16 %v4399_v12, %v4399_v12  ;;  %v8326_v22 = vpack.c.bf16 %v4623_v13, %v4623_v13  ;;  %v4400_v23 = vmax.f32 %v2894_v14, 0.0  ;;  %v4624_v24 = vmax.f32 %v3790_v15, 0.0  ;;  %8887 = vmatmul.mubr.msk.bf16.gmra.mrb[200].mxu0 %vm1800_vm2, %v9429_v3  ;;  %9111 = vmatmul.mubr.msk.bf16.gmra.mrb[200].mxu1 %vm1800_vm2, %v9430_v4  ;;  %v9437_v13 = vld [vmem:[%s9744_s21 + $0x348] sm:$0xff]  }
 0x1da   : > { %v8100_v25 = vpack.c.bf16 %v4397_v18, %v4397_v18  ;;  %v8324_v27 = vpack.c.bf16 %v4621_v19, %v4621_v19  ;;  %v4398_v28 = vmax.f32 %v2886_v20, 0.0  ;;  %v4622_v29 = vmax.f32 %v3782_v8, 0.0  ;;  %8890 = vmatprep.mubr.msk.bf16.mxu0 %vm1800_vm2, %v9431_v10  ;;  %9114 = vmatprep.mubr.msk.bf16.mxu1 %vm1800_vm2, %v9432_v11  ;;  %v9438_v14 = vld [vmem:[%s9744_s21 + $0x6c8] sm:$0xff]   ;;  %v9439_v19 = vld [vmem:[%s9744_s21 + $0x350] sm:$0xff]  }
 0x1db   : > { %6640 = vst.msk [vmem:[%s9999_s25 + $0x178] sm:$0xf] %vm6545_vm3, %v8102_v21  ;;  %6864 = vst.msk [vmem:[%s9999_s25 + $0x4f8] sm:$0xf] %vm6545_vm3, %v8326_v22  ;;  %v8103_v30 = vpack.c.bf16 %v4400_v23, %v4400_v23  ;;  %v8327_v31 = vpack.c.bf16 %v4624_v24, %v4624_v24  ;;  %v9440_v20 = vld [vmem:[%s9744_s21 + $0x6d0] sm:$0xff]  }
 0x1dc   : > { %6638 = vst.msk [vmem:[%s9999_s25 + $0x170] sm:$0xf] %vm6545_vm3, %v8100_v25  ;;  %6862 = vst.msk [vmem:[%s9999_s25 + $0x4f0] sm:$0xf] %vm6545_vm3, %v8324_v27  ;;  %v8101_v32 = vpack.c.bf16 %v4398_v28, %v4398_v28  ;;  %v8325_v33 = vpack.c.bf16 %v4622_v29, %v4622_v29  ;;  %v8784_v34 = vpop.f32.mrb[96].mxu0  ;;  %v9008_v35 = vpop.f32.mrb[96].mxu1 }
 0x1dd   : > { %6641 = vst.msk [vmem:[%s9999_s25 + $0x17c] sm:$0xf] %vm6545_vm3, %v8103_v30  ;;  %6865 = vst.msk [vmem:[%s9999_s25 + $0x4fc] sm:$0xf] %vm6545_vm3, %v8327_v31  ;;  %v2907_v36 = vadd.f32 %v10693_v26, %v8784_v34  ;;  %v3803_v37 = vadd.f32 %v10693_v26, %v9008_v35  ;;  %v2898_v38 = vpop.f32.mrb[97].mxu0  ;;  %v3794_v39 = vpop.f32.mrb[97].mxu1 }
 0x1de   : > { %6639 = vst.msk [vmem:[%s9999_s25 + $0x174] sm:$0xf] %vm6545_vm3, %v8101_v32  ;;  %6863 = vst.msk [vmem:[%s9999_s25 + $0x4f4] sm:$0xf] %vm6545_vm3, %v8325_v33  ;;  %v2899_v42 = vadd.f32 %v10693_v26, %v2898_v38  ;;  %v3795_v43 = vadd.f32 %v10693_v26, %v3794_v39  ;;  %v8785_v44 = vpop.f32.mrb[98].mxu0  ;;  %v9009_v45 = vpop.f32.mrb[98].mxu1 }
 0x1df   : > { %v4403_v48 = vmax.f32 %v2907_v36, 0.0  ;;  %v4627_v49 = vmax.f32 %v3803_v37, 0.0  ;;  %v2910_v50 = vadd.f32 %v10693_v26, %v8785_v44  ;;  %v3806_v51 = vadd.f32 %v10693_v26, %v9009_v45  ;;  %v2901_v53 = vpop.f32.mrb[99].mxu0  ;;  %v3797_v54 = vpop.f32.mrb[99].mxu1 }
 0x1e0   : > { %v4401_v55 = vmax.f32 %v2899_v42, 0.0  ;;  %v4625_v56 = vmax.f32 %v3795_v43, 0.0  ;;  %v2902_v57 = vadd.f32 %v10693_v26, %v2901_v53  ;;  %v3798_v58 = vadd.f32 %v10693_v26, %v3797_v54 }
 0x1e1   : > { %v8106_v59 = vpack.c.bf16 %v4403_v48, %v4403_v48  ;;  %v8330_v60 = vpack.c.bf16 %v4627_v49, %v4627_v49  ;;  %v4404_v61 = vmax.f32 %v2910_v50, 0.0  ;;  %v4628_v62 = vmax.f32 %v3806_v51, 0.0  ;;  %8891 = vmatmul.mubr.msk.bf16.gmra.mrb[204].mxu0 %vm1800_vm2, %v9433_v40  ;;  %9115 = vmatmul.mubr.msk.bf16.gmra.mrb[204].mxu1 %vm1800_vm2, %v9434_v41  ;;  %v9441_v49 = vld [vmem:[%s9744_s21 + $0x358] sm:$0xff]  }
 0x1e2   : > { %v8104_v63 = vpack.c.bf16 %v4401_v55, %v4401_v55  ;;  %v8328_v0 = vpack.c.bf16 %v4625_v56, %v4625_v56  ;;  %v4402_v1 = vmax.f32 %v2902_v57, 0.0  ;;  %v4626_v2 = vmax.f32 %v3798_v58, 0.0  ;;  %8894 = vmatprep.mubr.msk.bf16.mxu0 %vm1800_vm2, %v9435_v46  ;;  %9118 = vmatprep.mubr.msk.bf16.mxu1 %vm1800_vm2, %v9436_v47  ;;  %v9442_v50 = vld [vmem:[%s9744_s21 + $0x6d8] sm:$0xff]   ;;  %v9443_v56 = vld [vmem:[%s9744_s21 + $0x360] sm:$0xff]  }
 0x1e3   : > { %6644 = vst.msk [vmem:[%s9999_s25 + $0x188] sm:$0xf] %vm6545_vm3, %v8106_v59  ;;  %6868 = vst.msk [vmem:[%s9999_s25 + $0x508] sm:$0xf] %vm6545_vm3, %v8330_v60  ;;  %v8107_v52 = vpack.c.bf16 %v4404_v61, %v4404_v61  ;;  %v8331_v3 = vpack.c.bf16 %v4628_v62, %v4628_v62  ;;  %v9444_v57 = vld [vmem:[%s9744_s21 + $0x6e0] sm:$0xff]  }
 0x1e4   : > { %6642 = vst.msk [vmem:[%s9999_s25 + $0x180] sm:$0xf] %vm6545_vm3, %v8104_v63  ;;  %6866 = vst.msk [vmem:[%s9999_s25 + $0x500] sm:$0xf] %vm6545_vm3, %v8328_v0  ;;  %v8105_v4 = vpack.c.bf16 %v4402_v1, %v4402_v1  ;;  %v8329_v5 = vpack.c.bf16 %v4626_v2, %v4626_v2  ;;  %v8788_v6 = vpop.f32.mrb[100].mxu0  ;;  %v9012_v7 = vpop.f32.mrb[100].mxu1 }
 0x1e5   : > { %6645 = vst.msk [vmem:[%s9999_s25 + $0x18c] sm:$0xf] %vm6545_vm3, %v8107_v52  ;;  %6869 = vst.msk [vmem:[%s9999_s25 + $0x50c] sm:$0xf] %vm6545_vm3, %v8331_v3  ;;  %v2923_v9 = vadd.f32 %v10693_v26, %v8788_v6  ;;  %v3819_v10 = vadd.f32 %v10693_v26, %v9012_v7  ;;  %v2914_v11 = vpop.f32.mrb[101].mxu0  ;;  %v3810_v12 = vpop.f32.mrb[101].mxu1 }
 0x1e6   : > { %6643 = vst.msk [vmem:[%s9999_s25 + $0x184] sm:$0xf] %vm6545_vm3, %v8105_v4  ;;  %6867 = vst.msk [vmem:[%s9999_s25 + $0x504] sm:$0xf] %vm6545_vm3, %v8329_v5  ;;  %v2915_v15 = vadd.f32 %v10693_v26, %v2914_v11  ;;  %v3811_v16 = vadd.f32 %v10693_v26, %v3810_v12  ;;  %v8789_v17 = vpop.f32.mrb[102].mxu0  ;;  %v9013_v18 = vpop.f32.mrb[102].mxu1 }
 0x1e7   : > { %v4407_v8 = vmax.f32 %v2923_v9, 0.0  ;;  %v4631_v21 = vmax.f32 %v3819_v10, 0.0  ;;  %v2926_v22 = vadd.f32 %v10693_v26, %v8789_v17  ;;  %v3822_v23 = vadd.f32 %v10693_v26, %v9013_v18  ;;  %v2917_v24 = vpop.f32.mrb[103].mxu0  ;;  %v3813_v25 = vpop.f32.mrb[103].mxu1 }
 0x1e8   : > { %v4405_v27 = vmax.f32 %v2915_v15, 0.0  ;;  %v4629_v28 = vmax.f32 %v3811_v16, 0.0  ;;  %v2918_v29 = vadd.f32 %v10693_v26, %v2917_v24  ;;  %v3814_v30 = vadd.f32 %v10693_v26, %v3813_v25 }
 0x1e9   : > { %v8110_v31 = vpack.c.bf16 %v4407_v8, %v4407_v8  ;;  %v8334_v32 = vpack.c.bf16 %v4631_v21, %v4631_v21  ;;  %v4408_v33 = vmax.f32 %v2926_v22, 0.0  ;;  %v4632_v34 = vmax.f32 %v3822_v23, 0.0  ;;  %8895 = vmatmul.mubr.msk.bf16.gmra.mrb[208].mxu0 %vm1800_vm2, %v9437_v13  ;;  %9119 = vmatmul.mubr.msk.bf16.gmra.mrb[208].mxu1 %vm1800_vm2, %v9438_v14  ;;  %v9445_v21 = vld [vmem:[%s9744_s21 + $0x368] sm:$0xff]  }
 0x1ea   : > { %v8108_v35 = vpack.c.bf16 %v4405_v27, %v4405_v27  ;;  %v8332_v36 = vpack.c.bf16 %v4629_v28, %v4629_v28  ;;  %v4406_v37 = vmax.f32 %v2918_v29, 0.0  ;;  %v4630_v38 = vmax.f32 %v3814_v30, 0.0  ;;  %8898 = vmatprep.mubr.msk.bf16.mxu0 %vm1800_vm2, %v9439_v19  ;;  %9122 = vmatprep.mubr.msk.bf16.mxu1 %vm1800_vm2, %v9440_v20  ;;  %v9446_v22 = vld [vmem:[%s9744_s21 + $0x6e8] sm:$0xff]   ;;  %v9447_v28 = vld [vmem:[%s9744_s21 + $0x370] sm:$0xff]  }
 0x1eb   : > { %6648 = vst.msk [vmem:[%s9999_s25 + $0x198] sm:$0xf] %vm6545_vm3, %v8110_v31  ;;  %6872 = vst.msk [vmem:[%s9999_s25 + $0x518] sm:$0xf] %vm6545_vm3, %v8334_v32  ;;  %v8111_v39 = vpack.c.bf16 %v4408_v33, %v4408_v33  ;;  %v8335_v40 = vpack.c.bf16 %v4632_v34, %v4632_v34  ;;  %v9448_v29 = vld [vmem:[%s9744_s21 + $0x6f0] sm:$0xff]  }
 0x1ec   : > { %6646 = vst.msk [vmem:[%s9999_s25 + $0x190] sm:$0xf] %vm6545_vm3, %v8108_v35  ;;  %6870 = vst.msk [vmem:[%s9999_s25 + $0x510] sm:$0xf] %vm6545_vm3, %v8332_v36  ;;  %v8109_v41 = vpack.c.bf16 %v4406_v37, %v4406_v37  ;;  %v8333_v42 = vpack.c.bf16 %v4630_v38, %v4630_v38  ;;  %v8792_v43 = vpop.f32.mrb[104].mxu0  ;;  %v9016_v44 = vpop.f32.mrb[104].mxu1 }
 0x1ed   : > { %6649 = vst.msk [vmem:[%s9999_s25 + $0x19c] sm:$0xf] %vm6545_vm3, %v8111_v39  ;;  %6873 = vst.msk [vmem:[%s9999_s25 + $0x51c] sm:$0xf] %vm6545_vm3, %v8335_v40  ;;  %v2939_v45 = vadd.f32 %v10693_v26, %v8792_v43  ;;  %v3835_v46 = vadd.f32 %v10693_v26, %v9016_v44  ;;  %v2930_v47 = vpop.f32.mrb[105].mxu0  ;;  %v3826_v48 = vpop.f32.mrb[105].mxu1 }
 0x1ee   : > { %6647 = vst.msk [vmem:[%s9999_s25 + $0x194] sm:$0xf] %vm6545_vm3, %v8109_v41  ;;  %6871 = vst.msk [vmem:[%s9999_s25 + $0x514] sm:$0xf] %vm6545_vm3, %v8333_v42  ;;  %v2931_v51 = vadd.f32 %v10693_v26, %v2930_v47  ;;  %v3827_v53 = vadd.f32 %v10693_v26, %v3826_v48  ;;  %v8793_v54 = vpop.f32.mrb[106].mxu0  ;;  %v9017_v55 = vpop.f32.mrb[106].mxu1 }
 0x1ef   : > { %v4411_v58 = vmax.f32 %v2939_v45, 0.0  ;;  %v4635_v59 = vmax.f32 %v3835_v46, 0.0  ;;  %v2942_v60 = vadd.f32 %v10693_v26, %v8793_v54  ;;  %v3838_v61 = vadd.f32 %v10693_v26, %v9017_v55  ;;  %v2933_v62 = vpop.f32.mrb[107].mxu0  ;;  %v3829_v63 = vpop.f32.mrb[107].mxu1 }
 0x1f0   : > { %v4409_v0 = vmax.f32 %v2931_v51, 0.0  ;;  %v4633_v1 = vmax.f32 %v3827_v53, 0.0  ;;  %v2934_v2 = vadd.f32 %v10693_v26, %v2933_v62  ;;  %v3830_v52 = vadd.f32 %v10693_v26, %v3829_v63 }
 0x1f1   : > { %v8114_v3 = vpack.c.bf16 %v4411_v58, %v4411_v58  ;;  %v8338_v4 = vpack.c.bf16 %v4635_v59, %v4635_v59  ;;  %v4412_v5 = vmax.f32 %v2942_v60, 0.0  ;;  %v4636_v6 = vmax.f32 %v3838_v61, 0.0  ;;  %8899 = vmatmul.mubr.msk.bf16.gmra.mrb[212].mxu0 %vm1800_vm2, %v9441_v49  ;;  %9123 = vmatmul.mubr.msk.bf16.gmra.mrb[212].mxu1 %vm1800_vm2, %v9442_v50  ;;  %v9449_v59 = vld [vmem:[%s9744_s21 + $0x378] sm:$0xff]  }
 0x1f2   : > { %v8112_v7 = vpack.c.bf16 %v4409_v0, %v4409_v0  ;;  %v8336_v9 = vpack.c.bf16 %v4633_v1, %v4633_v1  ;;  %v4410_v10 = vmax.f32 %v2934_v2, 0.0  ;;  %v4634_v11 = vmax.f32 %v3830_v52, 0.0  ;;  %8902 = vmatprep.mubr.msk.bf16.mxu0 %vm1800_vm2, %v9443_v56  ;;  %9126 = vmatprep.mubr.msk.bf16.mxu1 %vm1800_vm2, %v9444_v57  ;;  %v9450_v60 = vld [vmem:[%s9744_s21 + $0x6f8] sm:$0xff]  }
 0x1f3   : > { %6652 = vst.msk [vmem:[%s9999_s25 + $0x1a8] sm:$0xf] %vm6545_vm3, %v8114_v3  ;;  %6876 = vst.msk [vmem:[%s9999_s25 + $0x528] sm:$0xf] %vm6545_vm3, %v8338_v4  ;;  %v8115_v12 = vpack.c.bf16 %v4412_v5, %v4412_v5  ;;  %v8339_v13 = vpack.c.bf16 %v4636_v6, %v4636_v6 }
 0x1f4   : > { %6650 = vst.msk [vmem:[%s9999_s25 + $0x1a0] sm:$0xf] %vm6545_vm3, %v8112_v7  ;;  %6874 = vst.msk [vmem:[%s9999_s25 + $0x520] sm:$0xf] %vm6545_vm3, %v8336_v9  ;;  %v8113_v14 = vpack.c.bf16 %v4410_v10, %v4410_v10  ;;  %v8337_v15 = vpack.c.bf16 %v4634_v11, %v4634_v11  ;;  %v8796_v16 = vpop.f32.mrb[108].mxu0  ;;  %v9020_v17 = vpop.f32.mrb[108].mxu1 }
 0x1f5   : > { %6653 = vst.msk [vmem:[%s9999_s25 + $0x1ac] sm:$0xf] %vm6545_vm3, %v8115_v12  ;;  %6877 = vst.msk [vmem:[%s9999_s25 + $0x52c] sm:$0xf] %vm6545_vm3, %v8339_v13  ;;  %v2955_v18 = vadd.f32 %v10693_v26, %v8796_v16  ;;  %v3851_v19 = vadd.f32 %v10693_v26, %v9020_v17  ;;  %v2946_v20 = vpop.f32.mrb[109].mxu0  ;;  %v3842_v8 = vpop.f32.mrb[109].mxu1 }
 0x1f6   : > { %6651 = vst.msk [vmem:[%s9999_s25 + $0x1a4] sm:$0xf] %vm6545_vm3, %v8113_v14  ;;  %6875 = vst.msk [vmem:[%s9999_s25 + $0x524] sm:$0xf] %vm6545_vm3, %v8337_v15  ;;  %v2947_v23 = vadd.f32 %v10693_v26, %v2946_v20  ;;  %v3843_v24 = vadd.f32 %v10693_v26, %v3842_v8  ;;  %v8797_v25 = vpop.f32.mrb[110].mxu0  ;;  %v9021_v27 = vpop.f32.mrb[110].mxu1 }
 0x1f7   : > { %v4415_v30 = vmax.f32 %v2955_v18, 0.0  ;;  %v4639_v31 = vmax.f32 %v3851_v19, 0.0  ;;  %v2958_v32 = vadd.f32 %v10693_v26, %v8797_v25  ;;  %v3854_v33 = vadd.f32 %v10693_v26, %v9021_v27  ;;  %v2949_v34 = vpop.f32.mrb[111].mxu0  ;;  %v3845_v35 = vpop.f32.mrb[111].mxu1 }
 0x1f8   : > { %v4413_v36 = vmax.f32 %v2947_v23, 0.0  ;;  %v4637_v37 = vmax.f32 %v3843_v24, 0.0  ;;  %v2950_v38 = vadd.f32 %v10693_v26, %v2949_v34  ;;  %v3846_v39 = vadd.f32 %v10693_v26, %v3845_v35 }
 0x1f9   : > { %v8118_v40 = vpack.c.bf16 %v4415_v30, %v4415_v30  ;;  %v8342_v41 = vpack.c.bf16 %v4639_v31, %v4639_v31  ;;  %v4416_v42 = vmax.f32 %v2958_v32, 0.0  ;;  %v4640_v43 = vmax.f32 %v3854_v33, 0.0  ;;  %8903 = vmatmul.mubr.msk.bf16.gmra.mrb[216].mxu0 %vm1800_vm2, %v9445_v21  ;;  %9127 = vmatmul.mubr.msk.bf16.gmra.mrb[216].mxu1 %vm1800_vm2, %v9446_v22 }
 0x1fa   : > { %v8116_v44 = vpack.c.bf16 %v4413_v36, %v4413_v36  ;;  %v8340_v45 = vpack.c.bf16 %v4637_v37, %v4637_v37  ;;  %v4414_v46 = vmax.f32 %v2950_v38, 0.0  ;;  %v4638_v47 = vmax.f32 %v3846_v39, 0.0  ;;  %8906 = vmatprep.mubr.msk.bf16.mxu0 %vm1800_vm2, %v9447_v28  ;;  %9130 = vmatprep.mubr.msk.bf16.mxu1 %vm1800_vm2, %v9448_v29 }
 0x1fb   : > { %6656 = vst.msk [vmem:[%s9999_s25 + $0x1b8] sm:$0xf] %vm6545_vm3, %v8118_v40  ;;  %6880 = vst.msk [vmem:[%s9999_s25 + $0x538] sm:$0xf] %vm6545_vm3, %v8342_v41  ;;  %v8119_v48 = vpack.c.bf16 %v4416_v42, %v4416_v42  ;;  %v8343_v49 = vpack.c.bf16 %v4640_v43, %v4640_v43 }
 0x1fc   : > { %6654 = vst.msk [vmem:[%s9999_s25 + $0x1b0] sm:$0xf] %vm6545_vm3, %v8116_v44  ;;  %6878 = vst.msk [vmem:[%s9999_s25 + $0x530] sm:$0xf] %vm6545_vm3, %v8340_v45  ;;  %v8117_v50 = vpack.c.bf16 %v4414_v46, %v4414_v46  ;;  %v8341_v51 = vpack.c.bf16 %v4638_v47, %v4638_v47  ;;  %v8800_v53 = vpop.f32.mrb[112].mxu0  ;;  %v9024_v54 = vpop.f32.mrb[112].mxu1 }
 0x1fd   : > { %6657 = vst.msk [vmem:[%s9999_s25 + $0x1bc] sm:$0xf] %vm6545_vm3, %v8119_v48  ;;  %6881 = vst.msk [vmem:[%s9999_s25 + $0x53c] sm:$0xf] %vm6545_vm3, %v8343_v49  ;;  %v2971_v55 = vadd.f32 %v10693_v26, %v8800_v53  ;;  %v3867_v56 = vadd.f32 %v10693_v26, %v9024_v54  ;;  %v2962_v57 = vpop.f32.mrb[113].mxu0  ;;  %v3858_v58 = vpop.f32.mrb[113].mxu1 }
 0x1fe   : > { %6655 = vst.msk [vmem:[%s9999_s25 + $0x1b4] sm:$0xf] %vm6545_vm3, %v8117_v50  ;;  %6879 = vst.msk [vmem:[%s9999_s25 + $0x534] sm:$0xf] %vm6545_vm3, %v8341_v51  ;;  %v2963_v61 = vadd.f32 %v10693_v26, %v2962_v57  ;;  %v3859_v62 = vadd.f32 %v10693_v26, %v3858_v58  ;;  %v8801_v63 = vpop.f32.mrb[114].mxu0  ;;  %v9025_v0 = vpop.f32.mrb[114].mxu1 }
 0x1ff   : > { %v4419_v1 = vmax.f32 %v2971_v55, 0.0  ;;  %v4643_v2 = vmax.f32 %v3867_v56, 0.0  ;;  %v2974_v52 = vadd.f32 %v10693_v26, %v8801_v63  ;;  %v3870_v3 = vadd.f32 %v10693_v26, %v9025_v0  ;;  %v2965_v4 = vpop.f32.mrb[115].mxu0  ;;  %v3861_v5 = vpop.f32.mrb[115].mxu1 }
 0x200   : > { %v4417_v6 = vmax.f32 %v2963_v61, 0.0  ;;  %v4641_v7 = vmax.f32 %v3859_v62, 0.0  ;;  %v2966_v9 = vadd.f32 %v10693_v26, %v2965_v4  ;;  %v3862_v10 = vadd.f32 %v10693_v26, %v3861_v5 }
 0x201   : > { %v8122_v11 = vpack.c.bf16 %v4419_v1, %v4419_v1  ;;  %v8346_v12 = vpack.c.bf16 %v4643_v2, %v4643_v2  ;;  %v4420_v13 = vmax.f32 %v2974_v52, 0.0  ;;  %v4644_v14 = vmax.f32 %v3870_v3, 0.0  ;;  %8907 = vmatmul.mubr.msk.bf16.gmra.mrb[220].mxu0 %vm1800_vm2, %v9449_v59  ;;  %9131 = vmatmul.mubr.msk.bf16.gmra.mrb[220].mxu1 %vm1800_vm2, %v9450_v60 }
 0x202   : > { %v8120_v15 = vpack.c.bf16 %v4417_v6, %v4417_v6  ;;  %v8344_v16 = vpack.c.bf16 %v4641_v7, %v4641_v7  ;;  %v4418_v17 = vmax.f32 %v2966_v9, 0.0  ;;  %v4642_v18 = vmax.f32 %v3862_v10, 0.0 }
 0x203   : > { %6660 = vst.msk [vmem:[%s9999_s25 + $0x1c8] sm:$0xf] %vm6545_vm3, %v8122_v11  ;;  %6884 = vst.msk [vmem:[%s9999_s25 + $0x548] sm:$0xf] %vm6545_vm3, %v8346_v12  ;;  %v8123_v19 = vpack.c.bf16 %v4420_v13, %v4420_v13  ;;  %v8347_v20 = vpack.c.bf16 %v4644_v14, %v4644_v14 }
 0x204   : > { %6658 = vst.msk [vmem:[%s9999_s25 + $0x1c0] sm:$0xf] %vm6545_vm3, %v8120_v15  ;;  %6882 = vst.msk [vmem:[%s9999_s25 + $0x540] sm:$0xf] %vm6545_vm3, %v8344_v16  ;;  %v8121_v8 = vpack.c.bf16 %v4418_v17, %v4418_v17  ;;  %v8345_v21 = vpack.c.bf16 %v4642_v18, %v4642_v18  ;;  %v8804_v22 = vpop.f32.mrb[116].mxu0  ;;  %v9028_v23 = vpop.f32.mrb[116].mxu1 }
 0x205   : > { %6661 = vst.msk [vmem:[%s9999_s25 + $0x1cc] sm:$0xf] %vm6545_vm3, %v8123_v19  ;;  %6885 = vst.msk [vmem:[%s9999_s25 + $0x54c] sm:$0xf] %vm6545_vm3, %v8347_v20  ;;  %v2987_v24 = vadd.f32 %v10693_v26, %v8804_v22  ;;  %v3883_v25 = vadd.f32 %v10693_v26, %v9028_v23  ;;  %v2978_v27 = vpop.f32.mrb[117].mxu0  ;;  %v3874_v28 = vpop.f32.mrb[117].mxu1 }
 0x206   : > { %6659 = vst.msk [vmem:[%s9999_s25 + $0x1c4] sm:$0xf] %vm6545_vm3, %v8121_v8  ;;  %6883 = vst.msk [vmem:[%s9999_s25 + $0x544] sm:$0xf] %vm6545_vm3, %v8345_v21  ;;  %v2979_v29 = vadd.f32 %v10693_v26, %v2978_v27  ;;  %v3875_v30 = vadd.f32 %v10693_v26, %v3874_v28  ;;  %v8805_v31 = vpop.f32.mrb[118].mxu0  ;;  %v9029_v32 = vpop.f32.mrb[118].mxu1 }
 0x207   : > { %v4423_v33 = vmax.f32 %v2987_v24, 0.0  ;;  %v4647_v34 = vmax.f32 %v3883_v25, 0.0  ;;  %v2990_v35 = vadd.f32 %v10693_v26, %v8805_v31  ;;  %v3886_v36 = vadd.f32 %v10693_v26, %v9029_v32  ;;  %v2981_v37 = vpop.f32.mrb[119].mxu0  ;;  %v3877_v38 = vpop.f32.mrb[119].mxu1 }
 0x208   : > { %v4421_v39 = vmax.f32 %v2979_v29, 0.0  ;;  %v4645_v40 = vmax.f32 %v3875_v30, 0.0  ;;  %v2982_v41 = vadd.f32 %v10693_v26, %v2981_v37  ;;  %v3878_v42 = vadd.f32 %v10693_v26, %v3877_v38 }
 0x209   : > { %v8126_v43 = vpack.c.bf16 %v4423_v33, %v4423_v33  ;;  %v8350_v44 = vpack.c.bf16 %v4647_v34, %v4647_v34  ;;  %v4424_v45 = vmax.f32 %v2990_v35, 0.0  ;;  %v4648_v46 = vmax.f32 %v3886_v36, 0.0 }
 0x20a   : > { %v8124_v47 = vpack.c.bf16 %v4421_v39, %v4421_v39  ;;  %v8348_v48 = vpack.c.bf16 %v4645_v40, %v4645_v40  ;;  %v4422_v49 = vmax.f32 %v2982_v41, 0.0  ;;  %v4646_v50 = vmax.f32 %v3878_v42, 0.0 }
 0x20b   : > { %6664 = vst.msk [vmem:[%s9999_s25 + $0x1d8] sm:$0xf] %vm6545_vm3, %v8126_v43  ;;  %6888 = vst.msk [vmem:[%s9999_s25 + $0x558] sm:$0xf] %vm6545_vm3, %v8350_v44  ;;  %v8127_v51 = vpack.c.bf16 %v4424_v45, %v4424_v45  ;;  %v8351_v53 = vpack.c.bf16 %v4648_v46, %v4648_v46 }
 0x20c   : > { %6662 = vst.msk [vmem:[%s9999_s25 + $0x1d0] sm:$0xf] %vm6545_vm3, %v8124_v47  ;;  %6886 = vst.msk [vmem:[%s9999_s25 + $0x550] sm:$0xf] %vm6545_vm3, %v8348_v48  ;;  %v8125_v54 = vpack.c.bf16 %v4422_v49, %v4422_v49  ;;  %v8349_v55 = vpack.c.bf16 %v4646_v50, %v4646_v50  ;;  %v8808_v56 = vpop.f32.mrb[120].mxu0  ;;  %v9032_v57 = vpop.f32.mrb[120].mxu1 }
 0x20d   : > { %6665 = vst.msk [vmem:[%s9999_s25 + $0x1dc] sm:$0xf] %vm6545_vm3, %v8127_v51  ;;  %6889 = vst.msk [vmem:[%s9999_s25 + $0x55c] sm:$0xf] %vm6545_vm3, %v8351_v53  ;;  %v3003_v58 = vadd.f32 %v10693_v26, %v8808_v56  ;;  %v3899_v59 = vadd.f32 %v10693_v26, %v9032_v57  ;;  %v2994_v60 = vpop.f32.mrb[121].mxu0  ;;  %v3890_v61 = vpop.f32.mrb[121].mxu1 }
 0x20e   : > { %6663 = vst.msk [vmem:[%s9999_s25 + $0x1d4] sm:$0xf] %vm6545_vm3, %v8125_v54  ;;  %6887 = vst.msk [vmem:[%s9999_s25 + $0x554] sm:$0xf] %vm6545_vm3, %v8349_v55  ;;  %v2995_v62 = vadd.f32 %v10693_v26, %v2994_v60  ;;  %v3891_v63 = vadd.f32 %v10693_v26, %v3890_v61  ;;  %v8809_v0 = vpop.f32.mrb[122].mxu0  ;;  %v9033_v1 = vpop.f32.mrb[122].mxu1 }
 0x20f   : > { %v4427_v2 = vmax.f32 %v3003_v58, 0.0  ;;  %v4651_v52 = vmax.f32 %v3899_v59, 0.0  ;;  %v3006_v3 = vadd.f32 %v10693_v26, %v8809_v0  ;;  %v3902_v4 = vadd.f32 %v10693_v26, %v9033_v1  ;;  %v2997_v5 = vpop.f32.mrb[123].mxu0  ;;  %v3893_v6 = vpop.f32.mrb[123].mxu1 }
 0x210   : > { %v4425_v7 = vmax.f32 %v2995_v62, 0.0  ;;  %v4649_v9 = vmax.f32 %v3891_v63, 0.0  ;;  %v2998_v10 = vadd.f32 %v10693_v26, %v2997_v5  ;;  %v3894_v11 = vadd.f32 %v10693_v26, %v3893_v6 }
 0x211   : > { %v8130_v12 = vpack.c.bf16 %v4427_v2, %v4427_v2  ;;  %v8354_v13 = vpack.c.bf16 %v4651_v52, %v4651_v52  ;;  %v4428_v14 = vmax.f32 %v3006_v3, 0.0  ;;  %v4652_v15 = vmax.f32 %v3902_v4, 0.0 }
 0x212   : > { %v8128_v16 = vpack.c.bf16 %v4425_v7, %v4425_v7  ;;  %v8352_v17 = vpack.c.bf16 %v4649_v9, %v4649_v9  ;;  %v4426_v18 = vmax.f32 %v2998_v10, 0.0  ;;  %v4650_v19 = vmax.f32 %v3894_v11, 0.0 }
 0x213   : > { %6668 = vst.msk [vmem:[%s9999_s25 + $0x1e8] sm:$0xf] %vm6545_vm3, %v8130_v12  ;;  %6892 = vst.msk [vmem:[%s9999_s25 + $0x568] sm:$0xf] %vm6545_vm3, %v8354_v13  ;;  %v8131_v20 = vpack.c.bf16 %v4428_v14, %v4428_v14  ;;  %v8355_v8 = vpack.c.bf16 %v4652_v15, %v4652_v15 }
 0x214   : > { %6666 = vst.msk [vmem:[%s9999_s25 + $0x1e0] sm:$0xf] %vm6545_vm3, %v8128_v16  ;;  %6890 = vst.msk [vmem:[%s9999_s25 + $0x560] sm:$0xf] %vm6545_vm3, %v8352_v17  ;;  %v8129_v21 = vpack.c.bf16 %v4426_v18, %v4426_v18  ;;  %v8353_v22 = vpack.c.bf16 %v4650_v19, %v4650_v19  ;;  %v8812_v23 = vpop.f32.mrb[124].mxu0  ;;  %v9036_v24 = vpop.f32.mrb[124].mxu1 }
 0x215   : > { %6669 = vst.msk [vmem:[%s9999_s25 + $0x1ec] sm:$0xf] %vm6545_vm3, %v8131_v20  ;;  %6893 = vst.msk [vmem:[%s9999_s25 + $0x56c] sm:$0xf] %vm6545_vm3, %v8355_v8  ;;  %v3019_v25 = vadd.f32 %v10693_v26, %v8812_v23  ;;  %v3915_v27 = vadd.f32 %v10693_v26, %v9036_v24  ;;  %v3010_v28 = vpop.f32.mrb[125].mxu0  ;;  %v3906_v29 = vpop.f32.mrb[125].mxu1 }
 0x216   : > { %6667 = vst.msk [vmem:[%s9999_s25 + $0x1e4] sm:$0xf] %vm6545_vm3, %v8129_v21  ;;  %6891 = vst.msk [vmem:[%s9999_s25 + $0x564] sm:$0xf] %vm6545_vm3, %v8353_v22  ;;  %v3011_v30 = vadd.f32 %v10693_v26, %v3010_v28  ;;  %v3907_v31 = vadd.f32 %v10693_v26, %v3906_v29  ;;  %v8813_v32 = vpop.f32.mrb[126].mxu0  ;;  %v9037_v33 = vpop.f32.mrb[126].mxu1 }
 0x217   : > { %v4431_v34 = vmax.f32 %v3019_v25, 0.0  ;;  %v4655_v35 = vmax.f32 %v3915_v27, 0.0  ;;  %v3022_v36 = vadd.f32 %v10693_v26, %v8813_v32  ;;  %v3918_v37 = vadd.f32 %v10693_v26, %v9037_v33  ;;  %v3013_v38 = vpop.f32.mrb[127].mxu0  ;;  %v3909_v39 = vpop.f32.mrb[127].mxu1 }
 0x218   : > { %v4429_v40 = vmax.f32 %v3011_v30, 0.0  ;;  %v4653_v41 = vmax.f32 %v3907_v31, 0.0  ;;  %v3014_v42 = vadd.f32 %v10693_v26, %v3013_v38  ;;  %v3910_v43 = vadd.f32 %v10693_v26, %v3909_v39 }
 0x219   : > { %v8134_v44 = vpack.c.bf16 %v4431_v34, %v4431_v34  ;;  %v8358_v45 = vpack.c.bf16 %v4655_v35, %v4655_v35  ;;  %v4432_v46 = vmax.f32 %v3022_v36, 0.0  ;;  %v4656_v47 = vmax.f32 %v3918_v37, 0.0 }
 0x21a   : > { %v8132_v48 = vpack.c.bf16 %v4429_v40, %v4429_v40  ;;  %v8356_v49 = vpack.c.bf16 %v4653_v41, %v4653_v41  ;;  %v4430_v50 = vmax.f32 %v3014_v42, 0.0  ;;  %v4654_v51 = vmax.f32 %v3910_v43, 0.0 }
 0x21b   : > { %6672 = vst.msk [vmem:[%s9999_s25 + $0x1f8] sm:$0xf] %vm6545_vm3, %v8134_v44  ;;  %6896 = vst.msk [vmem:[%s9999_s25 + $0x578] sm:$0xf] %vm6545_vm3, %v8358_v45  ;;  %v8135_v53 = vpack.c.bf16 %v4432_v46, %v4432_v46  ;;  %v8359_v54 = vpack.c.bf16 %v4656_v47, %v4656_v47 }
 0x21c   : > { %6670 = vst.msk [vmem:[%s9999_s25 + $0x1f0] sm:$0xf] %vm6545_vm3, %v8132_v48  ;;  %6894 = vst.msk [vmem:[%s9999_s25 + $0x570] sm:$0xf] %vm6545_vm3, %v8356_v49  ;;  %v8133_v55 = vpack.c.bf16 %v4430_v50, %v4430_v50  ;;  %v8357_v56 = vpack.c.bf16 %v4654_v51, %v4654_v51  ;;  %v8816_v57 = vpop.f32.mrb[128].mxu0  ;;  %v9040_v58 = vpop.f32.mrb[128].mxu1 }
 0x21d   : > { %6673 = vst.msk [vmem:[%s9999_s25 + $0x1fc] sm:$0xf] %vm6545_vm3, %v8135_v53  ;;  %6897 = vst.msk [vmem:[%s9999_s25 + $0x57c] sm:$0xf] %vm6545_vm3, %v8359_v54  ;;  %v3035_v59 = vadd.f32 %v10693_v26, %v8816_v57  ;;  %v3931_v60 = vadd.f32 %v10693_v26, %v9040_v58  ;;  %v3026_v61 = vpop.f32.mrb[129].mxu0  ;;  %v3922_v62 = vpop.f32.mrb[129].mxu1 }
 0x21e   : > { %6671 = vst.msk [vmem:[%s9999_s25 + $0x1f4] sm:$0xf] %vm6545_vm3, %v8133_v55  ;;  %6895 = vst.msk [vmem:[%s9999_s25 + $0x574] sm:$0xf] %vm6545_vm3, %v8357_v56  ;;  %v3027_v63 = vadd.f32 %v10693_v26, %v3026_v61  ;;  %v3923_v0 = vadd.f32 %v10693_v26, %v3922_v62  ;;  %v8817_v1 = vpop.f32.mrb[130].mxu0  ;;  %v9041_v2 = vpop.f32.mrb[130].mxu1 }
 0x21f   : > { %v4435_v52 = vmax.f32 %v3035_v59, 0.0  ;;  %v4659_v3 = vmax.f32 %v3931_v60, 0.0  ;;  %v3038_v4 = vadd.f32 %v10693_v26, %v8817_v1  ;;  %v3934_v5 = vadd.f32 %v10693_v26, %v9041_v2  ;;  %v3029_v6 = vpop.f32.mrb[131].mxu0  ;;  %v3925_v7 = vpop.f32.mrb[131].mxu1  ;;  %v11038_v59 = vld [vmem:[%s11644_s2] ss:$0 sm:$0xff] }
 0x220   : > { %v4433_v9 = vmax.f32 %v3027_v63, 0.0  ;;  %v4657_v10 = vmax.f32 %v3923_v0, 0.0  ;;  %v3030_v11 = vadd.f32 %v10693_v26, %v3029_v6  ;;  %v3926_v12 = vadd.f32 %v10693_v26, %v3925_v7 }
 0x221   : > { %v8138_v13 = vpack.c.bf16 %v4435_v52, %v4435_v52  ;;  %v8362_v14 = vpack.c.bf16 %v4659_v3, %v4659_v3  ;;  %v4436_v15 = vmax.f32 %v3038_v4, 0.0  ;;  %v4660_v16 = vmax.f32 %v3934_v5, 0.0 }
 0x222   : > { %v8136_v17 = vpack.c.bf16 %v4433_v9, %v4433_v9  ;;  %v8360_v18 = vpack.c.bf16 %v4657_v10, %v4657_v10  ;;  %v4434_v19 = vmax.f32 %v3030_v11, 0.0  ;;  %v4658_v20 = vmax.f32 %v3926_v12, 0.0 }
 0x223   : > { %6676 = vst.msk [vmem:[%s9999_s25 + $0x208] sm:$0xf] %vm6545_vm3, %v8138_v13  ;;  %6900 = vst.msk [vmem:[%s9999_s25 + $0x588] sm:$0xf] %vm6545_vm3, %v8362_v14  ;;  %v8139_v8 = vpack.c.bf16 %v4436_v15, %v4436_v15  ;;  %v8363_v21 = vpack.c.bf16 %v4660_v16, %v4660_v16 }
 0x224   : > { %6674 = vst.msk [vmem:[%s9999_s25 + $0x200] sm:$0xf] %vm6545_vm3, %v8136_v17  ;;  %6898 = vst.msk [vmem:[%s9999_s25 + $0x580] sm:$0xf] %vm6545_vm3, %v8360_v18  ;;  %v8137_v22 = vpack.c.bf16 %v4434_v19, %v4434_v19  ;;  %v8361_v23 = vpack.c.bf16 %v4658_v20, %v4658_v20  ;;  %v8820_v24 = vpop.f32.mrb[132].mxu0  ;;  %v9044_v25 = vpop.f32.mrb[132].mxu1 }
 0x225   : > { %6677 = vst.msk [vmem:[%s9999_s25 + $0x20c] sm:$0xf] %vm6545_vm3, %v8139_v8  ;;  %6901 = vst.msk [vmem:[%s9999_s25 + $0x58c] sm:$0xf] %vm6545_vm3, %v8363_v21  ;;  %v3051_v27 = vadd.f32 %v10693_v26, %v8820_v24  ;;  %v3947_v28 = vadd.f32 %v10693_v26, %v9044_v25  ;;  %v3042_v29 = vpop.f32.mrb[133].mxu0  ;;  %v3938_v30 = vpop.f32.mrb[133].mxu1 }
 0x226   : > { %6675 = vst.msk [vmem:[%s9999_s25 + $0x204] sm:$0xf] %vm6545_vm3, %v8137_v22  ;;  %6899 = vst.msk [vmem:[%s9999_s25 + $0x584] sm:$0xf] %vm6545_vm3, %v8361_v23  ;;  %v3043_v31 = vadd.f32 %v10693_v26, %v3042_v29  ;;  %v3939_v32 = vadd.f32 %v10693_v26, %v3938_v30  ;;  %v8821_v33 = vpop.f32.mrb[134].mxu0  ;;  %v9045_v34 = vpop.f32.mrb[134].mxu1 }
 0x227   : > { %v4439_v35 = vmax.f32 %v3051_v27, 0.0  ;;  %v4663_v36 = vmax.f32 %v3947_v28, 0.0  ;;  %v3054_v37 = vadd.f32 %v10693_v26, %v8821_v33  ;;  %v3950_v38 = vadd.f32 %v10693_v26, %v9045_v34  ;;  %v3045_v39 = vpop.f32.mrb[135].mxu0  ;;  %v3941_v40 = vpop.f32.mrb[135].mxu1 }
 0x228   : > { %v4437_v41 = vmax.f32 %v3043_v31, 0.0  ;;  %v4661_v42 = vmax.f32 %v3939_v32, 0.0  ;;  %v3046_v43 = vadd.f32 %v10693_v26, %v3045_v39  ;;  %v3942_v44 = vadd.f32 %v10693_v26, %v3941_v40 }
 0x229   : > { %v8142_v45 = vpack.c.bf16 %v4439_v35, %v4439_v35  ;;  %v8366_v46 = vpack.c.bf16 %v4663_v36, %v4663_v36  ;;  %v4440_v47 = vmax.f32 %v3054_v37, 0.0  ;;  %v4664_v48 = vmax.f32 %v3950_v38, 0.0 }
 0x22a   : > { %v8140_v49 = vpack.c.bf16 %v4437_v41, %v4437_v41  ;;  %v8364_v50 = vpack.c.bf16 %v4661_v42, %v4661_v42  ;;  %v4438_v51 = vmax.f32 %v3046_v43, 0.0  ;;  %v4662_v53 = vmax.f32 %v3942_v44, 0.0 }
 0x22b   : > { %6680 = vst.msk [vmem:[%s9999_s25 + $0x218] sm:$0xf] %vm6545_vm3, %v8142_v45  ;;  %6904 = vst.msk [vmem:[%s9999_s25 + $0x598] sm:$0xf] %vm6545_vm3, %v8366_v46  ;;  %v8143_v54 = vpack.c.bf16 %v4440_v47, %v4440_v47  ;;  %v8367_v55 = vpack.c.bf16 %v4664_v48, %v4664_v48 }
 0x22c   : > { %6678 = vst.msk [vmem:[%s9999_s25 + $0x210] sm:$0xf] %vm6545_vm3, %v8140_v49  ;;  %6902 = vst.msk [vmem:[%s9999_s25 + $0x590] sm:$0xf] %vm6545_vm3, %v8364_v50  ;;  %v8141_v26 = vpack.c.bf16 %v4438_v51, %v4438_v51  ;;  %v8365_v56 = vpack.c.bf16 %v4662_v53, %v4662_v53  ;;  %v8824_v57 = vpop.f32.mrb[136].mxu0  ;;  %v9048_v58 = vpop.f32.mrb[136].mxu1 }
 0x22d   : > { %6681 = vst.msk [vmem:[%s9999_s25 + $0x21c] sm:$0xf] %vm6545_vm3, %v8143_v54  ;;  %6905 = vst.msk [vmem:[%s9999_s25 + $0x59c] sm:$0xf] %vm6545_vm3, %v8367_v55  ;;  %v3067_v60 = vadd.f32 %v11038_v59, %v8824_v57  ;;  %v3963_v61 = vadd.f32 %v11038_v59, %v9048_v58  ;;  %v3058_v62 = vpop.f32.mrb[137].mxu0  ;;  %v3954_v63 = vpop.f32.mrb[137].mxu1 }
 0x22e   : > { %6679 = vst.msk [vmem:[%s9999_s25 + $0x214] sm:$0xf] %vm6545_vm3, %v8141_v26  ;;  %6903 = vst.msk [vmem:[%s9999_s25 + $0x594] sm:$0xf] %vm6545_vm3, %v8365_v56  ;;  %v3059_v0 = vadd.f32 %v11038_v59, %v3058_v62  ;;  %v3955_v1 = vadd.f32 %v11038_v59, %v3954_v63  ;;  %v8825_v2 = vpop.f32.mrb[138].mxu0  ;;  %v9049_v52 = vpop.f32.mrb[138].mxu1 }
 0x22f   : > { %v4443_v3 = vmax.f32 %v3067_v60, 0.0  ;;  %v4667_v4 = vmax.f32 %v3963_v61, 0.0  ;;  %v3070_v5 = vadd.f32 %v11038_v59, %v8825_v2  ;;  %v3966_v6 = vadd.f32 %v11038_v59, %v9049_v52  ;;  %v3061_v7 = vpop.f32.mrb[139].mxu0  ;;  %v3957_v9 = vpop.f32.mrb[139].mxu1 }
 0x230   : > { %v4441_v10 = vmax.f32 %v3059_v0, 0.0  ;;  %v4665_v11 = vmax.f32 %v3955_v1, 0.0  ;;  %v3062_v12 = vadd.f32 %v11038_v59, %v3061_v7  ;;  %v3958_v13 = vadd.f32 %v11038_v59, %v3957_v9 }
 0x231   : > { %v8146_v14 = vpack.c.bf16 %v4443_v3, %v4443_v3  ;;  %v8370_v15 = vpack.c.bf16 %v4667_v4, %v4667_v4  ;;  %v4444_v16 = vmax.f32 %v3070_v5, 0.0  ;;  %v4668_v17 = vmax.f32 %v3966_v6, 0.0 }
 0x232   : > { %v8144_v18 = vpack.c.bf16 %v4441_v10, %v4441_v10  ;;  %v8368_v19 = vpack.c.bf16 %v4665_v11, %v4665_v11  ;;  %v4442_v20 = vmax.f32 %v3062_v12, 0.0  ;;  %v4666_v8 = vmax.f32 %v3958_v13, 0.0 }
 0x233   : > { %6684 = vst.msk [vmem:[%s9999_s25 + $0x228] sm:$0xf] %vm6545_vm3, %v8146_v14  ;;  %6908 = vst.msk [vmem:[%s9999_s25 + $0x5a8] sm:$0xf] %vm6545_vm3, %v8370_v15  ;;  %v8147_v21 = vpack.c.bf16 %v4444_v16, %v4444_v16  ;;  %v8371_v22 = vpack.c.bf16 %v4668_v17, %v4668_v17 }
 0x234   : > { %6682 = vst.msk [vmem:[%s9999_s25 + $0x220] sm:$0xf] %vm6545_vm3, %v8144_v18  ;;  %6906 = vst.msk [vmem:[%s9999_s25 + $0x5a0] sm:$0xf] %vm6545_vm3, %v8368_v19  ;;  %v8145_v23 = vpack.c.bf16 %v4442_v20, %v4442_v20  ;;  %v8369_v24 = vpack.c.bf16 %v4666_v8, %v4666_v8  ;;  %v8828_v25 = vpop.f32.mrb[140].mxu0  ;;  %v9052_v27 = vpop.f32.mrb[140].mxu1 }
 0x235   : > { %6685 = vst.msk [vmem:[%s9999_s25 + $0x22c] sm:$0xf] %vm6545_vm3, %v8147_v21  ;;  %6909 = vst.msk [vmem:[%s9999_s25 + $0x5ac] sm:$0xf] %vm6545_vm3, %v8371_v22  ;;  %v3083_v28 = vadd.f32 %v11038_v59, %v8828_v25  ;;  %v3979_v29 = vadd.f32 %v11038_v59, %v9052_v27  ;;  %v3074_v30 = vpop.f32.mrb[141].mxu0  ;;  %v3970_v31 = vpop.f32.mrb[141].mxu1 }
 0x236   : > { %6683 = vst.msk [vmem:[%s9999_s25 + $0x224] sm:$0xf] %vm6545_vm3, %v8145_v23  ;;  %6907 = vst.msk [vmem:[%s9999_s25 + $0x5a4] sm:$0xf] %vm6545_vm3, %v8369_v24  ;;  %v3075_v32 = vadd.f32 %v11038_v59, %v3074_v30  ;;  %v3971_v33 = vadd.f32 %v11038_v59, %v3970_v31  ;;  %v8829_v34 = vpop.f32.mrb[142].mxu0  ;;  %v9053_v35 = vpop.f32.mrb[142].mxu1 }
 0x237   : > { %v4447_v36 = vmax.f32 %v3083_v28, 0.0  ;;  %v4671_v37 = vmax.f32 %v3979_v29, 0.0  ;;  %v3086_v38 = vadd.f32 %v11038_v59, %v8829_v34  ;;  %v3982_v39 = vadd.f32 %v11038_v59, %v9053_v35  ;;  %v3077_v40 = vpop.f32.mrb[143].mxu0  ;;  %v3973_v41 = vpop.f32.mrb[143].mxu1 }
 0x238   : > { %v4445_v42 = vmax.f32 %v3075_v32, 0.0  ;;  %v4669_v43 = vmax.f32 %v3971_v33, 0.0  ;;  %v3078_v44 = vadd.f32 %v11038_v59, %v3077_v40  ;;  %v3974_v45 = vadd.f32 %v11038_v59, %v3973_v41 }
 0x239   : > { %v8150_v46 = vpack.c.bf16 %v4447_v36, %v4447_v36  ;;  %v8374_v47 = vpack.c.bf16 %v4671_v37, %v4671_v37  ;;  %v4448_v48 = vmax.f32 %v3086_v38, 0.0  ;;  %v4672_v49 = vmax.f32 %v3982_v39, 0.0 }
 0x23a   : > { %v8148_v50 = vpack.c.bf16 %v4445_v42, %v4445_v42  ;;  %v8372_v51 = vpack.c.bf16 %v4669_v43, %v4669_v43  ;;  %v4446_v53 = vmax.f32 %v3078_v44, 0.0  ;;  %v4670_v54 = vmax.f32 %v3974_v45, 0.0 }
 0x23b   : > { %6688 = vst.msk [vmem:[%s9999_s25 + $0x238] sm:$0xf] %vm6545_vm3, %v8150_v46  ;;  %6912 = vst.msk [vmem:[%s9999_s25 + $0x5b8] sm:$0xf] %vm6545_vm3, %v8374_v47  ;;  %v8151_v55 = vpack.c.bf16 %v4448_v48, %v4448_v48  ;;  %v8375_v26 = vpack.c.bf16 %v4672_v49, %v4672_v49 }
 0x23c   : > { %6686 = vst.msk [vmem:[%s9999_s25 + $0x230] sm:$0xf] %vm6545_vm3, %v8148_v50  ;;  %6910 = vst.msk [vmem:[%s9999_s25 + $0x5b0] sm:$0xf] %vm6545_vm3, %v8372_v51  ;;  %v8149_v56 = vpack.c.bf16 %v4446_v53, %v4446_v53  ;;  %v8373_v57 = vpack.c.bf16 %v4670_v54, %v4670_v54  ;;  %v8832_v58 = vpop.f32.mrb[144].mxu0  ;;  %v9056_v60 = vpop.f32.mrb[144].mxu1 }
 0x23d   : > { %6689 = vst.msk [vmem:[%s9999_s25 + $0x23c] sm:$0xf] %vm6545_vm3, %v8151_v55  ;;  %6913 = vst.msk [vmem:[%s9999_s25 + $0x5bc] sm:$0xf] %vm6545_vm3, %v8375_v26  ;;  %v3099_v61 = vadd.f32 %v11038_v59, %v8832_v58  ;;  %v3995_v62 = vadd.f32 %v11038_v59, %v9056_v60  ;;  %v3090_v63 = vpop.f32.mrb[145].mxu0  ;;  %v3986_v0 = vpop.f32.mrb[145].mxu1 }
 0x23e   : > { %6687 = vst.msk [vmem:[%s9999_s25 + $0x234] sm:$0xf] %vm6545_vm3, %v8149_v56  ;;  %6911 = vst.msk [vmem:[%s9999_s25 + $0x5b4] sm:$0xf] %vm6545_vm3, %v8373_v57  ;;  %v3091_v1 = vadd.f32 %v11038_v59, %v3090_v63  ;;  %v3987_v2 = vadd.f32 %v11038_v59, %v3986_v0  ;;  %v8833_v52 = vpop.f32.mrb[146].mxu0  ;;  %v9057_v3 = vpop.f32.mrb[146].mxu1 }
 0x23f   : > { %v4451_v4 = vmax.f32 %v3099_v61, 0.0  ;;  %v4675_v5 = vmax.f32 %v3995_v62, 0.0  ;;  %v3102_v6 = vadd.f32 %v11038_v59, %v8833_v52  ;;  %v3998_v7 = vadd.f32 %v11038_v59, %v9057_v3  ;;  %v3093_v9 = vpop.f32.mrb[147].mxu0  ;;  %v3989_v10 = vpop.f32.mrb[147].mxu1 }
 0x240   : > { %v4449_v11 = vmax.f32 %v3091_v1, 0.0  ;;  %v4673_v12 = vmax.f32 %v3987_v2, 0.0  ;;  %v3094_v13 = vadd.f32 %v11038_v59, %v3093_v9  ;;  %v3990_v14 = vadd.f32 %v11038_v59, %v3989_v10 }
 0x241   : > { %v8154_v15 = vpack.c.bf16 %v4451_v4, %v4451_v4  ;;  %v8378_v16 = vpack.c.bf16 %v4675_v5, %v4675_v5  ;;  %v4452_v17 = vmax.f32 %v3102_v6, 0.0  ;;  %v4676_v18 = vmax.f32 %v3998_v7, 0.0 }
 0x242   : > { %v8152_v19 = vpack.c.bf16 %v4449_v11, %v4449_v11  ;;  %v8376_v20 = vpack.c.bf16 %v4673_v12, %v4673_v12  ;;  %v4450_v8 = vmax.f32 %v3094_v13, 0.0  ;;  %v4674_v21 = vmax.f32 %v3990_v14, 0.0 }
 0x243   : > { %6692 = vst.msk [vmem:[%s9999_s25 + $0x248] sm:$0xf] %vm6545_vm3, %v8154_v15  ;;  %6916 = vst.msk [vmem:[%s9999_s25 + $0x5c8] sm:$0xf] %vm6545_vm3, %v8378_v16  ;;  %v8155_v22 = vpack.c.bf16 %v4452_v17, %v4452_v17  ;;  %v8379_v23 = vpack.c.bf16 %v4676_v18, %v4676_v18 }
 0x244   : > { %6690 = vst.msk [vmem:[%s9999_s25 + $0x240] sm:$0xf] %vm6545_vm3, %v8152_v19  ;;  %6914 = vst.msk [vmem:[%s9999_s25 + $0x5c0] sm:$0xf] %vm6545_vm3, %v8376_v20  ;;  %v8153_v24 = vpack.c.bf16 %v4450_v8, %v4450_v8  ;;  %v8377_v25 = vpack.c.bf16 %v4674_v21, %v4674_v21  ;;  %v8836_v27 = vpop.f32.mrb[148].mxu0  ;;  %v9060_v28 = vpop.f32.mrb[148].mxu1 }
 0x245   : > { %6693 = vst.msk [vmem:[%s9999_s25 + $0x24c] sm:$0xf] %vm6545_vm3, %v8155_v22  ;;  %6917 = vst.msk [vmem:[%s9999_s25 + $0x5cc] sm:$0xf] %vm6545_vm3, %v8379_v23  ;;  %v3115_v29 = vadd.f32 %v11038_v59, %v8836_v27  ;;  %v4011_v30 = vadd.f32 %v11038_v59, %v9060_v28  ;;  %v3106_v31 = vpop.f32.mrb[149].mxu0  ;;  %v4002_v32 = vpop.f32.mrb[149].mxu1 }
 0x246   : > { %6691 = vst.msk [vmem:[%s9999_s25 + $0x244] sm:$0xf] %vm6545_vm3, %v8153_v24  ;;  %6915 = vst.msk [vmem:[%s9999_s25 + $0x5c4] sm:$0xf] %vm6545_vm3, %v8377_v25  ;;  %v3107_v33 = vadd.f32 %v11038_v59, %v3106_v31  ;;  %v4003_v34 = vadd.f32 %v11038_v59, %v4002_v32  ;;  %v8837_v35 = vpop.f32.mrb[150].mxu0  ;;  %v9061_v36 = vpop.f32.mrb[150].mxu1 }
 0x247   : > { %v4455_v37 = vmax.f32 %v3115_v29, 0.0  ;;  %v4679_v38 = vmax.f32 %v4011_v30, 0.0  ;;  %v3118_v39 = vadd.f32 %v11038_v59, %v8837_v35  ;;  %v4014_v40 = vadd.f32 %v11038_v59, %v9061_v36  ;;  %v3109_v41 = vpop.f32.mrb[151].mxu0  ;;  %v4005_v42 = vpop.f32.mrb[151].mxu1 }
 0x248   : > { %v4453_v43 = vmax.f32 %v3107_v33, 0.0  ;;  %v4677_v44 = vmax.f32 %v4003_v34, 0.0  ;;  %v3110_v45 = vadd.f32 %v11038_v59, %v3109_v41  ;;  %v4006_v46 = vadd.f32 %v11038_v59, %v4005_v42 }
 0x249   : > { %v8158_v47 = vpack.c.bf16 %v4455_v37, %v4455_v37  ;;  %v8382_v48 = vpack.c.bf16 %v4679_v38, %v4679_v38  ;;  %v4456_v49 = vmax.f32 %v3118_v39, 0.0  ;;  %v4680_v50 = vmax.f32 %v4014_v40, 0.0 }
 0x24a   : > { %v8156_v51 = vpack.c.bf16 %v4453_v43, %v4453_v43  ;;  %v8380_v53 = vpack.c.bf16 %v4677_v44, %v4677_v44  ;;  %v4454_v54 = vmax.f32 %v3110_v45, 0.0  ;;  %v4678_v55 = vmax.f32 %v4006_v46, 0.0 }
 0x24b   : > { %6696 = vst.msk [vmem:[%s9999_s25 + $0x258] sm:$0xf] %vm6545_vm3, %v8158_v47  ;;  %6920 = vst.msk [vmem:[%s9999_s25 + $0x5d8] sm:$0xf] %vm6545_vm3, %v8382_v48  ;;  %v8159_v26 = vpack.c.bf16 %v4456_v49, %v4456_v49  ;;  %v8383_v56 = vpack.c.bf16 %v4680_v50, %v4680_v50 }
 0x24c   : > { %6694 = vst.msk [vmem:[%s9999_s25 + $0x250] sm:$0xf] %vm6545_vm3, %v8156_v51  ;;  %6918 = vst.msk [vmem:[%s9999_s25 + $0x5d0] sm:$0xf] %vm6545_vm3, %v8380_v53  ;;  %v8157_v57 = vpack.c.bf16 %v4454_v54, %v4454_v54  ;;  %v8381_v58 = vpack.c.bf16 %v4678_v55, %v4678_v55  ;;  %v8840_v60 = vpop.f32.mrb[152].mxu0  ;;  %v9064_v61 = vpop.f32.mrb[152].mxu1 }
 0x24d   : > { %6697 = vst.msk [vmem:[%s9999_s25 + $0x25c] sm:$0xf] %vm6545_vm3, %v8159_v26  ;;  %6921 = vst.msk [vmem:[%s9999_s25 + $0x5dc] sm:$0xf] %vm6545_vm3, %v8383_v56  ;;  %v3131_v62 = vadd.f32 %v11038_v59, %v8840_v60  ;;  %v4027_v63 = vadd.f32 %v11038_v59, %v9064_v61  ;;  %v3122_v0 = vpop.f32.mrb[153].mxu0  ;;  %v4018_v1 = vpop.f32.mrb[153].mxu1 }
 0x24e   : > { %6695 = vst.msk [vmem:[%s9999_s25 + $0x254] sm:$0xf] %vm6545_vm3, %v8157_v57  ;;  %6919 = vst.msk [vmem:[%s9999_s25 + $0x5d4] sm:$0xf] %vm6545_vm3, %v8381_v58  ;;  %v3123_v2 = vadd.f32 %v11038_v59, %v3122_v0  ;;  %v4019_v52 = vadd.f32 %v11038_v59, %v4018_v1  ;;  %v8841_v3 = vpop.f32.mrb[154].mxu0  ;;  %v9065_v4 = vpop.f32.mrb[154].mxu1 }
 0x24f   : > { %v4459_v5 = vmax.f32 %v3131_v62, 0.0  ;;  %v4683_v6 = vmax.f32 %v4027_v63, 0.0  ;;  %v3134_v7 = vadd.f32 %v11038_v59, %v8841_v3  ;;  %v4030_v9 = vadd.f32 %v11038_v59, %v9065_v4  ;;  %v3125_v10 = vpop.f32.mrb[155].mxu0  ;;  %v4021_v11 = vpop.f32.mrb[155].mxu1 }
 0x250   : > { %v4457_v12 = vmax.f32 %v3123_v2, 0.0  ;;  %v4681_v13 = vmax.f32 %v4019_v52, 0.0  ;;  %v3126_v14 = vadd.f32 %v11038_v59, %v3125_v10  ;;  %v4022_v15 = vadd.f32 %v11038_v59, %v4021_v11 }
 0x251   : > { %v8162_v16 = vpack.c.bf16 %v4459_v5, %v4459_v5  ;;  %v8386_v17 = vpack.c.bf16 %v4683_v6, %v4683_v6  ;;  %v4460_v18 = vmax.f32 %v3134_v7, 0.0  ;;  %v4684_v19 = vmax.f32 %v4030_v9, 0.0 }
 0x252   : > { %v8160_v20 = vpack.c.bf16 %v4457_v12, %v4457_v12  ;;  %v8384_v8 = vpack.c.bf16 %v4681_v13, %v4681_v13  ;;  %v4458_v21 = vmax.f32 %v3126_v14, 0.0  ;;  %v4682_v22 = vmax.f32 %v4022_v15, 0.0 }
 0x253   : > { %6700 = vst.msk [vmem:[%s9999_s25 + $0x268] sm:$0xf] %vm6545_vm3, %v8162_v16  ;;  %6924 = vst.msk [vmem:[%s9999_s25 + $0x5e8] sm:$0xf] %vm6545_vm3, %v8386_v17  ;;  %v8163_v23 = vpack.c.bf16 %v4460_v18, %v4460_v18  ;;  %v8387_v24 = vpack.c.bf16 %v4684_v19, %v4684_v19 }
 0x254   : > { %6698 = vst.msk [vmem:[%s9999_s25 + $0x260] sm:$0xf] %vm6545_vm3, %v8160_v20  ;;  %6922 = vst.msk [vmem:[%s9999_s25 + $0x5e0] sm:$0xf] %vm6545_vm3, %v8384_v8  ;;  %v8161_v25 = vpack.c.bf16 %v4458_v21, %v4458_v21  ;;  %v8385_v27 = vpack.c.bf16 %v4682_v22, %v4682_v22  ;;  %v8844_v28 = vpop.f32.mrb[156].mxu0  ;;  %v9068_v29 = vpop.f32.mrb[156].mxu1 }
 0x255   : > { %6701 = vst.msk [vmem:[%s9999_s25 + $0x26c] sm:$0xf] %vm6545_vm3, %v8163_v23  ;;  %6925 = vst.msk [vmem:[%s9999_s25 + $0x5ec] sm:$0xf] %vm6545_vm3, %v8387_v24  ;;  %v3147_v30 = vadd.f32 %v11038_v59, %v8844_v28  ;;  %v4043_v31 = vadd.f32 %v11038_v59, %v9068_v29  ;;  %v3138_v32 = vpop.f32.mrb[157].mxu0  ;;  %v4034_v33 = vpop.f32.mrb[157].mxu1 }
 0x256   : > { %6699 = vst.msk [vmem:[%s9999_s25 + $0x264] sm:$0xf] %vm6545_vm3, %v8161_v25  ;;  %6923 = vst.msk [vmem:[%s9999_s25 + $0x5e4] sm:$0xf] %vm6545_vm3, %v8385_v27  ;;  %v3139_v34 = vadd.f32 %v11038_v59, %v3138_v32  ;;  %v4035_v35 = vadd.f32 %v11038_v59, %v4034_v33  ;;  %v8845_v36 = vpop.f32.mrb[158].mxu0  ;;  %v9069_v37 = vpop.f32.mrb[158].mxu1 }
 0x257   : > { %v4463_v38 = vmax.f32 %v3147_v30, 0.0  ;;  %v4687_v39 = vmax.f32 %v4043_v31, 0.0  ;;  %v3150_v40 = vadd.f32 %v11038_v59, %v8845_v36  ;;  %v4046_v41 = vadd.f32 %v11038_v59, %v9069_v37  ;;  %v3141_v42 = vpop.f32.mrb[159].mxu0  ;;  %v4037_v43 = vpop.f32.mrb[159].mxu1 }
 0x258   : > { %v4461_v44 = vmax.f32 %v3139_v34, 0.0  ;;  %v4685_v45 = vmax.f32 %v4035_v35, 0.0  ;;  %v3142_v46 = vadd.f32 %v11038_v59, %v3141_v42  ;;  %v4038_v47 = vadd.f32 %v11038_v59, %v4037_v43 }
 0x259   : > { %v8166_v48 = vpack.c.bf16 %v4463_v38, %v4463_v38  ;;  %v8390_v49 = vpack.c.bf16 %v4687_v39, %v4687_v39  ;;  %v4464_v50 = vmax.f32 %v3150_v40, 0.0  ;;  %v4688_v51 = vmax.f32 %v4046_v41, 0.0 }
 0x25a   : > { %v8164_v53 = vpack.c.bf16 %v4461_v44, %v4461_v44  ;;  %v8388_v54 = vpack.c.bf16 %v4685_v45, %v4685_v45  ;;  %v4462_v55 = vmax.f32 %v3142_v46, 0.0  ;;  %v4686_v26 = vmax.f32 %v4038_v47, 0.0 }
 0x25b   : > { %6704 = vst.msk [vmem:[%s9999_s25 + $0x278] sm:$0xf] %vm6545_vm3, %v8166_v48  ;;  %6928 = vst.msk [vmem:[%s9999_s25 + $0x5f8] sm:$0xf] %vm6545_vm3, %v8390_v49  ;;  %v8167_v56 = vpack.c.bf16 %v4464_v50, %v4464_v50  ;;  %v8391_v57 = vpack.c.bf16 %v4688_v51, %v4688_v51 }
 0x25c   : > { %6702 = vst.msk [vmem:[%s9999_s25 + $0x270] sm:$0xf] %vm6545_vm3, %v8164_v53  ;;  %6926 = vst.msk [vmem:[%s9999_s25 + $0x5f0] sm:$0xf] %vm6545_vm3, %v8388_v54  ;;  %v8165_v58 = vpack.c.bf16 %v4462_v55, %v4462_v55  ;;  %v8389_v60 = vpack.c.bf16 %v4686_v26, %v4686_v26  ;;  %v8848_v61 = vpop.f32.mrb[160].mxu0  ;;  %v9072_v62 = vpop.f32.mrb[160].mxu1 }
 0x25d   : > { %6705 = vst.msk [vmem:[%s9999_s25 + $0x27c] sm:$0xf] %vm6545_vm3, %v8167_v56  ;;  %6929 = vst.msk [vmem:[%s9999_s25 + $0x5fc] sm:$0xf] %vm6545_vm3, %v8391_v57  ;;  %v3163_v63 = vadd.f32 %v11038_v59, %v8848_v61  ;;  %v4059_v0 = vadd.f32 %v11038_v59, %v9072_v62  ;;  %v3154_v1 = vpop.f32.mrb[161].mxu0  ;;  %v4050_v2 = vpop.f32.mrb[161].mxu1 }
 0x25e   : > { %6703 = vst.msk [vmem:[%s9999_s25 + $0x274] sm:$0xf] %vm6545_vm3, %v8165_v58  ;;  %6927 = vst.msk [vmem:[%s9999_s25 + $0x5f4] sm:$0xf] %vm6545_vm3, %v8389_v60  ;;  %v3155_v52 = vadd.f32 %v11038_v59, %v3154_v1  ;;  %v4051_v3 = vadd.f32 %v11038_v59, %v4050_v2  ;;  %v8849_v4 = vpop.f32.mrb[162].mxu0  ;;  %v9073_v5 = vpop.f32.mrb[162].mxu1 }
 0x25f   : > { %v4467_v6 = vmax.f32 %v3163_v63, 0.0  ;;  %v4691_v7 = vmax.f32 %v4059_v0, 0.0  ;;  %v3166_v9 = vadd.f32 %v11038_v59, %v8849_v4  ;;  %v4062_v10 = vadd.f32 %v11038_v59, %v9073_v5  ;;  %v3157_v11 = vpop.f32.mrb[163].mxu0  ;;  %v4053_v12 = vpop.f32.mrb[163].mxu1 }
 0x260   : > { %v4465_v13 = vmax.f32 %v3155_v52, 0.0  ;;  %v4689_v14 = vmax.f32 %v4051_v3, 0.0  ;;  %v3158_v15 = vadd.f32 %v11038_v59, %v3157_v11  ;;  %v4054_v16 = vadd.f32 %v11038_v59, %v4053_v12 }
 0x261   : > { %v8170_v17 = vpack.c.bf16 %v4467_v6, %v4467_v6  ;;  %v8394_v18 = vpack.c.bf16 %v4691_v7, %v4691_v7  ;;  %v4468_v19 = vmax.f32 %v3166_v9, 0.0  ;;  %v4692_v20 = vmax.f32 %v4062_v10, 0.0 }
 0x262   : > { %v8168_v8 = vpack.c.bf16 %v4465_v13, %v4465_v13  ;;  %v8392_v21 = vpack.c.bf16 %v4689_v14, %v4689_v14  ;;  %v4466_v22 = vmax.f32 %v3158_v15, 0.0  ;;  %v4690_v23 = vmax.f32 %v4054_v16, 0.0 }
 0x263   : > { %6708 = vst.msk [vmem:[%s9999_s25 + $0x288] sm:$0xf] %vm6545_vm3, %v8170_v17  ;;  %6932 = vst.msk [vmem:[%s9999_s25 + $0x608] sm:$0xf] %vm6545_vm3, %v8394_v18  ;;  %v8171_v24 = vpack.c.bf16 %v4468_v19, %v4468_v19  ;;  %v8395_v25 = vpack.c.bf16 %v4692_v20, %v4692_v20 }
 0x264   : > { %6706 = vst.msk [vmem:[%s9999_s25 + $0x280] sm:$0xf] %vm6545_vm3, %v8168_v8  ;;  %6930 = vst.msk [vmem:[%s9999_s25 + $0x600] sm:$0xf] %vm6545_vm3, %v8392_v21  ;;  %v8169_v27 = vpack.c.bf16 %v4466_v22, %v4466_v22  ;;  %v8393_v28 = vpack.c.bf16 %v4690_v23, %v4690_v23  ;;  %v8852_v29 = vpop.f32.mrb[164].mxu0  ;;  %v9076_v30 = vpop.f32.mrb[164].mxu1 }
 0x265   : > { %6709 = vst.msk [vmem:[%s9999_s25 + $0x28c] sm:$0xf] %vm6545_vm3, %v8171_v24  ;;  %6933 = vst.msk [vmem:[%s9999_s25 + $0x60c] sm:$0xf] %vm6545_vm3, %v8395_v25  ;;  %v3179_v31 = vadd.f32 %v11038_v59, %v8852_v29  ;;  %v4075_v32 = vadd.f32 %v11038_v59, %v9076_v30  ;;  %v3170_v33 = vpop.f32.mrb[165].mxu0  ;;  %v4066_v34 = vpop.f32.mrb[165].mxu1 }
 0x266   : > { %6707 = vst.msk [vmem:[%s9999_s25 + $0x284] sm:$0xf] %vm6545_vm3, %v8169_v27  ;;  %6931 = vst.msk [vmem:[%s9999_s25 + $0x604] sm:$0xf] %vm6545_vm3, %v8393_v28  ;;  %v3171_v35 = vadd.f32 %v11038_v59, %v3170_v33  ;;  %v4067_v36 = vadd.f32 %v11038_v59, %v4066_v34  ;;  %v8853_v37 = vpop.f32.mrb[166].mxu0  ;;  %v9077_v38 = vpop.f32.mrb[166].mxu1 }
 0x267   : > { %v4471_v39 = vmax.f32 %v3179_v31, 0.0  ;;  %v4695_v40 = vmax.f32 %v4075_v32, 0.0  ;;  %v3182_v41 = vadd.f32 %v11038_v59, %v8853_v37  ;;  %v4078_v42 = vadd.f32 %v11038_v59, %v9077_v38  ;;  %v3173_v43 = vpop.f32.mrb[167].mxu0  ;;  %v4069_v44 = vpop.f32.mrb[167].mxu1 }
 0x268   : > { %v4469_v45 = vmax.f32 %v3171_v35, 0.0  ;;  %v4693_v46 = vmax.f32 %v4067_v36, 0.0  ;;  %v3174_v47 = vadd.f32 %v11038_v59, %v3173_v43  ;;  %v4070_v48 = vadd.f32 %v11038_v59, %v4069_v44 }
 0x269   : > { %v8174_v49 = vpack.c.bf16 %v4471_v39, %v4471_v39  ;;  %v8398_v50 = vpack.c.bf16 %v4695_v40, %v4695_v40  ;;  %v4472_v51 = vmax.f32 %v3182_v41, 0.0  ;;  %v4696_v53 = vmax.f32 %v4078_v42, 0.0 }
 0x26a   : > { %v8172_v54 = vpack.c.bf16 %v4469_v45, %v4469_v45  ;;  %v8396_v55 = vpack.c.bf16 %v4693_v46, %v4693_v46  ;;  %v4470_v26 = vmax.f32 %v3174_v47, 0.0  ;;  %v4694_v56 = vmax.f32 %v4070_v48, 0.0 }
 0x26b   : > { %6712 = vst.msk [vmem:[%s9999_s25 + $0x298] sm:$0xf] %vm6545_vm3, %v8174_v49  ;;  %6936 = vst.msk [vmem:[%s9999_s25 + $0x618] sm:$0xf] %vm6545_vm3, %v8398_v50  ;;  %v8175_v57 = vpack.c.bf16 %v4472_v51, %v4472_v51  ;;  %v8399_v58 = vpack.c.bf16 %v4696_v53, %v4696_v53 }
 0x26c   : > { %6710 = vst.msk [vmem:[%s9999_s25 + $0x290] sm:$0xf] %vm6545_vm3, %v8172_v54  ;;  %6934 = vst.msk [vmem:[%s9999_s25 + $0x610] sm:$0xf] %vm6545_vm3, %v8396_v55  ;;  %v8173_v60 = vpack.c.bf16 %v4470_v26, %v4470_v26  ;;  %v8397_v61 = vpack.c.bf16 %v4694_v56, %v4694_v56  ;;  %v8856_v62 = vpop.f32.mrb[168].mxu0  ;;  %v9080_v63 = vpop.f32.mrb[168].mxu1 }
 0x26d   : > { %6713 = vst.msk [vmem:[%s9999_s25 + $0x29c] sm:$0xf] %vm6545_vm3, %v8175_v57  ;;  %6937 = vst.msk [vmem:[%s9999_s25 + $0x61c] sm:$0xf] %vm6545_vm3, %v8399_v58  ;;  %v3195_v0 = vadd.f32 %v11038_v59, %v8856_v62  ;;  %v4091_v1 = vadd.f32 %v11038_v59, %v9080_v63  ;;  %v3186_v2 = vpop.f32.mrb[169].mxu0  ;;  %v4082_v52 = vpop.f32.mrb[169].mxu1 }
 0x26e   : > { %6711 = vst.msk [vmem:[%s9999_s25 + $0x294] sm:$0xf] %vm6545_vm3, %v8173_v60  ;;  %6935 = vst.msk [vmem:[%s9999_s25 + $0x614] sm:$0xf] %vm6545_vm3, %v8397_v61  ;;  %v3187_v3 = vadd.f32 %v11038_v59, %v3186_v2  ;;  %v4083_v4 = vadd.f32 %v11038_v59, %v4082_v52  ;;  %v8857_v5 = vpop.f32.mrb[170].mxu0  ;;  %v9081_v6 = vpop.f32.mrb[170].mxu1 }
 0x26f   : > { %v4475_v7 = vmax.f32 %v3195_v0, 0.0  ;;  %v4699_v9 = vmax.f32 %v4091_v1, 0.0  ;;  %v3198_v10 = vadd.f32 %v11038_v59, %v8857_v5  ;;  %v4094_v11 = vadd.f32 %v11038_v59, %v9081_v6  ;;  %v3189_v12 = vpop.f32.mrb[171].mxu0  ;;  %v4085_v13 = vpop.f32.mrb[171].mxu1 }
 0x270   : > { %v4473_v14 = vmax.f32 %v3187_v3, 0.0  ;;  %v4697_v15 = vmax.f32 %v4083_v4, 0.0  ;;  %v3190_v16 = vadd.f32 %v11038_v59, %v3189_v12  ;;  %v4086_v17 = vadd.f32 %v11038_v59, %v4085_v13 }
 0x271   : > { %v8178_v18 = vpack.c.bf16 %v4475_v7, %v4475_v7  ;;  %v8402_v19 = vpack.c.bf16 %v4699_v9, %v4699_v9  ;;  %v4476_v20 = vmax.f32 %v3198_v10, 0.0  ;;  %v4700_v8 = vmax.f32 %v4094_v11, 0.0 }
 0x272   : > { %v8176_v21 = vpack.c.bf16 %v4473_v14, %v4473_v14  ;;  %v8400_v22 = vpack.c.bf16 %v4697_v15, %v4697_v15  ;;  %v4474_v23 = vmax.f32 %v3190_v16, 0.0  ;;  %v4698_v24 = vmax.f32 %v4086_v17, 0.0 }
 0x273   : > { %6716 = vst.msk [vmem:[%s9999_s25 + $0x2a8] sm:$0xf] %vm6545_vm3, %v8178_v18  ;;  %6940 = vst.msk [vmem:[%s9999_s25 + $0x628] sm:$0xf] %vm6545_vm3, %v8402_v19  ;;  %v8179_v25 = vpack.c.bf16 %v4476_v20, %v4476_v20  ;;  %v8403_v27 = vpack.c.bf16 %v4700_v8, %v4700_v8 }
 0x274   : > { %6714 = vst.msk [vmem:[%s9999_s25 + $0x2a0] sm:$0xf] %vm6545_vm3, %v8176_v21  ;;  %6938 = vst.msk [vmem:[%s9999_s25 + $0x620] sm:$0xf] %vm6545_vm3, %v8400_v22  ;;  %v8177_v28 = vpack.c.bf16 %v4474_v23, %v4474_v23  ;;  %v8401_v29 = vpack.c.bf16 %v4698_v24, %v4698_v24  ;;  %v8860_v30 = vpop.f32.mrb[172].mxu0  ;;  %v9084_v31 = vpop.f32.mrb[172].mxu1 }
 0x275   : > { %6717 = vst.msk [vmem:[%s9999_s25 + $0x2ac] sm:$0xf] %vm6545_vm3, %v8179_v25  ;;  %6941 = vst.msk [vmem:[%s9999_s25 + $0x62c] sm:$0xf] %vm6545_vm3, %v8403_v27  ;;  %v3211_v32 = vadd.f32 %v11038_v59, %v8860_v30  ;;  %v4107_v33 = vadd.f32 %v11038_v59, %v9084_v31  ;;  %v3202_v34 = vpop.f32.mrb[173].mxu0  ;;  %v4098_v35 = vpop.f32.mrb[173].mxu1 }
 0x276   : > { %6715 = vst.msk [vmem:[%s9999_s25 + $0x2a4] sm:$0xf] %vm6545_vm3, %v8177_v28  ;;  %6939 = vst.msk [vmem:[%s9999_s25 + $0x624] sm:$0xf] %vm6545_vm3, %v8401_v29  ;;  %v3203_v36 = vadd.f32 %v11038_v59, %v3202_v34  ;;  %v4099_v37 = vadd.f32 %v11038_v59, %v4098_v35  ;;  %v8861_v38 = vpop.f32.mrb[174].mxu0  ;;  %v9085_v39 = vpop.f32.mrb[174].mxu1 }
 0x277   : > { %v4479_v40 = vmax.f32 %v3211_v32, 0.0  ;;  %v4703_v41 = vmax.f32 %v4107_v33, 0.0  ;;  %v3214_v42 = vadd.f32 %v11038_v59, %v8861_v38  ;;  %v4110_v43 = vadd.f32 %v11038_v59, %v9085_v39  ;;  %v3205_v44 = vpop.f32.mrb[175].mxu0  ;;  %v4101_v45 = vpop.f32.mrb[175].mxu1 }
 0x278   : > { %v4477_v46 = vmax.f32 %v3203_v36, 0.0  ;;  %v4701_v47 = vmax.f32 %v4099_v37, 0.0  ;;  %v3206_v48 = vadd.f32 %v11038_v59, %v3205_v44  ;;  %v4102_v49 = vadd.f32 %v11038_v59, %v4101_v45 }
 0x279   : > { %v8182_v50 = vpack.c.bf16 %v4479_v40, %v4479_v40  ;;  %v8406_v51 = vpack.c.bf16 %v4703_v41, %v4703_v41  ;;  %v4480_v53 = vmax.f32 %v3214_v42, 0.0  ;;  %v4704_v54 = vmax.f32 %v4110_v43, 0.0 }
 0x27a   : > { %v8180_v55 = vpack.c.bf16 %v4477_v46, %v4477_v46  ;;  %v8404_v26 = vpack.c.bf16 %v4701_v47, %v4701_v47  ;;  %v4478_v56 = vmax.f32 %v3206_v48, 0.0  ;;  %v4702_v57 = vmax.f32 %v4102_v49, 0.0 }
 0x27b   : > { %6720 = vst.msk [vmem:[%s9999_s25 + $0x2b8] sm:$0xf] %vm6545_vm3, %v8182_v50  ;;  %6944 = vst.msk [vmem:[%s9999_s25 + $0x638] sm:$0xf] %vm6545_vm3, %v8406_v51  ;;  %v8183_v58 = vpack.c.bf16 %v4480_v53, %v4480_v53  ;;  %v8407_v60 = vpack.c.bf16 %v4704_v54, %v4704_v54 }
 0x27c   : > { %6718 = vst.msk [vmem:[%s9999_s25 + $0x2b0] sm:$0xf] %vm6545_vm3, %v8180_v55  ;;  %6942 = vst.msk [vmem:[%s9999_s25 + $0x630] sm:$0xf] %vm6545_vm3, %v8404_v26  ;;  %v8181_v61 = vpack.c.bf16 %v4478_v56, %v4478_v56  ;;  %v8405_v62 = vpack.c.bf16 %v4702_v57, %v4702_v57  ;;  %v8864_v63 = vpop.f32.mrb[176].mxu0  ;;  %v9088_v0 = vpop.f32.mrb[176].mxu1 }
 0x27d   : > { %6721 = vst.msk [vmem:[%s9999_s25 + $0x2bc] sm:$0xf] %vm6545_vm3, %v8183_v58  ;;  %6945 = vst.msk [vmem:[%s9999_s25 + $0x63c] sm:$0xf] %vm6545_vm3, %v8407_v60  ;;  %v3227_v1 = vadd.f32 %v11038_v59, %v8864_v63  ;;  %v4123_v2 = vadd.f32 %v11038_v59, %v9088_v0  ;;  %v3218_v52 = vpop.f32.mrb[177].mxu0  ;;  %v4114_v3 = vpop.f32.mrb[177].mxu1 }
 0x27e   : > { %6719 = vst.msk [vmem:[%s9999_s25 + $0x2b4] sm:$0xf] %vm6545_vm3, %v8181_v61  ;;  %6943 = vst.msk [vmem:[%s9999_s25 + $0x634] sm:$0xf] %vm6545_vm3, %v8405_v62  ;;  %v3219_v4 = vadd.f32 %v11038_v59, %v3218_v52  ;;  %v4115_v5 = vadd.f32 %v11038_v59, %v4114_v3  ;;  %v8865_v6 = vpop.f32.mrb[178].mxu0  ;;  %v9089_v7 = vpop.f32.mrb[178].mxu1 }
 0x27f   : > { %v4483_v9 = vmax.f32 %v3227_v1, 0.0  ;;  %v4707_v10 = vmax.f32 %v4123_v2, 0.0  ;;  %v3230_v11 = vadd.f32 %v11038_v59, %v8865_v6  ;;  %v4126_v12 = vadd.f32 %v11038_v59, %v9089_v7  ;;  %v3221_v13 = vpop.f32.mrb[179].mxu0  ;;  %v4117_v14 = vpop.f32.mrb[179].mxu1 }
 0x280   : > { %v4481_v15 = vmax.f32 %v3219_v4, 0.0  ;;  %v4705_v16 = vmax.f32 %v4115_v5, 0.0  ;;  %v3222_v17 = vadd.f32 %v11038_v59, %v3221_v13  ;;  %v4118_v18 = vadd.f32 %v11038_v59, %v4117_v14 }
 0x281   : > { %v8186_v19 = vpack.c.bf16 %v4483_v9, %v4483_v9  ;;  %v8410_v20 = vpack.c.bf16 %v4707_v10, %v4707_v10  ;;  %v4484_v8 = vmax.f32 %v3230_v11, 0.0  ;;  %v4708_v21 = vmax.f32 %v4126_v12, 0.0 }
 0x282   : > { %v8184_v22 = vpack.c.bf16 %v4481_v15, %v4481_v15  ;;  %v8408_v23 = vpack.c.bf16 %v4705_v16, %v4705_v16  ;;  %v4482_v24 = vmax.f32 %v3222_v17, 0.0  ;;  %v4706_v25 = vmax.f32 %v4118_v18, 0.0 }
 0x283   : > { %6724 = vst.msk [vmem:[%s9999_s25 + $0x2c8] sm:$0xf] %vm6545_vm3, %v8186_v19  ;;  %6948 = vst.msk [vmem:[%s9999_s25 + $0x648] sm:$0xf] %vm6545_vm3, %v8410_v20  ;;  %v8187_v27 = vpack.c.bf16 %v4484_v8, %v4484_v8  ;;  %v8411_v28 = vpack.c.bf16 %v4708_v21, %v4708_v21 }
 0x284   : > { %6722 = vst.msk [vmem:[%s9999_s25 + $0x2c0] sm:$0xf] %vm6545_vm3, %v8184_v22  ;;  %6946 = vst.msk [vmem:[%s9999_s25 + $0x640] sm:$0xf] %vm6545_vm3, %v8408_v23  ;;  %v8185_v29 = vpack.c.bf16 %v4482_v24, %v4482_v24  ;;  %v8409_v30 = vpack.c.bf16 %v4706_v25, %v4706_v25  ;;  %v8868_v31 = vpop.f32.mrb[180].mxu0  ;;  %v9092_v32 = vpop.f32.mrb[180].mxu1 }
 0x285   : > { %6725 = vst.msk [vmem:[%s9999_s25 + $0x2cc] sm:$0xf] %vm6545_vm3, %v8187_v27  ;;  %6949 = vst.msk [vmem:[%s9999_s25 + $0x64c] sm:$0xf] %vm6545_vm3, %v8411_v28  ;;  %v3243_v33 = vadd.f32 %v11038_v59, %v8868_v31  ;;  %v4139_v34 = vadd.f32 %v11038_v59, %v9092_v32  ;;  %v3234_v35 = vpop.f32.mrb[181].mxu0  ;;  %v4130_v36 = vpop.f32.mrb[181].mxu1 }
 0x286   : > { %6723 = vst.msk [vmem:[%s9999_s25 + $0x2c4] sm:$0xf] %vm6545_vm3, %v8185_v29  ;;  %6947 = vst.msk [vmem:[%s9999_s25 + $0x644] sm:$0xf] %vm6545_vm3, %v8409_v30  ;;  %v3235_v37 = vadd.f32 %v11038_v59, %v3234_v35  ;;  %v4131_v38 = vadd.f32 %v11038_v59, %v4130_v36  ;;  %v8869_v39 = vpop.f32.mrb[182].mxu0  ;;  %v9093_v40 = vpop.f32.mrb[182].mxu1 }
 0x287   : > { %v4487_v41 = vmax.f32 %v3243_v33, 0.0  ;;  %v4711_v42 = vmax.f32 %v4139_v34, 0.0  ;;  %v3246_v43 = vadd.f32 %v11038_v59, %v8869_v39  ;;  %v4142_v44 = vadd.f32 %v11038_v59, %v9093_v40  ;;  %v3237_v45 = vpop.f32.mrb[183].mxu0  ;;  %v4133_v46 = vpop.f32.mrb[183].mxu1  ;;  %v11355_v33 = vld [vmem:[%s11644_s2] ss:$0 sm:$0xff] }
 0x288   : > { %v4485_v47 = vmax.f32 %v3235_v37, 0.0  ;;  %v4709_v48 = vmax.f32 %v4131_v38, 0.0  ;;  %v3238_v49 = vadd.f32 %v11038_v59, %v3237_v45  ;;  %v4134_v50 = vadd.f32 %v11038_v59, %v4133_v46 }
 0x289   : > { %v8190_v51 = vpack.c.bf16 %v4487_v41, %v4487_v41  ;;  %v8414_v53 = vpack.c.bf16 %v4711_v42, %v4711_v42  ;;  %v4488_v54 = vmax.f32 %v3246_v43, 0.0  ;;  %v4712_v55 = vmax.f32 %v4142_v44, 0.0 }
 0x28a   : > { %v8188_v26 = vpack.c.bf16 %v4485_v47, %v4485_v47  ;;  %v8412_v56 = vpack.c.bf16 %v4709_v48, %v4709_v48  ;;  %v4486_v57 = vmax.f32 %v3238_v49, 0.0  ;;  %v4710_v58 = vmax.f32 %v4134_v50, 0.0 }
 0x28b   : > { %6728 = vst.msk [vmem:[%s9999_s25 + $0x2d8] sm:$0xf] %vm6545_vm3, %v8190_v51  ;;  %6952 = vst.msk [vmem:[%s9999_s25 + $0x658] sm:$0xf] %vm6545_vm3, %v8414_v53  ;;  %v8191_v60 = vpack.c.bf16 %v4488_v54, %v4488_v54  ;;  %v8415_v61 = vpack.c.bf16 %v4712_v55, %v4712_v55 }
 0x28c   : > { %6726 = vst.msk [vmem:[%s9999_s25 + $0x2d0] sm:$0xf] %vm6545_vm3, %v8188_v26  ;;  %6950 = vst.msk [vmem:[%s9999_s25 + $0x650] sm:$0xf] %vm6545_vm3, %v8412_v56  ;;  %v8189_v62 = vpack.c.bf16 %v4486_v57, %v4486_v57  ;;  %v8413_v63 = vpack.c.bf16 %v4710_v58, %v4710_v58  ;;  %v8872_v0 = vpop.f32.mrb[184].mxu0  ;;  %v9096_v1 = vpop.f32.mrb[184].mxu1 }
 0x28d   : > { %6729 = vst.msk [vmem:[%s9999_s25 + $0x2dc] sm:$0xf] %vm6545_vm3, %v8191_v60  ;;  %6953 = vst.msk [vmem:[%s9999_s25 + $0x65c] sm:$0xf] %vm6545_vm3, %v8415_v61  ;;  %v3259_v2 = vadd.f32 %v11038_v59, %v8872_v0  ;;  %v4155_v52 = vadd.f32 %v11038_v59, %v9096_v1  ;;  %v3250_v3 = vpop.f32.mrb[185].mxu0  ;;  %v4146_v4 = vpop.f32.mrb[185].mxu1 }
 0x28e   : > { %6727 = vst.msk [vmem:[%s9999_s25 + $0x2d4] sm:$0xf] %vm6545_vm3, %v8189_v62  ;;  %6951 = vst.msk [vmem:[%s9999_s25 + $0x654] sm:$0xf] %vm6545_vm3, %v8413_v63  ;;  %v3251_v5 = vadd.f32 %v11038_v59, %v3250_v3  ;;  %v4147_v6 = vadd.f32 %v11038_v59, %v4146_v4  ;;  %v8873_v7 = vpop.f32.mrb[186].mxu0  ;;  %v9097_v9 = vpop.f32.mrb[186].mxu1 }
 0x28f   : > { %v4491_v10 = vmax.f32 %v3259_v2, 0.0  ;;  %v4715_v11 = vmax.f32 %v4155_v52, 0.0  ;;  %v3262_v12 = vadd.f32 %v11038_v59, %v8873_v7  ;;  %v4158_v13 = vadd.f32 %v11038_v59, %v9097_v9  ;;  %v3253_v14 = vpop.f32.mrb[187].mxu0  ;;  %v4149_v15 = vpop.f32.mrb[187].mxu1 }
 0x290   : > { %v4489_v16 = vmax.f32 %v3251_v5, 0.0  ;;  %v4713_v17 = vmax.f32 %v4147_v6, 0.0  ;;  %v3254_v18 = vadd.f32 %v11038_v59, %v3253_v14  ;;  %v4150_v19 = vadd.f32 %v11038_v59, %v4149_v15 }
 0x291   : > { %v8194_v20 = vpack.c.bf16 %v4491_v10, %v4491_v10  ;;  %v8418_v8 = vpack.c.bf16 %v4715_v11, %v4715_v11  ;;  %v4492_v21 = vmax.f32 %v3262_v12, 0.0  ;;  %v4716_v22 = vmax.f32 %v4158_v13, 0.0 }
 0x292   : > { %v8192_v23 = vpack.c.bf16 %v4489_v16, %v4489_v16  ;;  %v8416_v24 = vpack.c.bf16 %v4713_v17, %v4713_v17  ;;  %v4490_v25 = vmax.f32 %v3254_v18, 0.0  ;;  %v4714_v27 = vmax.f32 %v4150_v19, 0.0 }
 0x293   : > { %6732 = vst.msk [vmem:[%s9999_s25 + $0x2e8] sm:$0xf] %vm6545_vm3, %v8194_v20  ;;  %6956 = vst.msk [vmem:[%s9999_s25 + $0x668] sm:$0xf] %vm6545_vm3, %v8418_v8  ;;  %v8195_v28 = vpack.c.bf16 %v4492_v21, %v4492_v21  ;;  %v8419_v29 = vpack.c.bf16 %v4716_v22, %v4716_v22 }
 0x294   : > { %6730 = vst.msk [vmem:[%s9999_s25 + $0x2e0] sm:$0xf] %vm6545_vm3, %v8192_v23  ;;  %6954 = vst.msk [vmem:[%s9999_s25 + $0x660] sm:$0xf] %vm6545_vm3, %v8416_v24  ;;  %v8193_v59 = vpack.c.bf16 %v4490_v25, %v4490_v25  ;;  %v8417_v30 = vpack.c.bf16 %v4714_v27, %v4714_v27  ;;  %v8876_v31 = vpop.f32.mrb[188].mxu0  ;;  %v9100_v32 = vpop.f32.mrb[188].mxu1 }
 0x295   : > { %6733 = vst.msk [vmem:[%s9999_s25 + $0x2ec] sm:$0xf] %vm6545_vm3, %v8195_v28  ;;  %6957 = vst.msk [vmem:[%s9999_s25 + $0x66c] sm:$0xf] %vm6545_vm3, %v8419_v29  ;;  %v3275_v34 = vadd.f32 %v11355_v33, %v8876_v31  ;;  %v4171_v35 = vadd.f32 %v11355_v33, %v9100_v32  ;;  %v3266_v36 = vpop.f32.mrb[189].mxu0  ;;  %v4162_v37 = vpop.f32.mrb[189].mxu1 }
 0x296   : > { %6731 = vst.msk [vmem:[%s9999_s25 + $0x2e4] sm:$0xf] %vm6545_vm3, %v8193_v59  ;;  %6955 = vst.msk [vmem:[%s9999_s25 + $0x664] sm:$0xf] %vm6545_vm3, %v8417_v30  ;;  %v3267_v38 = vadd.f32 %v11355_v33, %v3266_v36  ;;  %v4163_v39 = vadd.f32 %v11355_v33, %v4162_v37  ;;  %v8877_v40 = vpop.f32.mrb[190].mxu0  ;;  %v9101_v41 = vpop.f32.mrb[190].mxu1 }
 0x297   : > { %v4495_v42 = vmax.f32 %v3275_v34, 0.0  ;;  %v4719_v43 = vmax.f32 %v4171_v35, 0.0  ;;  %v3278_v44 = vadd.f32 %v11355_v33, %v8877_v40  ;;  %v4174_v45 = vadd.f32 %v11355_v33, %v9101_v41  ;;  %v3269_v46 = vpop.f32.mrb[191].mxu0  ;;  %v4165_v47 = vpop.f32.mrb[191].mxu1 }
 0x298   : > { %v4493_v48 = vmax.f32 %v3267_v38, 0.0  ;;  %v4717_v49 = vmax.f32 %v4163_v39, 0.0  ;;  %v3270_v50 = vadd.f32 %v11355_v33, %v3269_v46  ;;  %v4166_v51 = vadd.f32 %v11355_v33, %v4165_v47 }
 0x299   : > { %v8198_v53 = vpack.c.bf16 %v4495_v42, %v4495_v42  ;;  %v8422_v54 = vpack.c.bf16 %v4719_v43, %v4719_v43  ;;  %v4496_v55 = vmax.f32 %v3278_v44, 0.0  ;;  %v4720_v26 = vmax.f32 %v4174_v45, 0.0 }
 0x29a   : > { %v8196_v56 = vpack.c.bf16 %v4493_v48, %v4493_v48  ;;  %v8420_v57 = vpack.c.bf16 %v4717_v49, %v4717_v49  ;;  %v4494_v58 = vmax.f32 %v3270_v50, 0.0  ;;  %v4718_v60 = vmax.f32 %v4166_v51, 0.0 }
 0x29b   : > { %6736 = vst.msk [vmem:[%s9999_s25 + $0x2f8] sm:$0xf] %vm6545_vm3, %v8198_v53  ;;  %6960 = vst.msk [vmem:[%s9999_s25 + $0x678] sm:$0xf] %vm6545_vm3, %v8422_v54  ;;  %v8199_v61 = vpack.c.bf16 %v4496_v55, %v4496_v55  ;;  %v8423_v62 = vpack.c.bf16 %v4720_v26, %v4720_v26 }
 0x29c   : > { %6734 = vst.msk [vmem:[%s9999_s25 + $0x2f0] sm:$0xf] %vm6545_vm3, %v8196_v56  ;;  %6958 = vst.msk [vmem:[%s9999_s25 + $0x670] sm:$0xf] %vm6545_vm3, %v8420_v57  ;;  %v8197_v63 = vpack.c.bf16 %v4494_v58, %v4494_v58  ;;  %v8421_v0 = vpack.c.bf16 %v4718_v60, %v4718_v60  ;;  %v8880_v1 = vpop.f32.mrb[192].mxu0  ;;  %v9104_v2 = vpop.f32.mrb[192].mxu1 }
 0x29d   : > { %6737 = vst.msk [vmem:[%s9999_s25 + $0x2fc] sm:$0xf] %vm6545_vm3, %v8199_v61  ;;  %6961 = vst.msk [vmem:[%s9999_s25 + $0x67c] sm:$0xf] %vm6545_vm3, %v8423_v62  ;;  %v3291_v52 = vadd.f32 %v11355_v33, %v8880_v1  ;;  %v4187_v3 = vadd.f32 %v11355_v33, %v9104_v2  ;;  %v3282_v4 = vpop.f32.mrb[193].mxu0  ;;  %v4178_v5 = vpop.f32.mrb[193].mxu1 }
 0x29e   : > { %6735 = vst.msk [vmem:[%s9999_s25 + $0x2f4] sm:$0xf] %vm6545_vm3, %v8197_v63  ;;  %6959 = vst.msk [vmem:[%s9999_s25 + $0x674] sm:$0xf] %vm6545_vm3, %v8421_v0  ;;  %v3283_v6 = vadd.f32 %v11355_v33, %v3282_v4  ;;  %v4179_v7 = vadd.f32 %v11355_v33, %v4178_v5  ;;  %v8881_v9 = vpop.f32.mrb[194].mxu0  ;;  %v9105_v10 = vpop.f32.mrb[194].mxu1 }
 0x29f   : > { %v4499_v11 = vmax.f32 %v3291_v52, 0.0  ;;  %v4723_v12 = vmax.f32 %v4187_v3, 0.0  ;;  %v3294_v13 = vadd.f32 %v11355_v33, %v8881_v9  ;;  %v4190_v14 = vadd.f32 %v11355_v33, %v9105_v10  ;;  %v3285_v15 = vpop.f32.mrb[195].mxu0  ;;  %v4181_v16 = vpop.f32.mrb[195].mxu1 }
 0x2a0   : > { %v4497_v17 = vmax.f32 %v3283_v6, 0.0  ;;  %v4721_v18 = vmax.f32 %v4179_v7, 0.0  ;;  %v3286_v19 = vadd.f32 %v11355_v33, %v3285_v15  ;;  %v4182_v20 = vadd.f32 %v11355_v33, %v4181_v16 }
 0x2a1   : > { %v8202_v8 = vpack.c.bf16 %v4499_v11, %v4499_v11  ;;  %v8426_v21 = vpack.c.bf16 %v4723_v12, %v4723_v12  ;;  %v4500_v22 = vmax.f32 %v3294_v13, 0.0  ;;  %v4724_v23 = vmax.f32 %v4190_v14, 0.0 }
 0x2a2   : > { %v8200_v24 = vpack.c.bf16 %v4497_v17, %v4497_v17  ;;  %v8424_v25 = vpack.c.bf16 %v4721_v18, %v4721_v18  ;;  %v4498_v27 = vmax.f32 %v3286_v19, 0.0  ;;  %v4722_v28 = vmax.f32 %v4182_v20, 0.0 }
 0x2a3   : > { %6740 = vst.msk [vmem:[%s9999_s25 + $0x308] sm:$0xf] %vm6545_vm3, %v8202_v8  ;;  %6964 = vst.msk [vmem:[%s9999_s25 + $0x688] sm:$0xf] %vm6545_vm3, %v8426_v21  ;;  %v8203_v29 = vpack.c.bf16 %v4500_v22, %v4500_v22  ;;  %v8427_v59 = vpack.c.bf16 %v4724_v23, %v4724_v23 }
 0x2a4   : > { %6738 = vst.msk [vmem:[%s9999_s25 + $0x300] sm:$0xf] %vm6545_vm3, %v8200_v24  ;;  %6962 = vst.msk [vmem:[%s9999_s25 + $0x680] sm:$0xf] %vm6545_vm3, %v8424_v25  ;;  %v8201_v30 = vpack.c.bf16 %v4498_v27, %v4498_v27  ;;  %v8425_v31 = vpack.c.bf16 %v4722_v28, %v4722_v28  ;;  %v8884_v32 = vpop.f32.mrb[196].mxu0  ;;  %v9108_v34 = vpop.f32.mrb[196].mxu1 }
 0x2a5   : > { %6741 = vst.msk [vmem:[%s9999_s25 + $0x30c] sm:$0xf] %vm6545_vm3, %v8203_v29  ;;  %6965 = vst.msk [vmem:[%s9999_s25 + $0x68c] sm:$0xf] %vm6545_vm3, %v8427_v59  ;;  %v3307_v35 = vadd.f32 %v11355_v33, %v8884_v32  ;;  %v4203_v36 = vadd.f32 %v11355_v33, %v9108_v34  ;;  %v3298_v37 = vpop.f32.mrb[197].mxu0  ;;  %v4194_v38 = vpop.f32.mrb[197].mxu1 }
 0x2a6   : > { %6739 = vst.msk [vmem:[%s9999_s25 + $0x304] sm:$0xf] %vm6545_vm3, %v8201_v30  ;;  %6963 = vst.msk [vmem:[%s9999_s25 + $0x684] sm:$0xf] %vm6545_vm3, %v8425_v31  ;;  %v3299_v39 = vadd.f32 %v11355_v33, %v3298_v37  ;;  %v4195_v40 = vadd.f32 %v11355_v33, %v4194_v38  ;;  %v8885_v41 = vpop.f32.mrb[198].mxu0  ;;  %v9109_v42 = vpop.f32.mrb[198].mxu1 }
 0x2a7   : > { %v4503_v43 = vmax.f32 %v3307_v35, 0.0  ;;  %v4727_v44 = vmax.f32 %v4203_v36, 0.0  ;;  %v3310_v45 = vadd.f32 %v11355_v33, %v8885_v41  ;;  %v4206_v46 = vadd.f32 %v11355_v33, %v9109_v42  ;;  %v3301_v47 = vpop.f32.mrb[199].mxu0  ;;  %v4197_v48 = vpop.f32.mrb[199].mxu1 }
 0x2a8   : > { %v4501_v49 = vmax.f32 %v3299_v39, 0.0  ;;  %v4725_v50 = vmax.f32 %v4195_v40, 0.0  ;;  %v3302_v51 = vadd.f32 %v11355_v33, %v3301_v47  ;;  %v4198_v53 = vadd.f32 %v11355_v33, %v4197_v48 }
 0x2a9   : > { %v8206_v54 = vpack.c.bf16 %v4503_v43, %v4503_v43  ;;  %v8430_v55 = vpack.c.bf16 %v4727_v44, %v4727_v44  ;;  %v4504_v26 = vmax.f32 %v3310_v45, 0.0  ;;  %v4728_v56 = vmax.f32 %v4206_v46, 0.0 }
 0x2aa   : > { %v8204_v57 = vpack.c.bf16 %v4501_v49, %v4501_v49  ;;  %v8428_v58 = vpack.c.bf16 %v4725_v50, %v4725_v50  ;;  %v4502_v60 = vmax.f32 %v3302_v51, 0.0  ;;  %v4726_v61 = vmax.f32 %v4198_v53, 0.0 }
 0x2ab   : > { %6744 = vst.msk [vmem:[%s9999_s25 + $0x318] sm:$0xf] %vm6545_vm3, %v8206_v54  ;;  %6968 = vst.msk [vmem:[%s9999_s25 + $0x698] sm:$0xf] %vm6545_vm3, %v8430_v55  ;;  %v8207_v62 = vpack.c.bf16 %v4504_v26, %v4504_v26  ;;  %v8431_v63 = vpack.c.bf16 %v4728_v56, %v4728_v56 }
 0x2ac   : > { %6742 = vst.msk [vmem:[%s9999_s25 + $0x310] sm:$0xf] %vm6545_vm3, %v8204_v57  ;;  %6966 = vst.msk [vmem:[%s9999_s25 + $0x690] sm:$0xf] %vm6545_vm3, %v8428_v58  ;;  %v8205_v0 = vpack.c.bf16 %v4502_v60, %v4502_v60  ;;  %v8429_v1 = vpack.c.bf16 %v4726_v61, %v4726_v61  ;;  %v8888_v2 = vpop.f32.mrb[200].mxu0  ;;  %v9112_v52 = vpop.f32.mrb[200].mxu1 }
 0x2ad   : > { %6745 = vst.msk [vmem:[%s9999_s25 + $0x31c] sm:$0xf] %vm6545_vm3, %v8207_v62  ;;  %6969 = vst.msk [vmem:[%s9999_s25 + $0x69c] sm:$0xf] %vm6545_vm3, %v8431_v63  ;;  %v3323_v3 = vadd.f32 %v11355_v33, %v8888_v2  ;;  %v4219_v4 = vadd.f32 %v11355_v33, %v9112_v52  ;;  %v3314_v5 = vpop.f32.mrb[201].mxu0  ;;  %v4210_v6 = vpop.f32.mrb[201].mxu1 }
 0x2ae   : > { %6743 = vst.msk [vmem:[%s9999_s25 + $0x314] sm:$0xf] %vm6545_vm3, %v8205_v0  ;;  %6967 = vst.msk [vmem:[%s9999_s25 + $0x694] sm:$0xf] %vm6545_vm3, %v8429_v1  ;;  %v3315_v7 = vadd.f32 %v11355_v33, %v3314_v5  ;;  %v4211_v9 = vadd.f32 %v11355_v33, %v4210_v6  ;;  %v8889_v10 = vpop.f32.mrb[202].mxu0  ;;  %v9113_v11 = vpop.f32.mrb[202].mxu1 }
 0x2af   : > { %v4507_v12 = vmax.f32 %v3323_v3, 0.0  ;;  %v4731_v13 = vmax.f32 %v4219_v4, 0.0  ;;  %v3326_v14 = vadd.f32 %v11355_v33, %v8889_v10  ;;  %v4222_v15 = vadd.f32 %v11355_v33, %v9113_v11  ;;  %v3317_v16 = vpop.f32.mrb[203].mxu0  ;;  %v4213_v17 = vpop.f32.mrb[203].mxu1 }
 0x2b0   : > { %v4505_v18 = vmax.f32 %v3315_v7, 0.0  ;;  %v4729_v19 = vmax.f32 %v4211_v9, 0.0  ;;  %v3318_v20 = vadd.f32 %v11355_v33, %v3317_v16  ;;  %v4214_v8 = vadd.f32 %v11355_v33, %v4213_v17 }
 0x2b1   : > { %v8210_v21 = vpack.c.bf16 %v4507_v12, %v4507_v12  ;;  %v8434_v22 = vpack.c.bf16 %v4731_v13, %v4731_v13  ;;  %v4508_v23 = vmax.f32 %v3326_v14, 0.0  ;;  %v4732_v24 = vmax.f32 %v4222_v15, 0.0 }
 0x2b2   : > { %v8208_v25 = vpack.c.bf16 %v4505_v18, %v4505_v18  ;;  %v8432_v27 = vpack.c.bf16 %v4729_v19, %v4729_v19  ;;  %v4506_v28 = vmax.f32 %v3318_v20, 0.0  ;;  %v4730_v29 = vmax.f32 %v4214_v8, 0.0 }
 0x2b3   : > { %6748 = vst.msk [vmem:[%s9999_s25 + $0x328] sm:$0xf] %vm6545_vm3, %v8210_v21  ;;  %6972 = vst.msk [vmem:[%s9999_s25 + $0x6a8] sm:$0xf] %vm6545_vm3, %v8434_v22  ;;  %v8211_v59 = vpack.c.bf16 %v4508_v23, %v4508_v23  ;;  %v8435_v30 = vpack.c.bf16 %v4732_v24, %v4732_v24 }
 0x2b4   : > { %6746 = vst.msk [vmem:[%s9999_s25 + $0x320] sm:$0xf] %vm6545_vm3, %v8208_v25  ;;  %6970 = vst.msk [vmem:[%s9999_s25 + $0x6a0] sm:$0xf] %vm6545_vm3, %v8432_v27  ;;  %v8209_v31 = vpack.c.bf16 %v4506_v28, %v4506_v28  ;;  %v8433_v32 = vpack.c.bf16 %v4730_v29, %v4730_v29  ;;  %v8892_v34 = vpop.f32.mrb[204].mxu0  ;;  %v9116_v35 = vpop.f32.mrb[204].mxu1 }
 0x2b5   : > { %6749 = vst.msk [vmem:[%s9999_s25 + $0x32c] sm:$0xf] %vm6545_vm3, %v8211_v59  ;;  %6973 = vst.msk [vmem:[%s9999_s25 + $0x6ac] sm:$0xf] %vm6545_vm3, %v8435_v30  ;;  %v3339_v36 = vadd.f32 %v11355_v33, %v8892_v34  ;;  %v4235_v37 = vadd.f32 %v11355_v33, %v9116_v35  ;;  %v3330_v38 = vpop.f32.mrb[205].mxu0  ;;  %v4226_v39 = vpop.f32.mrb[205].mxu1 }
 0x2b6   : > { %6747 = vst.msk [vmem:[%s9999_s25 + $0x324] sm:$0xf] %vm6545_vm3, %v8209_v31  ;;  %6971 = vst.msk [vmem:[%s9999_s25 + $0x6a4] sm:$0xf] %vm6545_vm3, %v8433_v32  ;;  %v3331_v40 = vadd.f32 %v11355_v33, %v3330_v38  ;;  %v4227_v41 = vadd.f32 %v11355_v33, %v4226_v39  ;;  %v8893_v42 = vpop.f32.mrb[206].mxu0  ;;  %v9117_v43 = vpop.f32.mrb[206].mxu1 }
 0x2b7   : > { %v4511_v44 = vmax.f32 %v3339_v36, 0.0  ;;  %v4735_v45 = vmax.f32 %v4235_v37, 0.0  ;;  %v3342_v46 = vadd.f32 %v11355_v33, %v8893_v42  ;;  %v4238_v47 = vadd.f32 %v11355_v33, %v9117_v43  ;;  %v3333_v48 = vpop.f32.mrb[207].mxu0  ;;  %v4229_v49 = vpop.f32.mrb[207].mxu1 }
 0x2b8   : > { %v4509_v50 = vmax.f32 %v3331_v40, 0.0  ;;  %v4733_v51 = vmax.f32 %v4227_v41, 0.0  ;;  %v3334_v53 = vadd.f32 %v11355_v33, %v3333_v48  ;;  %v4230_v54 = vadd.f32 %v11355_v33, %v4229_v49 }
 0x2b9   : > { %v8214_v55 = vpack.c.bf16 %v4511_v44, %v4511_v44  ;;  %v8438_v26 = vpack.c.bf16 %v4735_v45, %v4735_v45  ;;  %v4512_v56 = vmax.f32 %v3342_v46, 0.0  ;;  %v4736_v57 = vmax.f32 %v4238_v47, 0.0 }
 0x2ba   : > { %v8212_v58 = vpack.c.bf16 %v4509_v50, %v4509_v50  ;;  %v8436_v60 = vpack.c.bf16 %v4733_v51, %v4733_v51  ;;  %v4510_v61 = vmax.f32 %v3334_v53, 0.0  ;;  %v4734_v62 = vmax.f32 %v4230_v54, 0.0 }
 0x2bb   : > { %6752 = vst.msk [vmem:[%s9999_s25 + $0x338] sm:$0xf] %vm6545_vm3, %v8214_v55  ;;  %6976 = vst.msk [vmem:[%s9999_s25 + $0x6b8] sm:$0xf] %vm6545_vm3, %v8438_v26  ;;  %v8215_v63 = vpack.c.bf16 %v4512_v56, %v4512_v56  ;;  %v8439_v0 = vpack.c.bf16 %v4736_v57, %v4736_v57 }
 0x2bc   : > { %6750 = vst.msk [vmem:[%s9999_s25 + $0x330] sm:$0xf] %vm6545_vm3, %v8212_v58  ;;  %6974 = vst.msk [vmem:[%s9999_s25 + $0x6b0] sm:$0xf] %vm6545_vm3, %v8436_v60  ;;  %v8213_v1 = vpack.c.bf16 %v4510_v61, %v4510_v61  ;;  %v8437_v2 = vpack.c.bf16 %v4734_v62, %v4734_v62  ;;  %v8896_v52 = vpop.f32.mrb[208].mxu0  ;;  %v9120_v3 = vpop.f32.mrb[208].mxu1 }
 0x2bd   : > { %6753 = vst.msk [vmem:[%s9999_s25 + $0x33c] sm:$0xf] %vm6545_vm3, %v8215_v63  ;;  %6977 = vst.msk [vmem:[%s9999_s25 + $0x6bc] sm:$0xf] %vm6545_vm3, %v8439_v0  ;;  %v3355_v4 = vadd.f32 %v11355_v33, %v8896_v52  ;;  %v4251_v5 = vadd.f32 %v11355_v33, %v9120_v3  ;;  %v3346_v6 = vpop.f32.mrb[209].mxu0  ;;  %v4242_v7 = vpop.f32.mrb[209].mxu1 }
 0x2be   : > { %6751 = vst.msk [vmem:[%s9999_s25 + $0x334] sm:$0xf] %vm6545_vm3, %v8213_v1  ;;  %6975 = vst.msk [vmem:[%s9999_s25 + $0x6b4] sm:$0xf] %vm6545_vm3, %v8437_v2  ;;  %v3347_v9 = vadd.f32 %v11355_v33, %v3346_v6  ;;  %v4243_v10 = vadd.f32 %v11355_v33, %v4242_v7  ;;  %v8897_v11 = vpop.f32.mrb[210].mxu0  ;;  %v9121_v12 = vpop.f32.mrb[210].mxu1 }
 0x2bf   : > { %v4515_v13 = vmax.f32 %v3355_v4, 0.0  ;;  %v4739_v14 = vmax.f32 %v4251_v5, 0.0  ;;  %v3358_v15 = vadd.f32 %v11355_v33, %v8897_v11  ;;  %v4254_v16 = vadd.f32 %v11355_v33, %v9121_v12  ;;  %v3349_v17 = vpop.f32.mrb[211].mxu0  ;;  %v4245_v18 = vpop.f32.mrb[211].mxu1 }
 0x2c0   : > { %v4513_v19 = vmax.f32 %v3347_v9, 0.0  ;;  %v4737_v20 = vmax.f32 %v4243_v10, 0.0  ;;  %v3350_v8 = vadd.f32 %v11355_v33, %v3349_v17  ;;  %v4246_v21 = vadd.f32 %v11355_v33, %v4245_v18 }
 0x2c1   : > { %v8218_v22 = vpack.c.bf16 %v4515_v13, %v4515_v13  ;;  %v8442_v23 = vpack.c.bf16 %v4739_v14, %v4739_v14  ;;  %v4516_v24 = vmax.f32 %v3358_v15, 0.0  ;;  %v4740_v25 = vmax.f32 %v4254_v16, 0.0 }
 0x2c2   : > { %v8216_v27 = vpack.c.bf16 %v4513_v19, %v4513_v19  ;;  %v8440_v28 = vpack.c.bf16 %v4737_v20, %v4737_v20  ;;  %v4514_v29 = vmax.f32 %v3350_v8, 0.0  ;;  %v4738_v59 = vmax.f32 %v4246_v21, 0.0 }
 0x2c3   : > { %6756 = vst.msk [vmem:[%s9999_s25 + $0x348] sm:$0xf] %vm6545_vm3, %v8218_v22  ;;  %6980 = vst.msk [vmem:[%s9999_s25 + $0x6c8] sm:$0xf] %vm6545_vm3, %v8442_v23  ;;  %v8219_v30 = vpack.c.bf16 %v4516_v24, %v4516_v24  ;;  %v8443_v31 = vpack.c.bf16 %v4740_v25, %v4740_v25 }
 0x2c4   : > { %6754 = vst.msk [vmem:[%s9999_s25 + $0x340] sm:$0xf] %vm6545_vm3, %v8216_v27  ;;  %6978 = vst.msk [vmem:[%s9999_s25 + $0x6c0] sm:$0xf] %vm6545_vm3, %v8440_v28  ;;  %v8217_v32 = vpack.c.bf16 %v4514_v29, %v4514_v29  ;;  %v8441_v34 = vpack.c.bf16 %v4738_v59, %v4738_v59  ;;  %v8900_v35 = vpop.f32.mrb[212].mxu0  ;;  %v9124_v36 = vpop.f32.mrb[212].mxu1 }
 0x2c5   : > { %6757 = vst.msk [vmem:[%s9999_s25 + $0x34c] sm:$0xf] %vm6545_vm3, %v8219_v30  ;;  %6981 = vst.msk [vmem:[%s9999_s25 + $0x6cc] sm:$0xf] %vm6545_vm3, %v8443_v31  ;;  %v3371_v37 = vadd.f32 %v11355_v33, %v8900_v35  ;;  %v4267_v38 = vadd.f32 %v11355_v33, %v9124_v36  ;;  %v3362_v39 = vpop.f32.mrb[213].mxu0  ;;  %v4258_v40 = vpop.f32.mrb[213].mxu1 }
 0x2c6   : > { %6755 = vst.msk [vmem:[%s9999_s25 + $0x344] sm:$0xf] %vm6545_vm3, %v8217_v32  ;;  %6979 = vst.msk [vmem:[%s9999_s25 + $0x6c4] sm:$0xf] %vm6545_vm3, %v8441_v34  ;;  %v3363_v41 = vadd.f32 %v11355_v33, %v3362_v39  ;;  %v4259_v42 = vadd.f32 %v11355_v33, %v4258_v40  ;;  %v8901_v43 = vpop.f32.mrb[214].mxu0  ;;  %v9125_v44 = vpop.f32.mrb[214].mxu1 }
 0x2c7   : > { %v4519_v45 = vmax.f32 %v3371_v37, 0.0  ;;  %v4743_v46 = vmax.f32 %v4267_v38, 0.0  ;;  %v3374_v47 = vadd.f32 %v11355_v33, %v8901_v43  ;;  %v4270_v48 = vadd.f32 %v11355_v33, %v9125_v44  ;;  %v3365_v49 = vpop.f32.mrb[215].mxu0  ;;  %v4261_v50 = vpop.f32.mrb[215].mxu1 }
 0x2c8   : > { %v4517_v51 = vmax.f32 %v3363_v41, 0.0  ;;  %v4741_v53 = vmax.f32 %v4259_v42, 0.0  ;;  %v3366_v54 = vadd.f32 %v11355_v33, %v3365_v49  ;;  %v4262_v55 = vadd.f32 %v11355_v33, %v4261_v50 }
 0x2c9   : > { %v8222_v26 = vpack.c.bf16 %v4519_v45, %v4519_v45  ;;  %v8446_v56 = vpack.c.bf16 %v4743_v46, %v4743_v46  ;;  %v4520_v57 = vmax.f32 %v3374_v47, 0.0  ;;  %v4744_v58 = vmax.f32 %v4270_v48, 0.0 }
 0x2ca   : > { %v8220_v60 = vpack.c.bf16 %v4517_v51, %v4517_v51  ;;  %v8444_v61 = vpack.c.bf16 %v4741_v53, %v4741_v53  ;;  %v4518_v62 = vmax.f32 %v3366_v54, 0.0  ;;  %v4742_v63 = vmax.f32 %v4262_v55, 0.0 }
 0x2cb   : > { %6760 = vst.msk [vmem:[%s9999_s25 + $0x358] sm:$0xf] %vm6545_vm3, %v8222_v26  ;;  %6984 = vst.msk [vmem:[%s9999_s25 + $0x6d8] sm:$0xf] %vm6545_vm3, %v8446_v56  ;;  %v8223_v0 = vpack.c.bf16 %v4520_v57, %v4520_v57  ;;  %v8447_v1 = vpack.c.bf16 %v4744_v58, %v4744_v58 }
 0x2cc   : > { %6758 = vst.msk [vmem:[%s9999_s25 + $0x350] sm:$0xf] %vm6545_vm3, %v8220_v60  ;;  %6982 = vst.msk [vmem:[%s9999_s25 + $0x6d0] sm:$0xf] %vm6545_vm3, %v8444_v61  ;;  %v8221_v2 = vpack.c.bf16 %v4518_v62, %v4518_v62  ;;  %v8445_v52 = vpack.c.bf16 %v4742_v63, %v4742_v63  ;;  %v8904_v3 = vpop.f32.mrb[216].mxu0  ;;  %v9128_v4 = vpop.f32.mrb[216].mxu1 }
 0x2cd   : > { %6761 = vst.msk [vmem:[%s9999_s25 + $0x35c] sm:$0xf] %vm6545_vm3, %v8223_v0  ;;  %6985 = vst.msk [vmem:[%s9999_s25 + $0x6dc] sm:$0xf] %vm6545_vm3, %v8447_v1  ;;  %v3387_v5 = vadd.f32 %v11355_v33, %v8904_v3  ;;  %v4283_v6 = vadd.f32 %v11355_v33, %v9128_v4  ;;  %v3378_v7 = vpop.f32.mrb[217].mxu0  ;;  %v4274_v9 = vpop.f32.mrb[217].mxu1 }
 0x2ce   : > { %6759 = vst.msk [vmem:[%s9999_s25 + $0x354] sm:$0xf] %vm6545_vm3, %v8221_v2  ;;  %6983 = vst.msk [vmem:[%s9999_s25 + $0x6d4] sm:$0xf] %vm6545_vm3, %v8445_v52  ;;  %v3379_v10 = vadd.f32 %v11355_v33, %v3378_v7  ;;  %v4275_v11 = vadd.f32 %v11355_v33, %v4274_v9  ;;  %v8905_v12 = vpop.f32.mrb[218].mxu0  ;;  %v9129_v13 = vpop.f32.mrb[218].mxu1 }
 0x2cf   : > { %v4523_v14 = vmax.f32 %v3387_v5, 0.0  ;;  %v4747_v15 = vmax.f32 %v4283_v6, 0.0  ;;  %v3390_v16 = vadd.f32 %v11355_v33, %v8905_v12  ;;  %v4286_v17 = vadd.f32 %v11355_v33, %v9129_v13  ;;  %v3381_v18 = vpop.f32.mrb[219].mxu0  ;;  %v4277_v19 = vpop.f32.mrb[219].mxu1 }
 0x2d0   : > { %v4521_v20 = vmax.f32 %v3379_v10, 0.0  ;;  %v4745_v8 = vmax.f32 %v4275_v11, 0.0  ;;  %v3382_v21 = vadd.f32 %v11355_v33, %v3381_v18  ;;  %v4278_v22 = vadd.f32 %v11355_v33, %v4277_v19 }
 0x2d1   : > { %v8226_v23 = vpack.c.bf16 %v4523_v14, %v4523_v14  ;;  %v8450_v24 = vpack.c.bf16 %v4747_v15, %v4747_v15  ;;  %v4524_v25 = vmax.f32 %v3390_v16, 0.0  ;;  %v4748_v27 = vmax.f32 %v4286_v17, 0.0 }
 0x2d2   : > { %v8224_v28 = vpack.c.bf16 %v4521_v20, %v4521_v20  ;;  %v8448_v29 = vpack.c.bf16 %v4745_v8, %v4745_v8  ;;  %v4522_v59 = vmax.f32 %v3382_v21, 0.0  ;;  %v4746_v30 = vmax.f32 %v4278_v22, 0.0 }
 0x2d3   : > { %6764 = vst.msk [vmem:[%s9999_s25 + $0x368] sm:$0xf] %vm6545_vm3, %v8226_v23  ;;  %6988 = vst.msk [vmem:[%s9999_s25 + $0x6e8] sm:$0xf] %vm6545_vm3, %v8450_v24  ;;  %v8227_v31 = vpack.c.bf16 %v4524_v25, %v4524_v25  ;;  %v8451_v32 = vpack.c.bf16 %v4748_v27, %v4748_v27 }
 0x2d4   : > { %6762 = vst.msk [vmem:[%s9999_s25 + $0x360] sm:$0xf] %vm6545_vm3, %v8224_v28  ;;  %6986 = vst.msk [vmem:[%s9999_s25 + $0x6e0] sm:$0xf] %vm6545_vm3, %v8448_v29  ;;  %v8225_v34 = vpack.c.bf16 %v4522_v59, %v4522_v59  ;;  %v8449_v35 = vpack.c.bf16 %v4746_v30, %v4746_v30  ;;  %v8908_v36 = vpop.f32.mrb[220].mxu0  ;;  %v9132_v37 = vpop.f32.mrb[220].mxu1 }
 0x2d5   : > { %6765 = vst.msk [vmem:[%s9999_s25 + $0x36c] sm:$0xf] %vm6545_vm3, %v8227_v31  ;;  %6989 = vst.msk [vmem:[%s9999_s25 + $0x6ec] sm:$0xf] %vm6545_vm3, %v8451_v32  ;;  %v3403_v38 = vadd.f32 %v11355_v33, %v8908_v36  ;;  %v4299_v39 = vadd.f32 %v11355_v33, %v9132_v37  ;;  %v3394_v40 = vpop.f32.mrb[221].mxu0  ;;  %v4290_v41 = vpop.f32.mrb[221].mxu1 }
 0x2d6   : > { %6763 = vst.msk [vmem:[%s9999_s25 + $0x364] sm:$0xf] %vm6545_vm3, %v8225_v34  ;;  %6987 = vst.msk [vmem:[%s9999_s25 + $0x6e4] sm:$0xf] %vm6545_vm3, %v8449_v35  ;;  %v3395_v42 = vadd.f32 %v11355_v33, %v3394_v40  ;;  %v4291_v43 = vadd.f32 %v11355_v33, %v4290_v41  ;;  %v8909_v44 = vpop.f32.mrb[222].mxu0  ;;  %v9133_v45 = vpop.f32.mrb[222].mxu1 }
 0x2d7   : > { %v4527_v46 = vmax.f32 %v3403_v38, 0.0  ;;  %v4751_v47 = vmax.f32 %v4299_v39, 0.0  ;;  %v3406_v48 = vadd.f32 %v11355_v33, %v8909_v44  ;;  %v4302_v49 = vadd.f32 %v11355_v33, %v9133_v45  ;;  %v3397_v50 = vpop.f32.mrb[223].mxu0  ;;  %v4293_v51 = vpop.f32.mrb[223].mxu1 }
 0x2d8   : > { %v4525_v53 = vmax.f32 %v3395_v42, 0.0  ;;  %v4749_v54 = vmax.f32 %v4291_v43, 0.0  ;;  %v3398_v55 = vadd.f32 %v11355_v33, %v3397_v50  ;;  %v4294_v26 = vadd.f32 %v11355_v33, %v4293_v51 }
 0x2d9   : > { %v8230_v56 = vpack.c.bf16 %v4527_v46, %v4527_v46  ;;  %v8454_v57 = vpack.c.bf16 %v4751_v47, %v4751_v47  ;;  %v4528_v58 = vmax.f32 %v3406_v48, 0.0  ;;  %v4752_v60 = vmax.f32 %v4302_v49, 0.0 }
 0x2da   : > { %v8228_v61 = vpack.c.bf16 %v4525_v53, %v4525_v53  ;;  %v8452_v62 = vpack.c.bf16 %v4749_v54, %v4749_v54  ;;  %v4526_v63 = vmax.f32 %v3398_v55, 0.0  ;;  %v4750_v0 = vmax.f32 %v4294_v26, 0.0 }
 0x2db   : > { %6768 = vst.msk [vmem:[%s9999_s25 + $0x378] sm:$0xf] %vm6545_vm3, %v8230_v56  ;;  %6992 = vst.msk [vmem:[%s9999_s25 + $0x6f8] sm:$0xf] %vm6545_vm3, %v8454_v57  ;;  %v8231_v33 = vpack.c.bf16 %v4528_v58, %v4528_v58  ;;  %v8455_v1 = vpack.c.bf16 %v4752_v60, %v4752_v60 }
 0x2dc   : > { %6766 = vst.msk [vmem:[%s9999_s25 + $0x370] sm:$0xf] %vm6545_vm3, %v8228_v61  ;;  %6990 = vst.msk [vmem:[%s9999_s25 + $0x6f0] sm:$0xf] %vm6545_vm3, %v8452_v62  ;;  %v8229_v2 = vpack.c.bf16 %v4526_v63, %v4526_v63  ;;  %v8453_v52 = vpack.c.bf16 %v4750_v0, %v4750_v0 }
 0x2dd   : > { %6769 = vst.msk [vmem:[%s9999_s25 + $0x37c] sm:$0xf] %vm6545_vm3, %v8231_v33  ;;  %6993 = vst.msk [vmem:[%s9999_s25 + $0x6fc] sm:$0xf] %vm6545_vm3, %v8455_v1 }
 0x2de   : > { %6767 = vst.msk [vmem:[%s9999_s25 + $0x374] sm:$0xf] %vm6545_vm3, %v8229_v2  ;;  %6991 = vst.msk [vmem:[%s9999_s25 + $0x6f4] sm:$0xf] %vm6545_vm3, %v8453_v52 }
 0x2df   : > { %9498 = shalt.err (!%p9495_p3)
}
 0x2e0   : > { %s9499_s25 = scalar_lea.hbm %s11574_s29, 28672  ;;  %s9503_s20 = scalar_lea.hbm %s11645_s3, 802816 }
 0x2e1   : > { %p9500_p5 = scmp.ne.s32.totalorder %s11574_s29, %s9499_s25  ;;  %p9504_p2 = scmp.lt.u32.totalorder %s11574_s29, %s11645_s3 }
 0x2e2   : > { %p9505_p4 = scmp.lt.u32.totalorder %s9503_s20, %s9499_s25  ;;  %p9507_p8 = scmp.lt.u32.totalorder %s9499_s25, %s11574_s29 }
 0x2e3   : > { %p9501_p6 = pnand %p9500_p5, %p11654_p9 }
 0x2e4   : > { %p9506_p10 = por %p9505_p4, %p9504_p2 }
 0x2e5   : > { %p9502_p7 = pneg %p9501_p6 }
 0x2e6   : > { %p9508_p12 = por %p9507_p8, %p9506_p10 }
 0x2e8   : > { %p9509_p0 = pnand %p9508_p12, %p9502_p7 }
 0x2ea   : > { %9512 = shalt.err (!%p9509_p0)
}
 0x2eb   : > { %s9590_s16 = smov 64   ;;  %s9591_s27 = smov 4  }
 0x2ec   : > { %9144 = dma.vmem_to_hbm [thread:$0]  (%p11654_p9), %s11576_s26, 28672, %s11574_s29, %s6995_s30, %s9590_s16, %s9590_s16, %s9591_s27  }
 0x2ed PF: > { %p9155_p11 = scmp.ge.s32.totalorder %s9583_s19, 2  ;;  %s7025_s5 = sand.u32 1, %s9555_s12  }
 0x2ee   : > { %p11655_p13 = scmp.ne.s32.totalorder %s11652_s4, 0  ;;  %s7026_s23 = scalar_lea.sflag [#allocation4], %s7025_s5 }
 0x2f0   : > { %p9151_p1 = pnand %p9155_p11, %p11655_p13 }
 0x2f2   : > { %9550 = dma.done.wait (!%p9151_p1), %s7026_s23, 28672  }
 0x2f3   : > { %9552 = vsyncadd (!%p9151_p1), %s7026_s23, 4294938624  ;;  %s19_s19 = sadd.s32 1, %s9583_s19   ;;  %s11656_s28 = sld [smem:[#allocation8_spill]] }
 0x2f4   : > { %p16_p3 = scmp.ge.s32.totalorder %s19_s19, 30   ;;  %s11657_s12 = smov %s9559_s13 }
 0x2f5   : > { %s11658_s13 = smov %s9563_s14  ;;  %s11659_s14 = smov %s9690_s6 }
 0x2f6   : > { %s11660_s15 = smov %s9575_s17  ;;  %s11661_s16 = smov %s9579_s18 }
 0x2f7   : > { %s11662_s17 = smov %s11665_s22  ;;  %18 = sbr.rel (!%p16_p3) target bundleno = 7 (0x7), region = 77 }
 0x2f9   : > { %s11663_s18 = smov %s11656_s28 }
 0x2fe   :  { %7031 = vsyncpa [#allocation3], 1 }
 0x2ff   :  { %7033 = vsyncpa [#allocation3 + $0x1], 1 }
 0x300   :  { %7034 = vsyncpa [#allocation4], 1 }
 0x301   :  { %7036 = vsyncpa [#allocation4 + $0x1], 1 }

</bundles_post_ra>
